<compile_context>
chip_gen: v7x
topology: tpu7x:2x2x1
jax: 0.10.0
libtpu: 0.0.40
codegen_flags: <defaults>
</compile_context>

<pallas_src>
import math
import numpy as np
import jax
import jax.numpy as jnp
from jax.experimental import pallas as pl
from jax.experimental.pallas import tpu as pltpu


def _round_up(x: int, m: int) -> int:
    return (x + m - 1) // m * m


def _signed_angle(ind_ref, fsel_ref):
    """Per-lane signed rotation angle, shape (rows, D).

    angle[n, j] = sign(j) * indices[n, c(j)] * freqs[f(j)]  (0 on padded lanes)
    with sign(j) = -1 on even lanes, +1 on odd lanes, so cos(angle) and
    sin(angle) are directly the two coefficients of the interleaved rotation.
    Pure f32 VPU broadcasts (exact) — kept off the MXU so the angle never
    loses precision.
    """
    acc = ind_ref[:, 0:1] * fsel_ref[0:1, :]
    for c in range(1, ind_ref.shape[1]):
        acc = acc + ind_ref[:, c:c + 1] * fsel_ref[c:c + 1, :]
    return acc


def _rope_kernel_roll(ind_ref, fsel_ref, q_ref, k_ref, qo_ref, ko_ref):
    """Lane-aligned path (row width % 128 == 0): pair swap via XLU rolls."""
    tn, d = q_ref.shape
    ang = _signed_angle(ind_ref, fsel_ref)
    cos_t = jnp.cos(ang)
    sin_t = jnp.sin(ang)

    # Convention-agnostic lane-pair swap: roll by +1 and by d-1, then pick per
    # lane whichever rotated copy holds lane (j ^ 1).  The pick mask is derived
    # by rolling a lane-index iota with the SAME op, so it is correct no matter
    # which rotation direction the hardware op implements.
    lane = jax.lax.broadcasted_iota(jnp.int32, (tn, d), 1)
    want = (lane ^ 1).astype(jnp.float32)
    use_r1 = pltpu.roll(lane.astype(jnp.float32), 1, axis=1) == want

    def pair_swap(x):
        return jnp.where(use_r1,
                         pltpu.roll(x, 1, axis=1),
                         pltpu.roll(x, d - 1, axis=1))

    q = q_ref[...].astype(jnp.float32)
    k = k_ref[...].astype(jnp.float32)
    qo_ref[...] = (q * cos_t + pair_swap(q) * sin_t).astype(qo_ref.dtype)
    ko_ref[...] = (k * cos_t + pair_swap(k) * sin_t).astype(ko_ref.dtype)


def _rope_kernel_perm(ind_ref, fsel_ref, perm_ref, q_ref, k_ref, qo_ref, ko_ref):
    """Fallback path (row width not a multiple of 128): pair swap via a tiny
    (D, D) 0/1 permutation matmul on the otherwise-idle MXU."""
    ang = _signed_angle(ind_ref, fsel_ref)
    cos_t = jnp.cos(ang)
    sin_t = jnp.sin(ang)
    p = perm_ref[...]

    def pair_swap(x):
        return jnp.dot(x, p, preferred_element_type=jnp.float32)

    q = q_ref[...].astype(jnp.float32)
    k = k_ref[...].astype(jnp.float32)
    qo_ref[...] = (q * cos_t + pair_swap(q) * sin_t).astype(qo_ref.dtype)
    ko_ref[...] = (k * cos_t + pair_swap(k) * sin_t).astype(ko_ref.dtype)


class RotaryPositionEmbedder:
    """JAX/Pallas port of trellis RotaryPositionEmbedder (forward pass)."""

    def __init__(self, hidden_size: int, in_channels: int = 3):
        assert hidden_size % 2 == 0, "Hidden size must be divisible by 2"
        self.hidden_size = hidden_size
        self.in_channels = in_channels
        self.freq_dim = hidden_size // in_channels // 2
        freqs = np.arange(self.freq_dim, dtype=np.float32) / max(self.freq_dim, 1)
        self.freqs = (1.0 / (10000.0 ** freqs)).astype(np.float32)   # (freq_dim,)

    # ---------------- host-side constant tables ----------------
    def _freq_table_np(self, C: int, D: int) -> np.ndarray:
        """Signed, pair-interleaved frequency-selection table, shape (C, D)."""
        half = D // 2
        freq_dim = self.freq_dim
        assert C * freq_dim <= half, "too many position channels for hidden size"
        j = np.arange(D)
        p = j // 2
        sign = np.where(j % 2 == 0, -1.0, 1.0).astype(np.float32)
        fsel = np.zeros((C, D), np.float32)
        for c in range(C):
            band = (p >= c * freq_dim) & (p < (c + 1) * freq_dim)
            fsel[c, band] = sign[band] * self.freqs[p[band] - c * freq_dim]
        return fsel                       # padded lanes stay 0 -> identity rotation

    def _packed_freq_table(self, C: int, D: int, g: int) -> jnp.ndarray:
        """Block-diagonal table for g rows folded into one packed row."""
        base = self._freq_table_np(C, D)
        if g == 1:
            return jnp.asarray(base)
        out = np.zeros((g * C, g * D), np.float32)
        for a in range(g):
            out[a * C:(a + 1) * C, a * D:(a + 1) * D] = base
        return jnp.asarray(out)

    @staticmethod
    def _pair_perm(D: int) -> jnp.ndarray:
        j = np.arange(D)
        perm = np.zeros((D, D), np.float32)
        perm[j ^ 1, j] = 1.0              # swap(x)[j] = x[j ^ 1]
        return jnp.asarray(perm)

    # ---------------- forward ----------------
    def __call__(self, q, k, indices=None):
        D = q.shape[-1]
        assert D == self.hidden_size, "last dim of q/k must equal hidden_size"
        assert k.shape == q.shape, "q and k must have the same shape"

        if indices is None:
            n_seq = q.shape[-2]
            idx = jnp.arange(n_seq, dtype=jnp.float32)
            idx = jnp.broadcast_to(idx, q.shape[:-2] + (n_seq,))[..., None]
        else:
            idx = indices.astype(jnp.float32)
            assert idx.shape[:-1] == q.shape[:-1], "indices must be [..., N, C]"
        C = idx.shape[-1]

        lead_shape = q.shape[:-1]
        qf = q.reshape(-1, D)
        kf = k.reshape(-1, D)
        idxf = idx.reshape(-1, C)
        N = qf.shape[0]

        # Lane-dense row packing: fold g consecutive rows into one packed row
        # whose width is a multiple of 128 lanes.  This is a pure metadata
        # reshape on contiguous arrays (no HBM copy) when N % g == 0.
        if D % 128 == 0:
            g = 1
        else:
            g = 128 // math.gcd(D, 128)
            if N % g != 0:
                g = 1            # ragged row count -> permutation-matmul path
        Dp, Cp, Np = g * D, g * C, N // g
        if g > 1:
            qf = qf.reshape(Np, Dp)
            kf = kf.reshape(Np, Dp)
            idxf = idxf.reshape(Np, Cp)

        fsel = self._packed_freq_table(C, D, g)

        # Tiling: large row tiles sized against a conservative VMEM budget
        # (fits v7x's 64 MiB with full double-buffering; v5e/v6e have headroom).
        itemsize = jnp.dtype(q.dtype).itemsize
        sub = {4: 8, 2: 16, 1: 32}.get(itemsize, 8)        # sublane packing
        # 4 [tile, Dp] slabs (q/k in + out) double-buffered, plus f32 temporaries.
        bytes_per_row = Dp * (8 * itemsize + 24)
        budget = 24 * 1024 * 1024
        tile_n = max(sub, min(2048, budget // bytes_per_row) // sub * sub)
        tile_n = min(tile_n, _round_up(Np, sub))
        # Prefer >= 2 grid steps when there is enough work (pipelining; v7x 2 TCs).
        if tile_n >= Np and Np >= 2 * sub:
            tile_n = _round_up(pl.cdiv(Np, 2), sub)
        # Ragged last block is handled by Pallas (masked writeback) -> no
        # wrapper-side pad/slice HBM copies.
        grid = (pl.cdiv(Np, tile_n),)

        row_spec = pl.BlockSpec((tile_n, Dp), lambda i: (i, 0))
        ind_spec = pl.BlockSpec((tile_n, Cp), lambda i: (i, 0))
        fsel_spec = pl.BlockSpec((Cp, Dp), lambda i: (0, 0))
        out_shape = (jax.ShapeDtypeStruct((Np, Dp), q.dtype),
                     jax.ShapeDtypeStruct((Np, Dp), k.dtype))

        if Dp % 128 == 0:
            kernel = _rope_kernel_roll
            in_specs = [ind_spec, fsel_spec, row_spec, row_spec]
            args = (idxf, fsel, qf, kf)
        else:
            kernel = _rope_kernel_perm
            in_specs = [ind_spec, fsel_spec,
                        pl.BlockSpec((Dp, Dp), lambda i: (0, 0)),
                        row_spec, row_spec]
            args = (idxf, fsel, self._pair_perm(Dp), qf, kf)

        qo, ko = pl.pallas_call(
            kernel,
            out_shape=out_shape,
            grid=grid,
            in_specs=in_specs,
            out_specs=(row_spec, row_spec),
            compiler_params=pltpu.CompilerParams(
                dimension_semantics=("parallel",),
                vmem_limit_bytes=48 * 1024 * 1024),
        )(*args)

        q_embed = qo.reshape(lead_shape + (D,))
        k_embed = ko.reshape(lead_shape + (D,))
        return q_embed, k_embed


def _reference(q, k, indices, hidden_size, in_channels):
    """Pure-JAX reference matching the PyTorch forward semantics."""
    freq_dim = hidden_size // in_channels // 2
    freqs = 1.0 / (10000.0 ** (jnp.arange(freq_dim, dtype=jnp.float32) / freq_dim))
    N = q.shape[0]
    half = hidden_size // 2
    ang = (indices.reshape(-1).astype(jnp.float32)[:, None] * freqs[None, :])
    ang = ang.reshape(N, -1)
    if ang.shape[1] < half:
        ang = jnp.concatenate(
            [ang, jnp.zeros((N, half - ang.shape[1]), jnp.float32)], axis=-1)
    c, s = jnp.cos(ang), jnp.sin(ang)

    def rot(x):
        x2 = x.astype(jnp.float32).reshape(N, half, 2)
        xr, xi = x2[..., 0], x2[..., 1]
        return jnp.stack([xr * c - xi * s, xr * s + xi * c], axis=-1
                         ).reshape(N, hidden_size).astype(x.dtype)

    return rot(q), rot(k)


if __name__ == "__main__":
    def run_case(hidden_size, in_channels, N, use_default_indices=False,
                 dtype=jnp.float32, tol=1e-4):
        key = jax.random.PRNGKey(0)
        kq, kk, ki = jax.random.split(key, 3)
        q = jax.random.normal(kq, (N, hidden_size), dtype=dtype)
        k = jax.random.normal(kk, (N, hidden_size), dtype=dtype)
        rope = RotaryPositionEmbedder(hidden_size, in_channels)
        if use_default_indices:
            indices = None
            ref_idx = jnp.arange(N, dtype=jnp.float32)[:, None]
        else:
            indices = jax.random.randint(ki, (N, in_channels), 0, 16).astype(jnp.float32)
            ref_idx = indices
        q_embed, k_embed = rope(q, k, indices)
        jax.block_until_ready((q_embed, k_embed))
        q_ref, k_ref = _reference(q, k, ref_idx, hidden_size, in_channels)
        np.testing.assert_allclose(np.asarray(q_embed.astype(jnp.float32)),
                                   np.asarray(q_ref.astype(jnp.float32)),
                                   rtol=tol, atol=tol)
        np.testing.assert_allclose(np.asarray(k_embed.astype(jnp.float32)),
                                   np.asarray(k_ref.astype(jnp.float32)),
                                   rtol=tol, atol=tol)

    # Lane-aligned (D % 128 == 0) roll path, ragged N, 2-step parallel grid.
    run_case(512, 3, 40, tol=1e-4)
    # Default sequential-indices path (indices=None, C=1).
    run_case(512, 3, 40, use_default_indices=True, tol=1e-4)
    # Small D packed to lane-dense 128-wide rows (g=2), ragged 2-step grid.
    run_case(64, 3, 64, tol=1e-4)
    # Small D with g=4 packing and a single ragged block.
    run_case(32, 3, 20, tol=1e-4)
    # Row count not divisible by the pack factor -> permutation-matmul fallback.
    run_case(32, 3, 18, tol=1e-4)
    # bf16 streamed in native dtype (half HBM traffic), f32 in-kernel compute.
    run_case(64, 3, 32, dtype=jnp.bfloat16, tol=2e-2)

    print("KERNEL_OK")
</pallas_src>

<mosaic_0001>
module attributes {stable_mosaic.version = 11 : i64} {
  func.func @_rope_kernel_roll(%arg0: i32, %arg1: memref<24x3xf32, #tpu.memory_space<vmem>>, %arg2: memref<3x512xf32, #tpu.memory_space<vmem>>, %arg3: memref<24x512xf32, #tpu.memory_space<vmem>>, %arg4: memref<24x512xf32, #tpu.memory_space<vmem>>, %arg5: memref<24x512xf32, #tpu.memory_space<vmem>>, %arg6: memref<24x512xf32, #tpu.memory_space<vmem>>) attributes {dimension_semantics = [#tpu.dimension_semantics<parallel>], iteration_bounds = array<i64: 2>, scalar_prefetch = 0 : i64, scratch_operands = 0 : i64, tpu.core_type = #tpu.core_type<tc>, window_params = [{transform_indices = @transform_0, window_bounds = array<i64: 24, 3>}, {pipeline_mode = #tpu.pipeline_mode<synchronous>, transform_indices = @transform_1, window_bounds = array<i64: 3, 512>}, {transform_indices = @transform_2, window_bounds = array<i64: 24, 512>}, {transform_indices = @transform_3, window_bounds = array<i64: 24, 512>}, {transform_indices = @transform_4, window_bounds = array<i64: 24, 512>}, {transform_indices = @transform_5, window_bounds = array<i64: 24, 512>}]} {
    %c0 = arith.constant 0 : index
    %c0_0 = arith.constant 0 : index
    %0 = vector.load %arg1[%c0, %c0_0] : memref<24x3xf32, #tpu.memory_space<vmem>>, vector<24x1xf32>
    %c0_1 = arith.constant 0 : index
    %c0_2 = arith.constant 0 : index
    %1 = vector.load %arg2[%c0_1, %c0_2] : memref<3x512xf32, #tpu.memory_space<vmem>>, vector<1x512xf32>
    %2 = vector.broadcast %0 : vector<24x1xf32> to vector<24x512xf32>
    %3 = vector.broadcast %1 : vector<1x512xf32> to vector<24x512xf32>
    %4 = arith.mulf %2, %3 : vector<24x512xf32>
    %c0_3 = arith.constant 0 : index
    %c1 = arith.constant 1 : index
    %5 = vector.load %arg1[%c0_3, %c1] : memref<24x3xf32, #tpu.memory_space<vmem>>, vector<24x1xf32>
    %c1_4 = arith.constant 1 : index
    %c0_5 = arith.constant 0 : index
    %6 = vector.load %arg2[%c1_4, %c0_5] : memref<3x512xf32, #tpu.memory_space<vmem>>, vector<1x512xf32>
    %7 = vector.broadcast %5 : vector<24x1xf32> to vector<24x512xf32>
    %8 = vector.broadcast %6 : vector<1x512xf32> to vector<24x512xf32>
    %9 = arith.mulf %7, %8 : vector<24x512xf32>
    %10 = arith.addf %4, %9 : vector<24x512xf32>
    %c0_6 = arith.constant 0 : index
    %c2 = arith.constant 2 : index
    %11 = vector.load %arg1[%c0_6, %c2] : memref<24x3xf32, #tpu.memory_space<vmem>>, vector<24x1xf32>
    %c2_7 = arith.constant 2 : index
    %c0_8 = arith.constant 0 : index
    %12 = vector.load %arg2[%c2_7, %c0_8] : memref<3x512xf32, #tpu.memory_space<vmem>>, vector<1x512xf32>
    %13 = vector.broadcast %11 : vector<24x1xf32> to vector<24x512xf32>
    %14 = vector.broadcast %12 : vector<1x512xf32> to vector<24x512xf32>
    %15 = arith.mulf %13, %14 : vector<24x512xf32>
    %16 = arith.addf %10, %15 : vector<24x512xf32>
    %17 = math.cos %16 : vector<24x512xf32>
    %18 = math.sin %16 : vector<24x512xf32>
    %19 = tpu.iota {dimensions = array<i32: 1>} : vector<24x512xi32>
    %c1_i32 = arith.constant 1 : i32
    %20 = vector.broadcast %c1_i32 : i32 to vector<24x512xi32>
    %21 = arith.xori %19, %20 : vector<24x512xi32>
    %22 = arith.sitofp %21 : vector<24x512xi32> to vector<24x512xf32>
    %23 = arith.sitofp %19 : vector<24x512xi32> to vector<24x512xf32>
    %c1_i32_9 = arith.constant 1 : i32
    %24 = tpu.dynamic_rotate %23 by %c1_i32_9 dim 1 : vector<24x512xf32>, i32 -> vector<24x512xf32>
    %25 = arith.cmpf oeq, %24, %22 : vector<24x512xf32>
    %c0_10 = arith.constant 0 : index
    %c0_11 = arith.constant 0 : index
    %26 = vector.load %arg3[%c0_10, %c0_11] : memref<24x512xf32, #tpu.memory_space<vmem>>, vector<24x512xf32>
    %c0_12 = arith.constant 0 : index
    %c0_13 = arith.constant 0 : index
    %27 = vector.load %arg4[%c0_12, %c0_13] : memref<24x512xf32, #tpu.memory_space<vmem>>, vector<24x512xf32>
    %28 = arith.mulf %26, %17 : vector<24x512xf32>
    %c1_i32_14 = arith.constant 1 : i32
    %29 = tpu.dynamic_rotate %26 by %c1_i32_14 dim 1 : vector<24x512xf32>, i32 -> vector<24x512xf32>
    %c511_i32 = arith.constant 511 : i32
    %30 = tpu.dynamic_rotate %26 by %c511_i32 dim 1 : vector<24x512xf32>, i32 -> vector<24x512xf32>
    %31 = arith.select %25, %29, %30 : vector<24x512xi1>, vector<24x512xf32>
    %32 = arith.mulf %31, %18 : vector<24x512xf32>
    %33 = arith.addf %28, %32 : vector<24x512xf32>
    %c0_15 = arith.constant 0 : index
    %c0_16 = arith.constant 0 : index
    %34 = vector.load %arg5[%c0_15, %c0_16] : memref<24x512xf32, #tpu.memory_space<vmem>>, vector<24x512xf32>
    tpu.vector_store %arg5[%c0_15, %c0_16], %33 {strides = array<i32>} : memref<24x512xf32, #tpu.memory_space<vmem>>, vector<24x512xf32>,
    %35 = arith.mulf %27, %17 : vector<24x512xf32>
    %c1_i32_17 = arith.constant 1 : i32
    %36 = tpu.dynamic_rotate %27 by %c1_i32_17 dim 1 : vector<24x512xf32>, i32 -> vector<24x512xf32>
    %c511_i32_18 = arith.constant 511 : i32
    %37 = tpu.dynamic_rotate %27 by %c511_i32_18 dim 1 : vector<24x512xf32>, i32 -> vector<24x512xf32>
    %38 = arith.select %25, %36, %37 : vector<24x512xi1>, vector<24x512xf32>
    %39 = arith.mulf %38, %18 : vector<24x512xf32>
    %40 = arith.addf %35, %39 : vector<24x512xf32>
    %c0_19 = arith.constant 0 : index
    %c0_20 = arith.constant 0 : index
    %41 = vector.load %arg6[%c0_19, %c0_20] : memref<24x512xf32, #tpu.memory_space<vmem>>, vector<24x512xf32>
    tpu.vector_store %arg6[%c0_19, %c0_20], %40 {strides = array<i32>} : memref<24x512xf32, #tpu.memory_space<vmem>>, vector<24x512xf32>,
    return
  }
  func.func @transform_0(%arg0: i32) -> (i32, i32) {
    %c0_i32 = arith.constant 0 : i32
    %c0_i32_0 = arith.constant 0 : i32
    return %arg0, %c0_i32 : i32, i32
  }
  func.func @transform_1(%arg0: i32) -> (i32, i32) {
    %c0_i32 = arith.constant 0 : i32
    %c0_i32_0 = arith.constant 0 : i32
    %c0_i32_1 = arith.constant 0 : i32
    return %c0_i32, %c0_i32_0 : i32, i32
  }
  func.func @transform_2(%arg0: i32) -> (i32, i32) {
    %c0_i32 = arith.constant 0 : i32
    %c0_i32_0 = arith.constant 0 : i32
    return %arg0, %c0_i32 : i32, i32
  }
  func.func @transform_3(%arg0: i32) -> (i32, i32) {
    %c0_i32 = arith.constant 0 : i32
    %c0_i32_0 = arith.constant 0 : i32
    return %arg0, %c0_i32 : i32, i32
  }
  func.func @transform_4(%arg0: i32) -> (i32, i32) {
    %c0_i32 = arith.constant 0 : i32
    %c0_i32_0 = arith.constant 0 : i32
    return %arg0, %c0_i32 : i32, i32
  }
  func.func @transform_5(%arg0: i32) -> (i32, i32) {
    %c0_i32 = arith.constant 0 : i32
    %c0_i32_0 = arith.constant 0 : i32
    return %arg0, %c0_i32 : i32, i32
  }
}

</mosaic_0001>

<bundles_post_ra>
// kernel: tpu_custom_call.1
= control target key start
LH: loop header
LB: loop body
LE: loop exit
PB: predicated region body
PF: predicated region fallthrough
CT: control target
= control target key end

     0   :  { %11 = vsyncpa [#allocation3], 0  ;;  %s6844_s0 = inlined_call_operand.vmem [shape: f32[40,3], index: 0, kind: input, shape index: {}]   ;;  %s6845_s1 = inlined_call_operand.vmem [shape: f32[3,512], index: 1, kind: input, shape index: {}]   ;;  %s6846_s2 = inlined_call_operand.hbm [shape: f32[40,512], index: 2, kind: input, shape index: {}]   ;;  %s6847_s3 = inlined_call_operand.hbm [shape: f32[40,512], index: 3, kind: input, shape index: {}]   ;;  %s6848_s4 = inlined_call_operand.hbm [shape: f32[40,512], index: 4, kind: output, shape index: {0}]   ;;  %s6849_s5 = inlined_call_operand.hbm [shape: f32[40,512], index: 5, kind: output, shape index: {1}]  }
   0x1   :  { %13 = vsyncpa [#allocation3 + $0x1], 0 }
   0x2   :  { %14 = vsyncpa [#allocation6], 0 }
   0x3   :  { %16 = vsyncpa [#allocation6 + $0x1], 0 }
   0x4   :  { %17 = vsyncpa [#allocation4], 0 }
   0x5   :  { %19 = vsyncpa [#allocation4 + $0x1], 0 }
   0x6   :  { %20 = vsyncpa [#allocation9], 0 }
   0x7   :  { %22 = vsyncpa [#allocation9 + $0x1], 0  ;;  %s4098_s18 = smov 0   ;;  %s4100_s19 = smov 0  }
   0x8   :  { %s4102_s20 = smov 0   ;;  %s4104_s21 = smov 0  }
   0x9 LB: > { %s4119_s22 = sadd.s32 4294967295, %s4043_s21   ;;  %s3544_s23 = sadd.s32 4294967294, %s4043_s21   ;;  %s4043_s21 = sphi %s4104_s21, %s7216_s21   ;;  %s4039_s20 = sphi %s4102_s20, %s7215_s20   ;;  %s4035_s19 = sphi %s4100_s19, %s7214_s19   ;;  %s4031_s18 = sphi %s4098_s18, %s7213_s18  }
   0xa   : > { %s4123_s24 = sadd.s32 1, %s4043_s21   ;;  %s82_s25 = sadd.s32 1, %s4039_s20 }
   0xb   : > { %s79_s26 = ssub.s32 %s4043_s21, %s4123_s24  ;;  %p89_p0 = scmp.ne.s32.totalorder %s4039_s20, %s4035_s19 }
   0xc   : > { %p80_p1 = scmp.eq.s32.totalorder %s79_s26, 0  ;;  %p90_p2 = scmp.eq.s32.totalorder %s4043_s21, 0 }
   0xd   : > { %p95_p3 = scmp.ne.s32.totalorder %s4035_s19, %s4031_s18  ;;  %p96_p4 = scmp.eq.s32.totalorder %s4119_s22, 0 }
   0xe   : > { %s4135_s27 = scalar_select %p80_p1, %s4039_s20, %s82_s25  }
   0xf   : > { %p4137_p5 = por %p90_p2, %p89_p0  ;;  %p4141_p6 = por %p96_p4, %p95_p3 }
  0x10   : > { %p145_p7 = scmp.eq.s32.totalorder %s4119_s22, 1  ;;  %p151_p8 = scmp.eq.s32.totalorder %s3544_s23, 1 }
  0x11   : > { %p6850_p11 = scmp.ge.s32.totalorder %s4043_s21, 2 }
  0x12   : > { %p4146_p9 = por %p145_p7, %p89_p0  ;;  %p4150_p10 = por %p151_p8, %p95_p3 }
  0x13   : > { %196 = sbr.rel (%p6850_p11) target bundleno = 96 (0x60), region = 20 }
  0x14   : > { %s6969_s30 = scalar_select %p4146_p9, 1, 0 }
  0x15   : > { %s6970_s6 = scalar_select %p4150_p10, 1, 0 }
  0x1a   : > { %216 = sbr.rel (!%p4137_p5) target bundleno = 61 (0x3d), region = 28  ;;  %s217_s7 = sand.u32 (%p4137_p5), 1, %s4039_s20  }
  0x1b   : > { %s222_s8 = smul.u32 (%p4137_p5), 3, %s4043_s21  ;;  %s4164_s13 = scalar_lea.sflag (%p4137_p5), [#allocation3], %s217_s7 }
  0x1c   : > { %s3693_s9 = smul.u32 (%p4137_p5), 96, %s217_s7 }
  0x1d   : > { %s223_s10 = ssub.s32 (%p4137_p5), 5, %s222_s8 }
  0x1e   : > { %p224_p12 = scmp.lt.s32.totalorder (%p4137_p5), %s223_s10, 3  ;;  %s221_s14 = scalar_lea.vmem (%p4137_p5), [#allocation2], %s3693_s9 }
  0x21   : > { %s7218_s10 = smov (!%p224_p12, %s223_s10), 3 }
  0x22   : > { %s4161_s11 = sshll.u32 %s7218_s10, 9 }
  0x23   : > { %s229_s12 = ssub.s32 1536, %s4161_s11 }
  0x24   : > { %230 = vsyncadd %s4164_s13, %s229_s12  ;;  %p3549_p13 = scmp.ne.s32.totalorder %s4161_s11, 0  ;;  %s3689_s15 = smul.u32 1536, %s4043_s21 }
  0x25   : > { %s236_s16 = sshll.u32 %s221_s14, 4  ;;  %s3889_s9 = scalar_lea.hbm %s6846_s2, 2560  ;;  %s4174_s16 = int_to_ptr.vmem [resolvable:$true] %s236_s16 }
  0x26   : > { %s4172_s25 = scalar_lea.hbm %s6846_s2, %s3689_s15 }
  0x27   : > { %s3885_s26 = scalar_lea.hbm %s4172_s25, %s4161_s11  ;;  %p3890_p3 = scmp.lt.u32.totalorder %s4172_s25, %s6846_s2 }
  0x28   : > { %p3886_p0 = scmp.ne.s32.totalorder %s4172_s25, %s3885_s26  ;;  %p3891_p4 = scmp.lt.u32.totalorder %s3889_s9, %s3885_s26 }
  0x29   : > { %p3893_p8 = scmp.lt.u32.totalorder %s3885_s26, %s4172_s25 }
  0x2a   : > { %p3887_p1 = pnand %p3886_p0, %p3549_p13  ;;  %p3892_p7 = por %p3891_p4, %p3890_p3 }
  0x2c   : > { %p3888_p2 = pneg %p3887_p1  ;;  %p3894_p12 = por %p3893_p8, %p3892_p7 }
  0x2e   : > { %p3895_p11 = pnand %p3894_p12, %p3888_p2 }
  0x30   : > { %3898 = shalt.err (!%p3895_p11)
}
  0x31   : > { %s3899_s14 = scalar_lea.vmem %s4174_s16, %s4161_s11  ;;  %s4045_s15 = smov [#allocation2]  }
  0x32   : > { %p3900_p0 = scmp.ne.s32.totalorder %s4174_s16, %s3899_s14  ;;  %s3903_s17 = sshll.u32 %s4045_s15, 4  ;;  %s3904_s17 = int_to_ptr.vmem [resolvable:$false] %s3903_s17 }
  0x33   : > { %s3905_s23 = scalar_lea.vmem %s3904_s17, 3072  ;;  %p3906_p9 = scmp.lt.s32.totalorder %s4174_s16, %s3904_s17 }
  0x34   : > { %p3901_p1 = pnand %p3900_p0, %p3549_p13  ;;  %p3907_p3 = scmp.lt.s32.totalorder %s3905_s23, %s3899_s14 }
  0x36   : > { %p3902_p10 = pneg %p3901_p1  ;;  %p3908_p4 = por %p3907_p3, %p3906_p9 }
  0x38   : > { %p3909_p7 = pnand %p3908_p4, %p3902_p10 }
  0x3a   : > { %3912 = shalt.err (!%p3909_p7)
}
  0x3b   : > { %s4046_s26 = smov 512   ;;  %s4047_s7 = smov 32  }
  0x3c   : > { %242 = dma.hbm_to_vmem [thread:$0]  (%p3549_p13), %s4172_s25, %s4161_s11, %s4174_s16, %s4164_s13, %s4046_s26, %s4046_s26, %s4047_s7  }
  0x3d PF: > { %245 = sbr.rel (!%p4137_p5) target bundleno = 96 (0x60), region = 32  ;;  %s246_s8 = sand.u32 (%p4137_p5), 1, %s4039_s20  }
  0x3e   : > { %s251_s9 = smul.u32 (%p4137_p5), 3, %s4043_s21  ;;  %s4208_s17 = scalar_lea.sflag (%p4137_p5), [#allocation6], %s246_s8 }
  0x3f   : > { %s3694_s10 = smul.u32 (%p4137_p5), 96, %s246_s8 }
  0x40   : > { %s252_s12 = ssub.s32 (%p4137_p5), 5, %s251_s9 }
  0x41   : > { %p253_p9 = scmp.lt.s32.totalorder (%p4137_p5), %s252_s12, 3  ;;  %s250_s11 = scalar_lea.vmem (%p4137_p5), [#allocation5], %s3694_s10 }
  0x44   : > { %s7220_s12 = smov (!%p253_p9, %s252_s12), 3 }
  0x45   : > { %s4205_s14 = sshll.u32 %s7220_s12, 9 }
  0x46   : > { %s258_s15 = ssub.s32 1536, %s4205_s14 }
  0x47   : > { %259 = vsyncadd %s4208_s17, %s258_s15  ;;  %p3556_p5 = scmp.ne.s32.totalorder %s4205_s14, 0  ;;  %s3690_s28 = smul.u32 1536, %s4043_s21 }
  0x48   : > { %s265_s13 = sshll.u32 %s250_s11, 4  ;;  %s3917_s9 = scalar_lea.hbm %s6847_s3, 2560  ;;  %s4218_s13 = int_to_ptr.vmem [resolvable:$true] %s265_s13 }
  0x49   : > { %s4216_s23 = scalar_lea.hbm %s6847_s3, %s3690_s28 }
  0x4a   : > { %s3913_s26 = scalar_lea.hbm %s4216_s23, %s4205_s14  ;;  %p3918_p2 = scmp.lt.u32.totalorder %s4216_s23, %s6847_s3 }
  0x4b   : > { %p3914_p10 = scmp.ne.s32.totalorder %s4216_s23, %s3913_s26  ;;  %p3919_p8 = scmp.lt.u32.totalorder %s3917_s9, %s3913_s26 }
  0x4c   : > { %p3921_p0 = scmp.lt.u32.totalorder %s3913_s26, %s4216_s23 }
  0x4d   : > { %p3915_p11 = pnand %p3914_p10, %p3556_p5  ;;  %p3920_p12 = por %p3919_p8, %p3918_p2 }
  0x4f   : > { %p3916_p13 = pneg %p3915_p11  ;;  %p3922_p1 = por %p3921_p0, %p3920_p12 }
  0x51   : > { %p3923_p3 = pnand %p3922_p1, %p3916_p13 }
  0x53   : > { %3926 = shalt.err (!%p3923_p3)
}
  0x54   : > { %s3927_s15 = scalar_lea.vmem %s4218_s13, %s4205_s14  ;;  %s4048_s11 = smov [#allocation5]  }
  0x55   : > { %p3928_p4 = scmp.ne.s32.totalorder %s4218_s13, %s3927_s15  ;;  %s3931_s28 = sshll.u32 %s4048_s11, 4  ;;  %s3932_s28 = int_to_ptr.vmem [resolvable:$false] %s3931_s28 }
  0x56   : > { %s3933_s16 = scalar_lea.vmem %s3932_s28, 3072  ;;  %p3934_p10 = scmp.lt.s32.totalorder %s4218_s13, %s3932_s28 }
  0x57   : > { %p3929_p7 = pnand %p3928_p4, %p3556_p5  ;;  %p3935_p11 = scmp.lt.s32.totalorder %s3933_s16, %s3927_s15 }
  0x59   : > { %p3930_p9 = pneg %p3929_p7  ;;  %p3936_p2 = por %p3935_p11, %p3934_p10 }
  0x5b   : > { %p3937_p8 = pnand %p3936_p2, %p3930_p9 }
  0x5d   : > { %3940 = shalt.err (!%p3937_p8)
}
  0x5e   : > { %s4049_s25 = smov 512   ;;  %s4050_s26 = smov 32  }
  0x5f   : > { %271 = dma.hbm_to_vmem [thread:$0]  (%p3556_p5), %s4216_s23, %s4205_s14, %s4218_s13, %s4208_s17, %s4049_s25, %s4049_s25, %s4050_s26  }
  0x60 PF: > { %p3561_p13 = scmp.ge.s32.totalorder %s4043_s21, 1  ;;  %p273_p12 = scmp.lt.s32.totalorder %s4043_s21, 3 }
  0x62   : > { %p274_p0 = pnand %p3561_p13, %p273_p12 }
  0x64   : > { %277 = sbr.rel (%p274_p0) target bundleno = 716 (0x2cc), region = 36 }
  0x6b   : > { %s4248_s7 = sand.u32 1, %s4035_s19  }
  0x6c   : > { %s4251_s8 = smul.u32 96, %s4248_s7  ;;  %s280_s9 = scalar_lea.sflag [#allocation3], %s4248_s7 }
  0x6e   : > { %s4255_s10 = scalar_lea.vmem [#allocation2], %s4251_s8 }
  0x6f   : > { %4014 = dma.done.wait (%p4141_p6), %s280_s9, 1536  }
  0x70   : > { %4016 = vsyncadd (%p4141_p6), %s280_s9, 4294965760  ;;  %s289_s14 = scalar_lea.sflag [#allocation6], %s4248_s7  ;;  %s4263_s17 = scalar_lea.vmem [#allocation5], %s4251_s8 }
  0x71   : > { %4018 = dma.done.wait (%p4141_p6), %s289_s14, 1536  }
  0x72   : > { %4020 = vsyncadd (%p4141_p6), %s289_s14, 4294965760  ;;  %s4270_s13 = smul.u32 3, %s4119_s22  ;;  %v4051_v0 = vmov 0   ;;  %v396_v1 = vlaneseq  ;;  %v4052_v6 = vmov 1   ;;  %v4053_v18 = vmov 2   ;;  %v3068_v27 = vld [vmem:[%s4255_s10 + $0x20] sm:$0xff] }
  0x73   : > { %3808 = vset.pattern.permute.xlu1 %v4051_v0  ;;  %3807 = vset.pattern.permute.xlu0 %v4051_v0  ;;  %v4286_v10 = vld [vmem:[%s6845_s1] ss:$4 sm:$0xf]  ;;  %v4291_v11 = vld [vmem:[%s6845_s1 + $0x1] ss:$4 sm:$0xf] }
  0x74   : > { %p343_p5 = scmp.lt.s32.totalorder %s4270_s13, 4  ;;  %v4277_v4 = vshrl.u32 %v396_v1, 7  ;;  %v4281_v9 = vand.u32 127, %v396_v1  ;;  %v4311_v17 = vld [vmem:[%s6845_s1 + $0x2] ss:$4 sm:$0xf] }
  0x75   : > { %v3064_v28 = vld [vmem:[%s4255_s10] sm:$0xff]  ;;  %v3065_v29 = vld [vmem:[%s4255_s10 + $0x8] sm:$0xff]  ;;  %v3070_v33 = vld [vmem:[%s4255_s10 + $0x30] sm:$0xff]  ;;  %s5384_s15 = scalar_lea.vmem [#allocation7], %s4251_s8  ;;  %s6583_s11 = scalar_lea.vmem [#allocation8], %s4251_s8 }
  0x76   : > { %s344_s23 = scalar_select %p343_p5, %s4270_s13, 4  ;;  %v406_v7 = vsub.s32 2, %v4277_v4  ;;  %v410_v8 = vsub.s32 3, %v4277_v4  ;;  %v4303_v15 = vadd.s32 128, %v4281_v9  ;;  %v4318_v21 = vadd.s32 384, %v4281_v9  ;;  %v3072_v30 = vld [vmem:[%s4255_s10 + $0x40] sm:$0xff] }
  0x77   : > { %v3043_v23 = vcvt.s32.f32 %v4281_v9  ;;  %v4327_v25 = vadd.s32 256, %v4281_v9  ;;  %v3073_v31 = vld [vmem:[%s4255_s10 + $0x48] sm:$0xff]  ;;  %v3066_v34 = vld [vmem:[%s4255_s10 + $0x10] sm:$0xff]  ;;  %v3067_v35 = vld [vmem:[%s4255_s10 + $0x18] sm:$0xff]  ;;  %v402_v51 = vsub.s32 1, %v4277_v4  ;;  %vm6960_vm5 = vcmp.lt.s32.totalorder %v4281_v9, 1 }
  0x78   : > { %s3562_s12 = sshll.u32 %s344_s23, 3  ;;  %v4294_v12 = vrot.slane %v4286_v10, %v406_v7  ;;  %v4297_v13 = vrot.slane %v4286_v10, %v410_v8  ;;  %v4300_v14 = vrot.slane %v4291_v11, %v406_v7  ;;  %v4306_v16 = vrot.slane %v4291_v11, %v410_v8  ;;  %s4054_s23 = smov 1   ;;  %v3069_v32 = vld [vmem:[%s4255_s10 + $0x28] sm:$0xff]  ;;  %v3074_v36 = vld [vmem:[%s4255_s10 + $0x50] sm:$0xff]  ;;  %v3075_v37 = vld [vmem:[%s4255_s10 + $0x58] sm:$0xff] }
  0x79   : > { %s346_s28 = scalar_lea.vmem %s6844_s0, %s3562_s12  ;;  %v4314_v19 = vrot.slane %v4311_v17, %v406_v7  ;;  %v3044_v20 = vcvt.s32.f32 %v4303_v15  ;;  %v4321_v22 = vrot.slane %v4311_v17, %v410_v8  ;;  %v3046_v24 = vcvt.s32.f32 %v4318_v21  ;;  %v3071_v38 = vld [vmem:[%s4255_s10 + $0x38] sm:$0xff]  ;;  %s4055_s12 = smov 127   ;;  %v3080_v39 = vld [vmem:[%s4263_s17 + $0x20] sm:$0xff]  ;;  %v3077_v41 = vld [vmem:[%s4263_s17 + $0x8] sm:$0xff] }
  0x7a   : > { %v378_v2 = vld [vmem:[%s346_s28 + $0x10] sm:$0xff]  ;;  %v376_v3 = vld [vmem:[%s346_s28] sm:$0xff]  ;;  %v377_v5 = vld [vmem:[%s346_s28 + $0x8] sm:$0xff]  ;;  %v3045_v26 = vcvt.s32.f32 %v4327_v25  ;;  %v4407_v52 = vrot.slane %v4286_v10, %v402_v51  ;;  %v450_v61 = vrot.slane %v4291_v11, %v402_v51  ;;  %s3354_s8 = scalar_lea.sflag [#allocation4], %s4248_s7  ;;  %s3359_s28 = scalar_lea.sflag [#allocation9], %s4248_s7 }
  0x7b   : > { %392 = vperm.xlu1 %3808, %v378_v2   ;;  %382 = vperm.xlu0 %3807, %v376_v3   ;;  %v3076_v40 = vld [vmem:[%s4263_s17] sm:$0xff]  ;;  %v3085_v43 = vld [vmem:[%s4263_s17 + $0x48] sm:$0xff]  ;;  %v3082_v45 = vld [vmem:[%s4263_s17 + $0x30] sm:$0xff]  ;;  %p7209_p6 = scmp.ne.s32.totalorder %s6969_s30, 0 }
  0x7c   : > { %v3084_v42 = vld [vmem:[%s4263_s17 + $0x40] sm:$0xff]  ;;  %v3081_v44 = vld [vmem:[%s4263_s17 + $0x28] sm:$0xff]  ;;  %v3078_v46 = vld [vmem:[%s4263_s17 + $0x10] sm:$0xff]  ;;  %s3367_s29 = ssub.s32 (%p7209_p6), 5, %s4270_s13 }
  0x7d   : > { %v3079_v47 = vld [vmem:[%s4263_s17 + $0x18] sm:$0xff]  ;;  %v3086_v48 = vld [vmem:[%s4263_s17 + $0x50] sm:$0xff]  ;;  %p3368_p1 = scmp.lt.s32.totalorder (%p7209_p6), %s3367_s29, 3 }
  0x7e   : > { %v3087_v49 = vld [vmem:[%s4263_s17 + $0x58] sm:$0xff] }
  0x7f   : > { %3809 = vset.pattern.permute.xlu1 %v4052_v6  ;;  %387 = vperm.xlu0 %3807, %v377_v5   ;;  %v3083_v50 = vld [vmem:[%s4263_s17 + $0x38] sm:$0xff] }
  0x80   : > { %431 = vperm.xlu1 %3809, %v376_v3  }
  0x83   : > { %3810 = vset.pattern.permute.xlu0 %v4052_v6  ;;  %v398_v6 = vsub.s32 0, %v4277_v4 }
  0x84   : > { %439 = vperm.xlu1 %3809, %v378_v2   ;;  %435 = vperm.xlu0 %3810, %v377_v5  }
  0x88   : > { %3811 = vset.pattern.permute.xlu1 %v4053_v18  ;;  %3812 = vset.pattern.permute.xlu0 %v4053_v18 }
  0x89   : > { %490 = vperm.xlu1 %3811, %v376_v3   ;;  %494 = vperm.xlu0 %3812, %v377_v5  }
  0x8d   : > { %498 = vperm.xlu1 %3811, %v378_v2   ;;  %3049 = vrot.lane.b32.xlu0 %v3044_v20, %s4054_s23 }
  0x91   : > { %3047 = vrot.lane.b32.xlu1 %v3043_v23, %s4054_s23  ;;  %3053 = vrot.lane.b32.xlu0 %v3046_v24, %s4054_s23  ;;  %v4433_v24 = vrot.slane %v4291_v11, %v398_v6 }
  0x95   : > { %3051 = vrot.lane.b32.xlu1 %v3045_v26, %s4054_s23  ;;  %3102 = vrot.lane.b32.xlu0 %v3068_v27, %s4054_s23 }
  0x99   : > { %3100 = vrot.lane.b32.xlu1 %v3064_v28, %s4054_s23  ;;  %3106 = vrot.lane.b32.xlu0 %v3065_v29, %s4054_s23 }
  0x9d   : > { %3104 = vrot.lane.b32.xlu1 %v3072_v30, %s4054_s23  ;;  %3110 = vrot.lane.b32.xlu0 %v3073_v31, %s4054_s23 }
  0xa1   : > { %3108 = vrot.lane.b32.xlu1 %v3069_v32, %s4054_s23  ;;  %3114 = vrot.lane.b32.xlu0 %v3070_v33, %s4054_s23 }
  0xa5   : > { %3112 = vrot.lane.b32.xlu1 %v3066_v34, %s4054_s23  ;;  %3118 = vrot.lane.b32.xlu0 %v3067_v35, %s4054_s23 }
  0xa9   : > { %3116 = vrot.lane.b32.xlu1 %v3074_v36, %s4054_s23  ;;  %3122 = vrot.lane.b32.xlu0 %v3075_v37, %s4054_s23 }
  0xad   : > { %3120 = vrot.lane.b32.xlu1 %v3071_v38, %s4054_s23  ;;  %3138 = vrot.lane.b32.xlu0 %v3068_v27, %s4055_s12  ;;  %v4441_v27 = vrot.slane %v4286_v10, %v398_v6 }
  0xb1   : > { %3136 = vrot.lane.b32.xlu1 %v3064_v28, %s4055_s12  ;;  %3142 = vrot.lane.b32.xlu0 %v3065_v29, %s4055_s12  ;;  %v4446_v29 = vrot.slane %v4311_v17, %v402_v51 }
  0xb5   : > { %3140 = vrot.lane.b32.xlu1 %v3072_v30, %s4055_s12  ;;  %3146 = vrot.lane.b32.xlu0 %v3073_v31, %s4055_s12 }
  0xb9   : > { %3144 = vrot.lane.b32.xlu1 %v3069_v32, %s4055_s12  ;;  %3150 = vrot.lane.b32.xlu0 %v3070_v33, %s4055_s12  ;;  %v4455_v32 = vrot.slane %v4311_v17, %v398_v6 }
  0xbd   : > { %3148 = vrot.lane.b32.xlu1 %v3066_v34, %s4055_s12  ;;  %3154 = vrot.lane.b32.xlu0 %v3067_v35, %s4055_s12 }
  0xc1   : > { %3152 = vrot.lane.b32.xlu1 %v3074_v36, %s4055_s12  ;;  %3158 = vrot.lane.b32.xlu0 %v3075_v37, %s4055_s12 }
  0xc5   : > { %3156 = vrot.lane.b32.xlu1 %v3071_v38, %s4055_s12  ;;  %3235 = vrot.lane.b32.xlu0 %v3080_v39, %s4054_s23 }
  0xc9   : > { %3233 = vrot.lane.b32.xlu1 %v3076_v40, %s4054_s23  ;;  %3239 = vrot.lane.b32.xlu0 %v3077_v41, %s4054_s23 }
  0xcd   : > { %3237 = vrot.lane.b32.xlu1 %v3084_v42, %s4054_s23  ;;  %3243 = vrot.lane.b32.xlu0 %v3085_v43, %s4054_s23 }
  0xd1   : > { %3241 = vrot.lane.b32.xlu1 %v3081_v44, %s4054_s23  ;;  %3247 = vrot.lane.b32.xlu0 %v3082_v45, %s4054_s23 }
  0xd5   : > { %3245 = vrot.lane.b32.xlu1 %v3078_v46, %s4054_s23  ;;  %3251 = vrot.lane.b32.xlu0 %v3079_v47, %s4054_s23 }
  0xd9   : > { %3249 = vrot.lane.b32.xlu1 %v3086_v48, %s4054_s23  ;;  %3255 = vrot.lane.b32.xlu0 %v3087_v49, %s4054_s23 }
  0xdd   : > { %3253 = vrot.lane.b32.xlu1 %v3083_v50, %s4054_s23  ;;  %3271 = vrot.lane.b32.xlu0 %v3080_v39, %s4055_s12 }
  0xe1   : > { %3269 = vrot.lane.b32.xlu1 %v3076_v40, %s4055_s12  ;;  %3275 = vrot.lane.b32.xlu0 %v3077_v41, %s4055_s12 }
  0xe5   : > { %3273 = vrot.lane.b32.xlu1 %v3084_v42, %s4055_s12  ;;  %3279 = vrot.lane.b32.xlu0 %v3085_v43, %s4055_s12 }
  0xe9   : > { %3277 = vrot.lane.b32.xlu1 %v3081_v44, %s4055_s12  ;;  %3283 = vrot.lane.b32.xlu0 %v3082_v45, %s4055_s12 }
  0xed   : > { %3281 = vrot.lane.b32.xlu1 %v3078_v46, %s4055_s12  ;;  %3287 = vrot.lane.b32.xlu0 %v3079_v47, %s4055_s12 }
  0xf1   : > { %3285 = vrot.lane.b32.xlu1 %v3086_v48, %s4055_s12  ;;  %3291 = vrot.lane.b32.xlu0 %v3087_v49, %s4055_s12 }
  0xf5   : > { %3289 = vrot.lane.b32.xlu1 %v3083_v50, %s4055_s12 }
  0xfa   : > { %v4409_v53 = vpop.permute.xlu1 %392  ;;  %v383_v54 = vpop.permute.xlu0 %382 }
  0xfb   : > { %v425_v55 = vmul.f32 %v4407_v52, %v4409_v53  ;;  %v426_v56 = vmul.f32 %v4294_v12, %v4409_v53  ;;  %v427_v57 = vmul.f32 %v4297_v13, %v4409_v53  ;;  %v417_v58 = vmul.f32 %v4407_v52, %v383_v54 }
  0xfc   : > { %v418_v59 = vmul.f32 %v4294_v12, %v383_v54  ;;  %v419_v60 = vmul.f32 %v4297_v13, %v383_v54  ;;  %v416_v10 = vmul.f32 %v4441_v27, %v383_v54 }
  0xfe   : > { %v4421_v62 = vpop.permute.xlu0 %387 }
  0xff   : > { %v422_v63 = vmul.f32 %v4294_v12, %v4421_v62  ;;  %v423_v0 = vmul.f32 %v4297_v13, %v4421_v62  ;;  %v432_v1 = vpop.permute.xlu1 %431 }
 0x100   : > { %v464_v2 = vmul.f32 %v450_v61, %v432_v1  ;;  %v465_v3 = vmul.f32 %v4300_v14, %v432_v1  ;;  %v466_v5 = vmul.f32 %v4306_v16, %v432_v1 }
 0x102   : > { %v476_v7 = vadd.f32 %v464_v2, %v417_v58  ;;  %v477_v8 = vadd.f32 %v465_v3, %v418_v59  ;;  %v478_v18 = vadd.f32 %v466_v5, %v419_v60 }
 0x103   : > { %v4430_v20 = vpop.permute.xlu1 %439  ;;  %v436_v23 = vpop.permute.xlu0 %435 }
 0x104   : > { %v472_v12 = vmul.f32 %v450_v61, %v4430_v20  ;;  %v473_v13 = vmul.f32 %v4300_v14, %v4430_v20  ;;  %v474_v26 = vmul.f32 %v4306_v16, %v4430_v20  ;;  %v469_v4 = vmul.f32 %v4300_v14, %v436_v23 }
 0x105   : > { %v470_v28 = vmul.f32 %v4306_v16, %v436_v23  ;;  %v463_v14 = vmul.f32 %v4433_v24, %v432_v1  ;;  %v467_v2 = vmul.f32 %v4433_v24, %v436_v23  ;;  %v468_v3 = vmul.f32 %v450_v61, %v436_v23 }
 0x106   : > { %v4448_v11 = vadd.f32 %v472_v12, %v425_v55  ;;  %v4450_v30 = vadd.f32 %v473_v13, %v426_v56  ;;  %v4452_v31 = vadd.f32 %v474_v26, %v427_v57  ;;  %v481_v33 = vadd.f32 %v469_v4, %v422_v63 }
 0x107   : > { %v482_v34 = vadd.f32 %v470_v28, %v423_v0  ;;  %v475_v44 = vadd.f32 %v463_v14, %v416_v10  ;;  %v420_v13 = vmul.f32 %v4441_v27, %v4421_v62  ;;  %v421_v26 = vmul.f32 %v4407_v52, %v4421_v62 }
 0x108   : > { %v491_v35 = vpop.permute.xlu1 %490  ;;  %v495_v16 = vpop.permute.xlu0 %494 }
 0x109   : > { %v523_v36 = vmul.f32 %v4446_v29, %v491_v35  ;;  %v524_v37 = vmul.f32 %v4314_v19, %v491_v35  ;;  %v525_v38 = vmul.f32 %v4321_v22, %v491_v35  ;;  %v522_v39 = vmul.f32 %v4455_v32, %v491_v35 }
 0x10a   : > { %v528_v40 = vmul.f32 %v4314_v19, %v495_v16  ;;  %v529_v17 = vmul.f32 %v4321_v22, %v495_v16  ;;  %v526_v28 = vmul.f32 %v4455_v32, %v495_v16  ;;  %v480_v10 = vadd.f32 %v468_v3, %v421_v26 }
 0x10b   : > { %v4465_v41 = vadd.f32 %v523_v36, %v476_v7  ;;  %v4467_v42 = vadd.f32 %v524_v37, %v477_v8  ;;  %v4469_v43 = vadd.f32 %v525_v38, %v478_v18  ;;  %v4478_v50 = vadd.f32 %v522_v39, %v475_v44 }
 0x10c   : > { %v4471_v45 = vadd.f32 %v528_v40, %v481_v33  ;;  %v4473_v46 = vadd.f32 %v529_v17, %v482_v34  ;;  %v4483_v5 = vpop.permute.xlu1 %498  ;;  %v4485_v6 = vpop.permute.xlu0 %3049  ;;  %v527_v33 = vmul.f32 %v4446_v29, %v495_v16  ;;  %v479_v34 = vadd.f32 %v467_v2, %v420_v13 }
 0x10d   : > { %6971 = vst [vmem:[#allocation14_spill] sm:$0xff] %v4465_v41  ;;  %6972 = vst [vmem:[#allocation15_spill] sm:$0xff] %v4467_v42  ;;  %v652_v47 = vand.u32 2139095040, %v4465_v41  ;;  %v755_v48 = vand.u32 2139095040, %v4467_v42  ;;  %v858_v49 = vand.u32 2139095040, %v4469_v43  ;;  %v549_v59 = vand.u32 2139095040, %v4478_v50 }
 0x10e   : > { %6973 = vst [vmem:[#allocation16_spill] sm:$0xff] %v4469_v43  ;;  %6974 = vst [vmem:[#allocation17_spill] sm:$0xff] %v4471_v45  ;;  %v1167_v60 = vand.u32 2139095040, %v4471_v45  ;;  %v1270_v37 = vand.u32 2139095040, %v4473_v46  ;;  %v6853_v16 = vmov 920167782   ;;  %v533_v45 = vmul.f32 %v4321_v22, %v4483_v5 }
 0x10f   : > { %6975 = vst [vmem:[#allocation18_spill] sm:$0xff] %v4473_v46  ;;  %v653_v51 = vshrl.u32 %v652_v47, 23  ;;  %v756_v54 = vshrl.u32 %v755_v48, 23  ;;  %v859_v55 = vshrl.u32 %v858_v49, 23  ;;  %v550_v7 = vshrl.u32 %v549_v59, 23 }
 0x110   : > { %v1168_v12 = vshrl.u32 %v1167_v60, 23  ;;  %v4515_v38 = vpop.permute.xlu1 %3047  ;;  %v4517_v39 = vpop.permute.xlu0 %3053  ;;  %v6851_v17 = vmov 1326507024   ;;  %v4527_v47 = vadd.f32 %v526_v28, %v479_v34  ;;  %v4529_v48 = vadd.f32 %v527_v33, %v480_v10 }
 0x111   : > { %v3569_v56 = vadd.s32 4294967169, %v653_v51  ;;  %v3573_v57 = vadd.s32 4294967169, %v756_v54  ;;  %v3577_v58 = vadd.s32 4294967169, %v859_v55  ;;  %v3565_v14 = vadd.s32 4294967169, %v550_v7 }
 0x112   : > { %v3589_v62 = vadd.s32 4294967169, %v1168_v12  ;;  %6981 = vst [vmem:[#allocation24_spill] sm:$0xff] %v4529_v48  ;;  %v1271_v59 = vshrl.u32 %v1270_v37, 23  ;;  %v961_v60 = vand.u32 2139095040, %v4527_v47  ;;  %v3036_v26 = vxor.u32 1, %v4303_v15 }
 0x113   : > { %v659_v63 = vadd.s32 1, %v3569_v56  ;;  %v762_v0 = vadd.s32 1, %v3573_v57  ;;  %v865_v1 = vadd.s32 1, %v3577_v58  ;;  %v556_v54 = vadd.s32 1, %v3565_v14 }
 0x114   : > { %v1174_v57 = vadd.s32 1, %v3589_v62  ;;  %v4556_v2 = vpop.permute.xlu1 %3051  ;;  %v4558_v3 = vpop.permute.xlu0 %3102  ;;  %v3593_v13 = vadd.s32 4294967169, %v1271_v59  ;;  %v962_v28 = vshrl.u32 %v961_v60, 23  ;;  %v3035_v34 = vxor.u32 1, %v4281_v9 }
 0x115   : > { %vm660_vm0 = vcmp.gt.s32.totalorder %v659_v63, 0  ;;  %vm763_vm1 = vcmp.gt.s32.totalorder %v762_v0, 0  ;;  %vm866_vm2 = vcmp.gt.s32.totalorder %v865_v1, 0  ;;  %6983 = vst [vmem:[#allocation26_spill] sm:$0xff] %v4558_v3  ;;  %vm557_vm3 = vcmp.gt.s32.totalorder %v556_v54, 0 }
 0x116   : > { %v4487_v8 = vsel %vm660_vm0, %v659_v63, 0  ;;  %v4489_v18 = vsel %vm763_vm1, %v762_v0, 0  ;;  %v4498_v23 = vsel %vm866_vm2, %v865_v1, 0  ;;  %v1064_v63 = vand.u32 2139095040, %v4529_v48 }
 0x117   : > { %v4496_v61 = vand.u32 31, %v4487_v8  ;;  %v4501_v4 = vand.u32 31, %v4489_v18  ;;  %v4509_v52 = vand.u32 31, %v4498_v23  ;;  %vm1175_vm4 = vcmp.gt.s32.totalorder %v1174_v57, 0 }
 0x118   : > { %v4562_v12 = vsel %vm1175_vm4, %v1174_v57, 0  ;;  %v1065_v33 = vshrl.u32 %v1064_v63, 23  ;;  %v558_v10 = vsel %vm557_vm3, %v556_v54, 0  ;;  %v3037_v62 = vxor.u32 1, %v4327_v25  ;;  %v4574_v15 = vpop.permute.xlu1 %3100  ;;  %v4576_v60 = vpop.permute.xlu0 %3106 }
 0x119   : > { %6976 = vst [vmem:[#allocation19_spill] sm:$0xff] %v4496_v61  ;;  %6977 = vst [vmem:[#allocation20_spill] sm:$0xff] %v4501_v4  ;;  %v4506_v35 = vsub.s32 32, %v4496_v61  ;;  %v4512_v36 = vsub.s32 32, %v4501_v4  ;;  %v4521_v40 = vshll.u32 %v6853_v16, %v4496_v61  ;;  %v4533_v49 = vshll.u32 %v6853_v16, %v4501_v4 }
 0x11a   : > { %6979 = vst [vmem:[#allocation22_spill] sm:$0xff] %v4509_v52  ;;  %v4542_v56 = vsub.s32 32, %v4509_v52  ;;  %v4550_v0 = vshll.u32 %v6853_v16, %v4509_v52  ;;  %v4567_v14 = vand.u32 31, %v4562_v12  ;;  %v3038_v37 = vxor.u32 1, %v4318_v21 }
 0x11b   : > { %6978 = vst [vmem:[#allocation21_spill] sm:$0xff] %v4506_v35  ;;  %6980 = vst [vmem:[#allocation23_spill] sm:$0xff] %v4512_v36  ;;  %v4525_v44 = vshrl.u32 %v6851_v17, %v4506_v35  ;;  %v4537_v51 = vshrl.u32 %v6851_v17, %v4512_v36  ;;  %v471_v57 = vmul.f32 %v4433_v24, %v4430_v20  ;;  %v1277_v59 = vadd.s32 1, %v3593_v13 }
 0x11c   : > { %6982 = vst [vmem:[#allocation25_spill] sm:$0xff] %v4542_v56  ;;  %v4554_v1 = vshrl.u32 %v6851_v17, %v4542_v56  ;;  %6984 = vst [vmem:[#allocation27_spill] sm:$0xff] %v4567_v14  ;;  %v3040_v7 = vcvt.s32.f32 %v3036_v26  ;;  %v4578_v63 = vand.u32 31, %v558_v10  ;;  %v3581_v54 = vadd.s32 4294967169, %v962_v28  ;;  %v4621_v46 = vpop.permute.xlu0 %3110 }
 0x11d   : > { %v3585_v58 = vadd.s32 4294967169, %v1065_v33  ;;  %v4581_v55 = vsub.s32 32, %v4567_v14  ;;  %v424_v21 = vmul.f32 %v4441_v27, %v4409_v53  ;;  %v4585_v25 = vcvt.s32.f32 %v3035_v34 }
 0x11e   : > { %v4587_v17 = vcvt.s32.f32 %v3037_v62  ;;  %v4589_v20 = vcvt.s32.f32 %v3038_v37  ;;  %v4593_v24 = vshll.u32 %v6853_v16, %v4567_v14  ;;  %v6989_v13 = vmov 1326507024  }
 0x11f   : > { %6985 = vst [vmem:[#allocation28_spill] sm:$0xff] %v4581_v55  ;;  %6986 = vst [vmem:[#allocation29_spill] sm:$0xff] %v4585_v25  ;;  %v4597_v26 = vshrl.u32 %v6989_v13, %v4581_v55  ;;  %v483_v28 = vadd.f32 %v471_v57, %v424_v21  ;;  %vm1278_vm6 = vcmp.gt.s32.totalorder %v1277_v59, 0  ;;  %v530_v33 = vmul.f32 %v4455_v32, %v4483_v5  ;;  %v4619_v21 = vpop.permute.xlu1 %3104 }
 0x120   : > { %6987 = vst [vmem:[#allocation30_spill] sm:$0xff] %v4587_v17  ;;  %6988 = vst [vmem:[#allocation31_spill] sm:$0xff] %v4589_v20  ;;  %v4602_v53 = vsub.s32 32, %v4578_v63  ;;  %v4604_v27 = vadd.s32 1, %v3581_v54  ;;  %v4606_v34 = vadd.s32 1, %v3585_v58  ;;  %v4610_v37 = vshrl.u32 %v558_v10, 5 }
 0x121   : > { %v4613_v16 = vshrl.u32 %v4487_v8, 5  ;;  %v4615_v57 = vsel %vm1278_vm6, %v1277_v59, 0  ;;  %v531_v32 = vmul.f32 %v4446_v29, %v4483_v5  ;;  %6991 = vst [vmem:[#allocation33_spill] sm:$0xff] %v4619_v21  ;;  %v6859_v54 = vmov 2102212464  }
 0x122   : > { %v572_v58 = vshll.u32 %v6859_v54, %v4578_v63  ;;  %v6992_v62 = vmov 920167782   ;;  %v4630_v8 = vshrl.u32 %v4489_v18, 5  ;;  %v4633_v59 = vand.u32 31, %v4615_v57 }
 0x123   : > { %6990 = vst [vmem:[#allocation32_spill] sm:$0xff] %v4613_v16  ;;  %v4627_v10 = vshll.u32 %v6992_v62, %v4578_v63  ;;  %v532_v29 = vmul.f32 %v4314_v19, %v4483_v5  ;;  %v4639_v20 = vadd.f32 %v530_v33, %v483_v28  ;;  %v4642_v54 = vadd.f32 %v531_v32, %v4448_v11 }
 0x124   : > { %6993 = vst [vmem:[#allocation34_spill] sm:$0xff] %v4630_v8  ;;  %6994 = vst [vmem:[#allocation35_spill] sm:$0xff] %v4633_v59  ;;  %v573_v17 = vshrl.u32 %v6992_v62, %v4602_v53  ;;  %v576_v18 = vshrl.u32 %v6989_v13, %v4602_v53  ;;  %v6996_v43 = vmov 2102212464   ;;  %v4651_v41 = vsub.s32 32, %v4633_v59 }
 0x125   : > { %6995 = vst [vmem:[#allocation36_spill] sm:$0xff] %v4642_v54  ;;  %v675_v42 = vshll.u32 %v6996_v43, %v4496_v61  ;;  %v4654_v19 = vadd.f32 %v532_v29, %v4450_v30  ;;  %v4657_v22 = vadd.f32 %v533_v45, %v4452_v31  ;;  %v1373_v11 = vand.u32 2139095040, %v4639_v20  ;;  %v4677_v61 = vpop.permute.xlu0 %3114 }
 0x126   : > { %6997 = vst [vmem:[#allocation37_spill] sm:$0xff] %v4651_v41  ;;  %v1476_v5 = vand.u32 2139095040, %v4642_v54  ;;  %v778_v28 = vshll.u32 %v6996_v43, %v4501_v4  ;;  %v4665_v33 = vshll.u32 %v6992_v62, %v4633_v59  ;;  %v4669_v32 = vshrl.u32 %v6989_v13, %v4651_v41  ;;  %v3109_v4 = vpop.permute.xlu1 %3108 }
 0x127   : > { %6998 = vst [vmem:[#allocation38_spill] sm:$0xff] %v4654_v19  ;;  %6999 = vst [vmem:[#allocation39_spill] sm:$0xff] %v4657_v22  ;;  %v3058_v30 = vsel %vm6960_vm5, %v4515_v38, %v4485_v6  ;;  %v1374_v31 = vshrl.u32 %v1373_v11, 23  ;;  %v1579_v29 = vand.u32 2139095040, %v4654_v19  ;;  %v1682_v54 = vand.u32 2139095040, %v4657_v22 }
 0x128   : > { %7000 = vst [vmem:[#allocation40_spill] sm:$0xff] %v4665_v33  ;;  %7001 = vst [vmem:[#allocation41_spill] sm:$0xff] %v4669_v32  ;;  %v1477_v45 = vshrl.u32 %v1476_v5, 23  ;;  %v4679_v59 = vor.u32 %v573_v17, %v572_v58  ;;  %vm581_vm7 = vcmp.lt.s32.totalorder %v4610_v37, 4  ;;  %v676_v41 = vshrl.u32 %v6992_v62, %v4506_v35 }
 0x129   : > { %vm4686_vm8 = vcmp.eq.f32.partialorder %v3058_v30, %v3040_v7  ;;  %v7002_v11 = vmov 0  ;;  %vm6945_vm9 = vcmp.lt.s32.totalorder %v4613_v16, 4  ;;  %v3597_v5 = vadd.s32 4294967169, %v1374_v31 }
 0x12a   : > { %v7003_v11 = vsel %vm4686_vm8, 4294967295, %v7002_v11  ;;  %v3601_v22 = vadd.s32 4294967169, %v1477_v45  ;;  %v1580_v19 = vshrl.u32 %v1579_v29, 23  ;;  %v1683_v48 = vshrl.u32 %v1682_v54, 23 }
 0x12b   : > { %7004 = vst [vmem:[#allocation42_spill] sm:$0xff] %v7003_v11  ;;  %v577_v17 = vor.u32 %v576_v18, %v4627_v10  ;;  %v779_v58 = vshrl.u32 %v6992_v62, %v4512_v36  ;;  %v4698_v25 = vsel %vm6960_vm5, %v4556_v2, %v4517_v39  ;;  %v4704_v7 = vsel %vm6960_vm5, %v4485_v6, %v4556_v2  ;;  %v4722_v2 = vpop.permute.xlu0 %3118 }
 0x12c   : > { %7005 = vst [vmem:[#allocation43_spill] sm:$0xff] %v4698_v25  ;;  %7006 = vst [vmem:[#allocation44_spill] sm:$0xff] %v4704_v7  ;;  %v1380_v30 = vadd.s32 1, %v3597_v5  ;;  %v1483_v31 = vadd.s32 1, %v3601_v22  ;;  %v3605_v54 = vadd.s32 4294967169, %v1580_v19  ;;  %v3609_v45 = vadd.s32 4294967169, %v1683_v48  ;;  %v3113_v48 = vpop.permute.xlu1 %3112 }
 0x12d   : > { %v4706_v10 = vor.u32 %v676_v41, %v675_v42  ;;  %vm6944_vm10 = vcmp.lt.s32.totalorder %v4630_v8, 4  ;;  %vm969_vm11 = vcmp.gt.s32.totalorder %v4604_v27, 0  ;;  %v4714_v18 = vsel %vm6960_vm5, %v4574_v15, %v4576_v60  ;;  %7010 = vst [vmem:[#allocation48_spill] sm:$0xff] %v4722_v2 }
 0x12e   : > { %7008 = vst [vmem:[#allocation46_spill] sm:$0xff] %v4714_v18  ;;  %v4720_v6 = vsel %vm6960_vm5, %v4619_v21, %v4621_v46  ;;  %vm1381_vm12 = vcmp.gt.s32.totalorder %v1380_v30, 0  ;;  %vm1484_vm13 = vcmp.gt.s32.totalorder %v1483_v31, 0  ;;  %v1586_v41 = vadd.s32 1, %v3605_v54 }
 0x12f   : > { %7007 = vst [vmem:[#allocation45_spill] sm:$0xff] %v4706_v10  ;;  %7009 = vst [vmem:[#allocation47_spill] sm:$0xff] %v4720_v6  ;;  %v1689_v42 = vadd.s32 1, %v3609_v45  ;;  %vm1072_vm14 = vcmp.gt.s32.totalorder %v4606_v34, 0  ;;  %v4725_v19 = vsel %vm1484_vm13, %v1483_v31, 0  ;;  %v4730_v22 = vsel %vm6960_vm5, %v4558_v3, %v3109_v4 }
 0x130   : > { %7011 = vst [vmem:[#allocation49_spill] sm:$0xff] %v4730_v22  ;;  %v4735_v29 = vsel %vm6960_vm5, %v3109_v4, %v4677_v61  ;;  %v881_v5 = vshll.u32 %v6996_v43, %v4509_v52  ;;  %v970_v54 = vsel %vm969_vm11, %v4604_v27, 0  ;;  %v1382_v45 = vsel %vm1381_vm12, %v1380_v30, 0 }
 0x131   : > { %7012 = vst [vmem:[#allocation50_spill] sm:$0xff] %v4735_v29  ;;  %v4741_v33 = vand.u32 31, %v4725_v19  ;;  %vm1587_vm15 = vcmp.gt.s32.totalorder %v1586_v41, 0  ;;  %vm1690_vm0 = vcmp.gt.s32.totalorder %v1689_v42, 0  ;;  %v4746_v31 = vsel %vm6960_vm5, %v4576_v60, %v3113_v48 }
 0x132   : > { %7013 = vst [vmem:[#allocation51_spill] sm:$0xff] %v4746_v31  ;;  %v4751_v4 = vsel %vm6960_vm5, %v3113_v48, %v4722_v2  ;;  %v4756_v27 = vsel %vm581_vm7, %v4679_v59, 920167782  ;;  %v4760_v30 = vsel %vm581_vm7, %v577_v17, 1326507024  ;;  %v4762_v29 = vor.u32 %v779_v58, %v778_v28  ;;  %v3117_v31 = vpop.permute.xlu1 %3116 }
 0x133   : > { %7014 = vst [vmem:[#allocation52_spill] sm:$0xff] %v4751_v4  ;;  %v1073_v32 = vsel %vm1072_vm14, %v4606_v34, 0  ;;  %v4768_v60 = vsel %vm6945_vm9, %v4706_v10, 920167782  ;;  %v882_v48 = vshrl.u32 %v6992_v62, %v4542_v56  ;;  %v4772_v6 = vand.u32 31, %v970_v54 }
 0x134   : > { %7015 = vst [vmem:[#allocation53_spill] sm:$0xff] %v4762_v29  ;;  %7016 = vst [vmem:[#allocation54_spill] sm:$0xff] %v4768_v60  ;;  %v4775_v4 = vsub.s32 32, %v4741_v33  ;;  %v7017_v17 = vor.u32 %v4525_v44, %v4521_v40  ;;  %v4784_v34 = vand.u32 31, %v1382_v45  ;;  %v4786_v58 = vsel %vm1587_vm15, %v1586_v41, 0 }
 0x135   : > { %v4788_v25 = vsel %vm1690_vm0, %v1689_v42, 0  ;;  %v4790_v7 = vand.u32 31, %v1073_v32  ;;  %v4794_v18 = vshll.u32 %v6992_v62, %v4741_v33  ;;  %v4801_v44 = vand.u32 31, %v4786_v58 }
 0x136   : > { %v4782_v28 = vsel %vm6945_vm9, %v7017_v17, 1326507024  ;;  %v4798_v40 = vshrl.u32 %v6989_v13, %v4775_v4  ;;  %v4806_v41 = vsel %vm6944_vm10, %v4762_v29, 920167782  ;;  %v7023_v42 = vor.u32 %v4537_v51, %v4533_v49  ;;  %v4871_v8 = vpop.permute.xlu1 %3120 }
 0x137   : > { %7018 = vst [vmem:[#allocation55_spill] sm:$0xff] %v4782_v28  ;;  %7019 = vst [vmem:[#allocation56_spill] sm:$0xff] %v4790_v7  ;;  %v4816_v56 = vshrl.u32 %v4498_v23, 5  ;;  %v4819_v52 = vand.u32 31, %v4788_v25  ;;  %v4821_v11 = vor.u32 %v882_v48, %v881_v5  ;;  %v4824_v22 = vsub.s32 32, %v4772_v6 }
 0x138   : > { %7020 = vst [vmem:[#allocation57_spill] sm:$0xff] %v4794_v18  ;;  %7021 = vst [vmem:[#allocation58_spill] sm:$0xff] %v4798_v40  ;;  %v4813_v17 = vsel %vm6944_vm10, %v7023_v42, 1326507024  ;;  %v4829_v49 = vsub.s32 32, %v4801_v44  ;;  %v4831_v51 = vshrl.u32 %v970_v54, 5  ;;  %v984_v5 = vshll.u32 %v6996_v43, %v4772_v6  ;;  %v4854_v54 = vpop.permute.xlu0 %3122 }
 0x139   : > { %7022 = vst [vmem:[#allocation59_spill] sm:$0xff] %v4806_v41  ;;  %7024 = vst [vmem:[#allocation60_spill] sm:$0xff] %v4813_v17  ;;  %v4833_v42 = vshrl.u32 %v1073_v32, 5  ;;  %v4836_v23 = vshrl.u32 %v4562_v12, 5  ;;  %v4839_v29 = vsub.s32 32, %v4784_v34  ;;  %v4844_v48 = vsub.s32 32, %v4790_v7 }
 0x13a   : > { %7025 = vst [vmem:[#allocation61_spill] sm:$0xff] %v4819_v52  ;;  %7026 = vst [vmem:[#allocation62_spill] sm:$0xff] %v4829_v49  ;;  %v4848_v41 = vshll.u32 %v6992_v62, %v4801_v44  ;;  %v4852_v32 = vshrl.u32 %v6989_v13, %v4829_v49  ;;  %v4858_v12 = vshll.u32 %v6992_v62, %v4772_v6  ;;  %v4869_v17 = vsub.s32 32, %v4819_v52 }
 0x13b   : > { %7027 = vst [vmem:[#allocation63_spill] sm:$0xff] %v4836_v23  ;;  %7028 = vst [vmem:[#allocation64_spill] sm:$0xff] %v4844_v48  ;;  %v4862_v18 = vshll.u32 %v6996_v43, %v4790_v7  ;;  %v4866_v40 = vshll.u32 %v6992_v62, %v4790_v7  ;;  %v985_v36 = vshrl.u32 %v6992_v62, %v4824_v22  ;;  %v6918_v21 = vmov 683565275  }
 0x13c   : > { %7029 = vst [vmem:[#allocation65_spill] sm:$0xff] %v4848_v41  ;;  %7030 = vst [vmem:[#allocation66_spill] sm:$0xff] %v4852_v32  ;;  %v4877_v10 = vshrl.u32 %v6989_v13, %v4824_v22  ;;  %v4884_v60 = vsel %vm6960_vm5, %v4621_v46, %v3117_v31  ;;  %v1397_v16 = vshrl.u32 %v6992_v62, %v4839_v29  ;;  %vm580_vm1 = vcmp.lt.s32.totalorder %v4610_v37, 3 }
 0x13d   : > { %7031 = vst [vmem:[#allocation67_spill] sm:$0xff] %v4854_v54  ;;  %7032 = vst [vmem:[#allocation68_spill] sm:$0xff] %v4869_v17  ;;  %v4890_v3 = vshll.u32 %v6992_v62, %v4819_v52  ;;  %v4894_v35 = vshrl.u32 %v6989_v13, %v4869_v17  ;;  %v4899_v28 = vsel %vm6960_vm5, %v3117_v31, %v4854_v54  ;;  %v6929_v52 = vand.u32 2147483647, %v4478_v50 }
 0x13e   : > { %7033 = vst [vmem:[#allocation69_spill] sm:$0xff] %v4871_v8  ;;  %7034 = vst [vmem:[#allocation70_spill] sm:$0xff] %v4884_v60  ;;  %v4903_v46 = vshrl.u32 %v6992_v62, %v4844_v48  ;;  %v4907_v60 = vshrl.u32 %v6989_v13, %v4844_v48  ;;  %v4911_v41 = vshll.u32 %v6996_v43, %v4567_v14  ;;  %v4928_v14 = vshrl.u32 %v1382_v45, 5 }
 0x13f   : > { %7035 = vst [vmem:[#allocation71_spill] sm:$0xff] %v4890_v3  ;;  %7036 = vst [vmem:[#allocation72_spill] sm:$0xff] %v4894_v35  ;;  %v4917_v32 = vsel %vm6960_vm5, %v4677_v61, %v4871_v8  ;;  %v1396_v31 = vshll.u32 %v6996_v43, %v4784_v34  ;;  %v4926_v54 = vor.u32 %v985_v36, %v984_v5  ;;  %v6931_v36 = vmov 2131351028  }
 0x140   : > { %7037 = vst [vmem:[#allocation73_spill] sm:$0xff] %v4899_v28  ;;  %7038 = vst [vmem:[#allocation74_spill] sm:$0xff] %v4917_v32  ;;  %v1400_v28 = vshrl.u32 %v6989_v13, %v4839_v29  ;;  %v563_v61 = vshll.u32 %v6918_v21, %v4578_v63  ;;  %v6926_v32 = vmov 2475754826   ;;  %v1399_v13 = vshll.u32 %v6992_v62, %v4784_v34 }
 0x141   : > { %v564_v8 = vshrl.u32 %v6926_v32, %v4602_v53  ;;  %v4934_v49 = vor.u32 %v1397_v16, %v1396_v31  ;;  %v566_v17 = vshll.u32 %v6926_v32, %v4578_v63  ;;  %v567_v45 = vshrl.u32 %v6931_v36, %v4602_v53 }
 0x142   : > { %v553_v5 = vand.u32 8388607, %v6929_v52  ;;  %v569_v3 = vshll.u32 %v6931_v36, %v4578_v63  ;;  %v570_v16 = vshrl.u32 %v6996_v43, %v4602_v53  ;;  %v1401_v31 = vor.u32 %v1400_v28, %v1399_v13 }
 0x143   : > { %v565_v21 = vor.u32 %v564_v8, %v563_v61  ;;  %v7039_v35 = vmov 683565275   ;;  %v568_v48 = vor.u32 %v567_v45, %v566_v17  ;;  %vm578_vm2 = vcmp.lt.s32.totalorder %v4610_v37, 1 }
 0x144   : > { %v562_v7 = vshrl.u32 %v7039_v35, %v4602_v53  ;;  %v554_v32 = vor.u32 8388608, %v553_v5  ;;  %v571_v2 = vor.u32 %v570_v16, %v569_v3  ;;  %v592_v8 = vsel %vm580_vm1, %v4679_v59, %v4760_v30 }
 0x145   : > { %vm579_vm3 = vcmp.lt.s32.totalorder %v4610_v37, 2  ;;  %v586_v61 = vsel %vm578_vm2, %v565_v21, %v568_v48  ;;  %v6930_v52 = vand.u32 2147483647, %v4639_v20  ;;  %v989_v3 = vor.u32 %v4877_v10, %v4858_v12 }
 0x146   : > { %v582_v63 = vsel %vm578_vm2, %v562_v7, %v565_v21  ;;  %v583_v28 = vsel %vm581_vm7, %v571_v2, 2102212464  ;;  %v588_v53 = vsel %vm580_vm1, %v571_v2, %v4756_v27  ;;  %v590_v17 = vsel %vm578_vm2, %v568_v48, %v571_v2 }
 0x147   : > { %v594_v13 = vshll.u32 %v554_v32, 8  ;;  %v584_v45 = vsel %vm580_vm1, %v568_v48, %v583_v28  ;;  %v589_v59 = vsel %vm579_vm3, %v586_v61, %v588_v53  ;;  %v593_v7 = vsel %vm579_vm3, %v590_v17, %v592_v8 }
 0x148   : > { %v1191_v21 = vshrl.u32 %v6992_v62, %v4581_v55  ;;  %vm1405_vm4 = vcmp.lt.s32.totalorder %v4928_v14, 4  ;;  %v585_v10 = vsel %vm579_vm3, %v582_v63, %v584_v45  ;;  %vm6943_vm6 = vcmp.lt.s32.totalorder %v4816_v56, 4 }
 0x149   : > { %v4968_v30 = vmul.u32.u64.low %v594_v13, %v593_v7  ;;  %v4969_v5 = vmul.u32.u64.high %v594_v13, %v593_v7, %v4968_v30  ;;  %v1411_v2 = vsel %vm1405_vm4, %v4934_v49, 920167782  ;;  %v1415_v32 = vsel %vm1405_vm4, %v1401_v31, 1326507024 }
 0x14a   : > { %v4976_v27 = vmul.u32.u64.low %v594_v13, %v589_v59  ;;  %v4977_v48 = vmul.u32.u64.high %v594_v13, %v589_v59, %v4976_v27  ;;  %v1377_v12 = vand.u32 8388607, %v6930_v52  ;;  %v1387_v16 = vshll.u32 %v7039_v35, %v4784_v34 }
 0x14b   : > { %v7040_v8 = vmov 2475754826   ;;  %v1391_v63 = vshrl.u32 %v6931_v36, %v4839_v29  ;;  %v1393_v28 = vshll.u32 %v6931_v36, %v4784_v34  ;;  %v1394_v31 = vshrl.u32 %v6996_v43, %v4839_v29 }
 0x14c   : > { %v1388_v61 = vshrl.u32 %v7040_v8, %v4839_v29  ;;  %v1390_v37 = vshll.u32 %v7040_v8, %v4784_v34  ;;  %v601_v53 = vmul.u32 %v594_v13, %v585_v10  ;;  %vm603_vm7 = vc.u32 %v4969_v5, %v4976_v27 }
 0x14d   : > { %v1378_v17 = vor.u32 8388608, %v1377_v12  ;;  %v604_v59 = vadd.s32 1, %v4977_v48  ;;  %v1386_v7 = vshrl.u32 %v7039_v35, %v4839_v29  ;;  %v1395_v52 = vor.u32 %v1394_v31, %v1393_v28 }
 0x14e   : > { %v1389_v45 = vor.u32 %v1388_v61, %v1387_v16  ;;  %v1392_v30 = vor.u32 %v1391_v63, %v1390_v37  ;;  %vm1402_vm11 = vcmp.lt.s32.totalorder %v4928_v14, 1  ;;  %vm1403_vm12 = vcmp.lt.s32.totalorder %v4928_v14, 2 }
 0x14f   : > { %vm1404_vm13 = vcmp.lt.s32.totalorder %v4928_v14, 3  ;;  %v1418_v34 = vshll.u32 %v1378_v17, 8  ;;  %v605_v13 = vsel %vm603_vm7, %v604_v59, %v4977_v48  ;;  %v1407_v10 = vsel %vm1405_vm4, %v1395_v52, 2102212464 }
 0x150   : > { %v1410_v12 = vsel %vm1402_vm11, %v1389_v45, %v1392_v30  ;;  %v1412_v16 = vsel %vm1404_vm13, %v1395_v52, %v1411_v2  ;;  %v606_v61 = vadd.s32 %v605_v13, %v601_v53  ;;  %v1406_v36 = vsel %vm1402_vm11, %v1386_v7, %v1389_v45 }
 0x151   : > { %v1413_v29 = vsel %vm1403_vm12, %v1410_v12, %v1412_v16  ;;  %v1414_v37 = vsel %vm1402_vm11, %v1392_v30, %v1395_v52  ;;  %v1408_v63 = vsel %vm1404_vm13, %v1392_v30, %v1407_v10  ;;  %v1416_v28 = vsel %vm1404_vm13, %v4934_v49, %v1415_v32 }
 0x152   : > { %v5011_v31 = vmul.u32.u64.low %v1418_v34, %v1413_v29  ;;  %v5012_v55 = vmul.u32.u64.high %v1418_v34, %v1413_v29, %v5011_v31  ;;  %v5017_v48 = vor.u32 %v4903_v46, %v4862_v18  ;;  %v1092_v2 = vor.u32 %v4907_v60, %v4866_v40 }
 0x153   : > { %v607_v53 = vadd.s32 536870912, %v606_v61  ;;  %v1417_v17 = vsel %vm1403_vm12, %v1414_v37, %v1416_v28  ;;  %v5026_v52 = vsel %vm6943_vm6, %v4821_v11, 920167782  ;;  %v5029_v49 = vor.u32 %v1191_v21, %v4911_v41 }
 0x154   : > { %v5031_v32 = vmul.u32.u64.low %v1418_v34, %v1417_v17  ;;  %v5032_v45 = vmul.u32.u64.high %v1418_v34, %v1417_v17, %v5031_v32  ;;  %v7042_v18 = vor.u32 %v4554_v1, %v4550_v0  ;;  %vm993_vm14 = vcmp.lt.s32.totalorder %v4831_v51, 4 }
 0x155   : > { %7041 = vst [vmem:[#allocation75_spill] sm:$0xff] %v5029_v49  ;;  %v5042_v40 = vshrl.u32 %v607_v53, 30  ;;  %v1409_v46 = vsel %vm1403_vm12, %v1406_v36, %v1408_v63  ;;  %v999_v41 = vsel %vm993_vm14, %v4926_v54, 920167782  ;;  %v1003_v21 = vsel %vm993_vm14, %v989_v3, 1326507024  ;;  %v5103_v63 = vpop.permute.xlu0 %3138 }
 0x156   : > { %v5039_v60 = vsel %vm6943_vm6, %v7042_v18, 1326507024  ;;  %vm1096_vm15 = vcmp.lt.s32.totalorder %v4833_v42, 4  ;;  %v1428_v0 = vadd.s32 1, %v5012_v55  ;;  %vm6942_vm0 = vcmp.lt.s32.totalorder %v4836_v23, 4  ;;  %7048 = vst [vmem:[#allocation79_spill] sm:$0xff] %v5103_v63 }
 0x157   : > { %v5056_v1 = vsel %vm1096_vm15, %v5017_v48, 920167782  ;;  %v5060_v14 = vsel %vm1096_vm15, %v1092_v2, 1326507024  ;;  %v609_v36 = vshll.u32 %v5042_v40, 30  ;;  %v1425_v59 = vmul.u32 %v1418_v34, %v1409_v46 }
 0x158   : > { %v5067_v3 = vsel %vm6942_vm0, %v5029_v49, 920167782  ;;  %vm1427_vm1 = vc.u32 %v5032_v45, %v5011_v31  ;;  %v6935_v7 = vand.u32 2147483647, %v4527_v47  ;;  %v7044_v30 = vor.u32 %v4597_v26, %v4593_v24 }
 0x159   : > { %7043 = vst [vmem:[#allocation76_spill] sm:$0xff] %v5067_v3  ;;  %v5080_v10 = vshrl.u32 %v4615_v57, 5  ;;  %v5082_v12 = vsub.s32 %v606_v61, %v609_v36  ;;  %v1429_v16 = vsel %vm1427_vm1, %v1428_v0, %v5012_v55  ;;  %v5086_v34 = vshrl.u32 %v4725_v19, 5 }
 0x15a   : > { %v5077_v13 = vsel %vm6942_vm0, %v7044_v30, 1326507024  ;;  %v5092_v29 = vsel %vm6960_vm5, %v4517_v39, %v4515_v38  ;;  %v1430_v24 = vadd.s32 %v1429_v16, %v1425_v59  ;;  %v7047_v26 = vmov 2131351028  }
 0x15b   : > { %7045 = vst [vmem:[#allocation77_spill] sm:$0xff] %v5077_v13  ;;  %7046 = vst [vmem:[#allocation78_spill] sm:$0xff] %v5080_v10  ;;  %v979_v37 = vshrl.u32 %v7047_v26, %v4824_v22  ;;  %v1500_v57 = vshrl.u32 %v6992_v62, %v4775_v4  ;;  %v612_v61 = vsub.s32 0, %v5082_v12  ;;  %v976_v55 = vshrl.u32 %v7040_v8, %v4824_v22 }
 0x15c   : > { %v982_v19 = vshrl.u32 %v6996_v43, %v4824_v22  ;;  %v1431_v28 = vadd.s32 536870912, %v1430_v24  ;;  %v965_v38 = vand.u32 8388607, %v6935_v7  ;;  %v978_v39 = vshll.u32 %v7040_v8, %v4772_v6 }
 0x15d   : > { %v981_v2 = vshll.u32 %v7047_v26, %v4772_v6  ;;  %v1499_v53 = vshll.u32 %v6996_v43, %v4741_v33  ;;  %v5114_v17 = vshrl.u32 %v4786_v58, 5  ;;  %v3566_v32 = vmin.u32 %v612_v61, %v5082_v12 }
 0x15e   : > { %v975_v18 = vshll.u32 %v7039_v35, %v4772_v6  ;;  %v5120_v46 = vshrl.u32 %v4788_v25, 5  ;;  %v5122_v0 = vshrl.u32 %v1431_v28, 30  ;;  %v980_v36 = vor.u32 %v979_v37, %v978_v39  ;;  %v5143_v28 = vpop.permute.xlu0 %3142 }
 0x15f   : > { %v983_v59 = vor.u32 %v982_v19, %v981_v2  ;;  %vm3160_vm2 = vcmp.lt.s32.totalorder %v4281_v9, 127  ;;  %v5125_v30 = vor.u32 %v1500_v57, %v1499_v53  ;;  %v614_v16 = vclz %v3566_v32 }
 0x160   : > { %v977_v7 = vor.u32 %v976_v55, %v975_v18  ;;  %vm992_vm3 = vcmp.lt.s32.totalorder %v4831_v51, 3  ;;  %v5130_v58 = vshll.u32 %v6996_v43, %v4801_v44  ;;  %v1433_v6 = vshll.u32 %v5122_v0, 30  ;;  %v5139_v55 = vpop.permute.xlu1 %3136 }
 0x161   : > { %v966_v25 = vor.u32 8388608, %v965_v38  ;;  %v1004_v37 = vsel %vm992_vm3, %v4926_v54, %v1003_v21  ;;  %vm548_vm4 = vcmp.lt.s32.totalorder %v4478_v50, 0  ;;  %v3567_v61 = vadd.s32 4294967294, %v614_v16 }
 0x162   : > { %v632_v57 = vsub.s32 4, %v5042_v40  ;;  %vm990_vm7 = vcmp.lt.s32.totalorder %v4831_v51, 1  ;;  %v602_v19 = vadd.s32 %v4976_v27, %v4969_v5  ;;  %v5145_v39 = vsub.s32 %v1430_v24, %v1433_v6 }
 0x163   : > { %vm991_vm11 = vcmp.lt.s32.totalorder %v4831_v51, 2  ;;  %v1002_v54 = vsel %vm990_vm7, %v980_v36, %v983_v59  ;;  %vm3568_vm12 = vcmp.lt.s32.totalorder %v3567_v61, 0  ;;  %v998_v21 = vsel %vm990_vm7, %v977_v7, %v980_v36 }
 0x164   : > { %v1000_v38 = vsel %vm992_vm3, %v983_v59, %v999_v41  ;;  %v1005_v2 = vsel %vm991_vm11, %v1002_v54, %v1004_v37  ;;  %v617_v5 = vsel %vm3568_vm12, 0, %v3567_v61  ;;  %v1436_v27 = vsub.s32 0, %v5145_v39 }
 0x165   : > { %v974_v24 = vshrl.u32 %v7039_v35, %v4824_v22  ;;  %v1006_v53 = vshll.u32 %v966_v25, 8  ;;  %v618_v32 = vsub.s32 32, %v617_v5  ;;  %v622_v18 = vsub.s32 4294967266, %v617_v5  ;;  %v7064_v25 = vld [vmem:[#allocation33_spill] sm:$0xff] }
 0x166   : > { %v633_v16 = vsel %vm548_vm4, %v632_v57, %v5042_v40  ;;  %v995_v6 = vsel %vm993_vm14, %v983_v59, 2102212464  ;;  %v3598_v41 = vmin.u32 %v1436_v27, %v5145_v39  ;;  %v1001_v37 = vsel %vm991_vm11, %v998_v21, %v1000_v38  ;;  %v5179_v27 = vpop.permute.xlu1 %3140  ;;  %v5181_v21 = vpop.permute.xlu0 %3146 }
 0x167   : > { %v5167_v61 = vmul.u32.u64.low %v1006_v53, %v1005_v2  ;;  %v5168_v54 = vmul.u32.u64.high %v1006_v53, %v1005_v2, %v5167_v61  ;;  %v7049_v22 = vand.u32 2147483647, %v4478_v50  ;;  %v619_v49 = vshll.u32 %v5082_v12, %v617_v5  ;;  %7052 = vst [vmem:[#allocation80_spill] sm:$0xff] %v5179_v27  ;;  %7053 = vst [vmem:[#allocation81_spill] sm:$0xff] %v5181_v21 }
 0x168   : > { %v620_v40 = vshrl.u32 %v602_v19, %v618_v32  ;;  %v623_v57 = vadd.s32 127, %v622_v18  ;;  %v1438_v13 = vclz %v3598_v41  ;;  %v994_v38 = vsel %vm990_vm7, %v974_v24, %v977_v7  ;;  %v7054_v19 = vld [vmem:[#allocation48_spill] sm:$0xff] }
 0x169   : > { %vm5172_vm13 = vcmp.le.f32.partialorder %v7049_v22, 0.7853982  ;;  %v996_v2 = vsel %vm992_vm3, %v980_v36, %v995_v6  ;;  %v5187_v3 = vmul.u32.u64.low %v1006_v53, %v1001_v37  ;;  %v5188_v12 = vmul.u32.u64.high %v1006_v53, %v1001_v37, %v5187_v3  ;;  %v7055_v37 = vld [vmem:[#allocation24_spill] sm:$0xff] }
 0x16a   : > { %v635_v59 = vsel %vm5172_vm13, 0, %v633_v16  ;;  %v621_v61 = vor.u32 %v620_v40, %v619_v49  ;;  %v624_v22 = vshll.u32 %v623_v57, 23  ;;  %v5195_v5 = vsel %vm6960_vm5, %v7054_v19, %v4574_v15  ;;  %v7056_v57 = vld [vmem:[#allocation29_spill] sm:$0xff] }
 0x16b   : > { %v5201_v7 = vsel %vm3160_vm2, %v5139_v55, %v5143_v28  ;;  %vm1372_vm14 = vcmp.lt.s32.totalorder %v4639_v20, 0  ;;  %v3599_v49 = vadd.s32 4294967294, %v1438_v13  ;;  %v1875_v24 = vadd.s32 3, %v635_v59 }
 0x16c   : > { %v625_v36 = vor.u32 4788187, %v624_v22  ;;  %v5208_v32 = vsel %vm3160_vm2, %v5179_v27, %v5181_v21  ;;  %v997_v15 = vsel %vm991_vm11, %v994_v38, %v996_v2  ;;  %v628_v18 = vcvt.s32.f32 %v621_v61 }
 0x16d   : > { %vm3600_vm1 = vcmp.lt.s32.totalorder %v3599_v49, 0  ;;  %v1456_v16 = vsub.s32 4, %v5122_v0  ;;  %vm1015_vm3 = vc.u32 %v5168_v54, %v5187_v3  ;;  %v1016_v41 = vadd.s32 1, %v5188_v12 }
 0x16e   : > { %v626_v6 = vand.u32 2147483647, %v625_v36  ;;  %v1441_v13 = vsel %vm3600_vm1, 0, %v3599_v49  ;;  %vm5219_vm7 = vcmp.eq.f32.partialorder %v5092_v29, %v7056_v57  ;;  %v7057_v22 = vmov 0 }
 0x16f   : > { %v7058_v22 = vsel %vm5219_vm7, 4294967295, %v7057_v22  ;;  %v1426_v51 = vadd.s32 %v5011_v31, %v5032_v45  ;;  %v1442_v38 = vsub.s32 32, %v1441_v13  ;;  %v1446_v2 = vsub.s32 4294967266, %v1441_v13 }
 0x170   : > { %7059 = vst [vmem:[#allocation48_spill] sm:$0xff] %v7058_v22  ;;  %v1013_v61 = vmul.u32 %v1006_v53, %v997_v15  ;;  %v629_v19 = vmul.f32 %v628_v18, %v626_v6  ;;  %v5225_v27 = vand.u32 3, %v635_v59  ;;  %v5227_v49 = vand.u32 3, %v1875_v24  ;;  %v7061_v15 = vld [vmem:[#allocation64_spill] sm:$0xff] }
 0x171   : > { %v1017_v36 = vsel %vm1015_vm3, %v1016_v41, %v5188_v12  ;;  %v1443_v40 = vshll.u32 %v5145_v39, %v1441_v13  ;;  %v1444_v23 = vshrl.u32 %v1426_v51, %v1442_v38  ;;  %v1447_v29 = vadd.s32 127, %v1446_v2  ;;  %v7062_v13 = vld [vmem:[#allocation56_spill] sm:$0xff] }
 0x172   : > { %v1018_v57 = vadd.s32 %v1017_v36, %v1013_v61  ;;  %v630_v10 = vxor.u32 2147483648, %v629_v19  ;;  %v1457_v31 = vsel %vm1372_vm14, %v1456_v16, %v5122_v0  ;;  %v7060_v45 = vand.u32 2147483647, %v7055_v37 }
 0x173   : > { %v1079_v59 = vshrl.u32 %v7040_v8, %v7061_v15  ;;  %v1445_v24 = vor.u32 %v1444_v23, %v1443_v40  ;;  %v1448_v18 = vshll.u32 %v1447_v29, 23  ;;  %v1082_v39 = vshrl.u32 %v7047_v26, %v7061_v15 }
 0x174   : > { %v1068_v53 = vand.u32 8388607, %v7060_v45  ;;  %v1019_v6 = vadd.s32 536870912, %v1018_v57  ;;  %v631_v12 = vsel %vm548_vm4, %v630_v10, %v629_v19  ;;  %v1078_v41 = vshll.u32 %v7039_v35, %v7062_v13  ;;  %v7063_v45 = vld [vmem:[#allocation62_spill] sm:$0xff] }
 0x175   : > { %v1081_v0 = vshll.u32 %v7040_v8, %v7062_v13  ;;  %v1085_v16 = vshrl.u32 %v6996_v43, %v7061_v15  ;;  %v634_v23 = vsel %vm5172_vm13, %v4478_v50, %v631_v12  ;;  %v1449_v40 = vor.u32 4788187, %v1448_v18  ;;  %v7065_v18 = vld [vmem:[#allocation67_spill] sm:$0xff] }
 0x176   : > { %v5251_v51 = vshrl.u32 %v1019_v6, 30  ;;  %v1084_v38 = vshll.u32 %v7047_v26, %v7062_v13  ;;  %3813 = vcosq.f32 %v634_v23  ;;  %v1452_v10 = vcvt.s32.f32 %v1445_v24 }
 0x177   : > { %v1080_v2 = vor.u32 %v1079_v59, %v1078_v41  ;;  %v1083_v61 = vor.u32 %v1082_v39, %v1081_v0  ;;  %3815 = vsinq.f32 %v634_v23  ;;  %v1450_v19 = vand.u32 2147483647, %v1449_v40 }
 0x178   : > { %v1021_v36 = vshll.u32 %v5251_v51, 30  ;;  %v1086_v29 = vor.u32 %v1085_v16, %v1084_v38  ;;  %v5258_v21 = vshrl.u32 %v6992_v62, %v7063_v45  ;;  %v5264_v6 = vsel %vm6960_vm5, %v7065_v18, %v7064_v25 }
 0x179   : > { %v3173_v59 = vsel %vm5219_vm7, %v5195_v5, %v5201_v7  ;;  %v7066_v24 = vand.u32 2147483647, %v4639_v20  ;;  %v1453_v12 = vmul.f32 %v1452_v10, %v1450_v19  ;;  %v1069_v0 = vor.u32 8388608, %v1068_v53 }
 0x17a   : > { %v5278_v41 = vsub.s32 %v1018_v57, %v1021_v36  ;;  %vm644_vm11 = vcmp.eq.s32.totalorder %v5225_v27, 2  ;;  %v3181_v16 = vsel %vm5219_vm7, %v5264_v6, %v5208_v32  ;;  %vm1093_vm12 = vcmp.lt.s32.totalorder %v4833_v42, 1 }
 0x17b   : > { %vm5272_vm4 = vcmp.le.f32.partialorder %v7066_v24, 0.7853982  ;;  %vm1095_vm13 = vcmp.lt.s32.totalorder %v4833_v42, 3  ;;  %vm641_vm1 = vcmp.eq.s32.totalorder %v5225_v27, 0  ;;  %vm1878_vm3 = vcmp.eq.s32.totalorder %v5227_v49, 0 }
 0x17c   : > { %v1459_v13 = vsel %vm5272_vm4, 0, %v1457_v31  ;;  %v1454_v23 = vxor.u32 2147483648, %v1453_v12  ;;  %v1024_v57 = vsub.s32 0, %v5278_v41  ;;  %v1101_v31 = vsel %vm1093_vm12, %v1080_v2, %v1083_v61 }
 0x17d   : > { %v1103_v53 = vsel %vm1095_vm13, %v1086_v29, %v5056_v1  ;;  %vm640_vm0 = vcmp.lt.s32.totalorder %v5225_v27, 2  ;;  %vm1877_vm6 = vcmp.lt.s32.totalorder %v5227_v49, 2  ;;  %v2707_v40 = vadd.s32 3, %v1459_v13 }
 0x17e   : > { %vm1094_vm10 = vcmp.lt.s32.totalorder %v4833_v42, 2  ;;  %v1105_v38 = vsel %vm1093_vm12, %v1083_v61, %v1086_v29  ;;  %v1107_v10 = vsel %vm1095_vm13, %v5017_v48, %v5060_v14  ;;  %vm638_vm9 = vweird.f32 %v4478_v50 }
 0x17f   : > { %v1455_v1 = vsel %vm1372_vm14, %v1454_v23, %v1453_v12  ;;  %v3582_v19 = vmin.u32 %v1024_v57, %v5278_v41  ;;  %v1098_v36 = vsel %vm1096_vm15, %v1086_v29, 2102212464  ;;  %v1109_v25 = vshll.u32 %v1069_v0, 8 }
 0x180   : > { %v1458_v18 = vsel %vm5272_vm4, %v4639_v20, %v1455_v1  ;;  %v1077_v24 = vshrl.u32 %v7039_v35, %v7061_v15  ;;  %v1104_v48 = vsel %vm1094_vm10, %v1101_v31, %v1103_v53  ;;  %v1108_v14 = vsel %vm1094_vm10, %v1105_v38, %v1107_v10  ;;  %v3814_v29 = vpop.eup %3813 }
 0x181   : > { %3817 = vcosq.f32 %v1458_v18  ;;  %v1026_v12 = vclz %v3582_v19  ;;  %v5319_v23 = vmul.u32.u64.low %v1109_v25, %v1108_v14  ;;  %v5320_v57 = vmul.u32.u64.high %v1109_v25, %v1108_v14, %v5319_v23  ;;  %v3816_v31 = vpop.eup %3815 }
 0x182   : > { %3819 = vsinq.f32 %v1458_v18  ;;  %v5322_v0 = vand.u32 3, %v1459_v13  ;;  %vm960_vm15 = vcmp.lt.s32.totalorder %v4527_v47, 0  ;;  %v1097_v15 = vsel %vm1093_vm12, %v1077_v24, %v1080_v2 }
 0x183   : > { %v1099_v39 = vsel %vm1095_vm13, %v1083_v61, %v1098_v36  ;;  %v645_v53 = vxor.u32 2147483648, %v3814_v29  ;;  %v3583_v38 = vadd.s32 4294967294, %v1026_v12  ;;  %v642_v19 = vxor.u32 2147483648, %v3816_v31 }
 0x184   : > { %v5329_v10 = vmul.u32.u64.low %v1109_v25, %v1104_v48  ;;  %v5330_v1 = vmul.u32.u64.high %v1109_v25, %v1104_v48, %v5329_v10  ;;  %vm1881_vm14 = vcmp.eq.s32.totalorder %v5227_v49, 2  ;;  %v2708_v13 = vand.u32 3, %v2707_v40 }
 0x185   : > { %v1014_v18 = vadd.s32 %v5187_v3, %v5168_v54  ;;  %v646_v2 = vsel %vm644_vm11, %v645_v53, %v3816_v31  ;;  %v1883_v24 = vsel %vm1881_vm14, %v645_v53, %v3816_v31  ;;  %v7069_v61 = vand.u32 2147483647, %v4527_v47 }
 0x186   : > { %vm3584_vm12 = vcmp.lt.s32.totalorder %v3583_v38, 0  ;;  %v1044_v48 = vsub.s32 4, %v5251_v51  ;;  %v643_v40 = vsel %vm641_vm1, %v3814_v29, %v642_v19  ;;  %v1880_v3 = vsel %vm1878_vm3, %v3814_v29, %v642_v19  ;;  %v3861_v29 = vld [vmem:[%s4255_s10] sm:$0xff] }
 0x187   : > { %vm5340_vm4 = vcmp.le.f32.partialorder %v7069_v61, 0.7853982  ;;  %v1029_v54 = vsel %vm3584_vm12, 0, %v3583_v38  ;;  %v1100_v14 = vsel %vm1094_vm10, %v1097_v15, %v1099_v39  ;;  %v647_v12 = vsel %vm640_vm0, %v643_v40, %v646_v2 }
 0x188   : > { %v1884_v23 = vsel %vm1877_vm6, %v1880_v3, %v1883_v24  ;;  %vm1464_vm11 = vcmp.lt.s32.totalorder %v5322_v0, 2  ;;  %v1030_v31 = vsub.s32 32, %v1029_v54  ;;  %vm1118_vm13 = vc.u32 %v5320_v57, %v5329_v10 }
 0x189   : > { %v5360_v53 = vsel %vm638_vm9, nan, %v647_v12  ;;  %v5364_v42 = vsel %vm638_vm9, nan, %v1884_v23  ;;  %vm1462_vm10 = vweird.f32 %v4639_v20  ;;  %v1034_v27 = vsub.s32 4294967266, %v1029_v54  ;;  %v5387_v12 = vpop.permute.xlu1 %3144 }
 0x18a   : > { %7072 = vst [vmem:[#allocation24_spill] sm:$0xff] %v5360_v53  ;;  %7073 = vst [vmem:[#allocation29_spill] sm:$0xff] %v5364_v42  ;;  %v1119_v49 = vadd.s32 1, %v5330_v1  ;;  %v3088_v15 = vmul.f32 %v3861_v29, %v5360_v53  ;;  %v3185_v39 = vmul.f32 %v3173_v59, %v5364_v42  ;;  %v1032_v38 = vshrl.u32 %v1014_v18, %v1030_v31 }
 0x18b   : > { %v1116_v50 = vmul.u32 %v1109_v25, %v1100_v14  ;;  %vm1465_vm9 = vcmp.eq.s32.totalorder %v5322_v0, 0  ;;  %v1031_v19 = vshll.u32 %v5278_v41, %v1029_v54  ;;  %v1035_v2 = vadd.s32 127, %v1034_v27  ;;  %v3818_v61 = vpop.eup %3817 }
 0x18c   : > { %v1120_v24 = vsel %vm1118_vm13, %v1119_v49, %v5330_v1  ;;  %v3197_v40 = vadd.f32 %v3185_v39, %v3088_v15  ;;  %vm1468_vm6 = vcmp.eq.s32.totalorder %v5322_v0, 2  ;;  %v1045_v3 = vsel %vm960_vm15, %v1044_v48, %v5251_v51  ;;  %v3820_v7 = vpop.eup %3819  ;;  %v7074_v49 = vld [vmem:[#allocation14_spill] sm:$0xff] }
 0x18d   : > { %v1121_v5 = vadd.s32 %v1120_v24, %v1116_v50  ;;  %v1469_v59 = vxor.u32 2147483648, %v3818_v61  ;;  %vm2709_vm0 = vcmp.lt.s32.totalorder %v2708_v13, 2  ;;  %v1033_v25 = vor.u32 %v1032_v38, %v1031_v19 }
 0x18e   : > { %v1036_v18 = vshll.u32 %v1035_v2, 23  ;;  %3209 = vst [vmem:[%s5384_s15] sm:$0xff] %v3197_v40  ;;  %v1466_v41 = vxor.u32 2147483648, %v3820_v7  ;;  %vm2710_vm1 = vcmp.eq.s32.totalorder %v2708_v13, 0  ;;  %vm2713_vm3 = vcmp.eq.s32.totalorder %v2708_v13, 2  ;;  %v3862_v13 = vld [vmem:[%s4255_s10 + $0x40] sm:$0xff] }
 0x18f   : > { %v1122_v1 = vadd.s32 536870912, %v1121_v5  ;;  %v1470_v54 = vsel %vm1468_vm6, %v1469_v59, %v3820_v7  ;;  %v2715_v14 = vsel %vm2713_vm3, %v1469_v59, %v3820_v7  ;;  %v1047_v48 = vsel %vm5340_vm4, 0, %v1045_v3 }
 0x190   : > { %v1037_v51 = vor.u32 4788187, %v1036_v18  ;;  %v1467_v23 = vsel %vm1465_vm9, %v3818_v61, %v1466_v41  ;;  %v2712_v31 = vsel %vm2710_vm1, %v3818_v61, %v1466_v41  ;;  %v6946_v29 = vand.u32 2147483647, %v7074_v49 }
 0x191   : > { %v5393_v27 = vshrl.u32 %v1122_v1, 30  ;;  %v1471_v15 = vsel %vm1464_vm11, %v1467_v23, %v1470_v54  ;;  %v2716_v39 = vsel %vm2709_vm0, %v2712_v31, %v2715_v14  ;;  %v1040_v50 = vcvt.s32.f32 %v1033_v25  ;;  %v7077_v25 = vld [vmem:[#allocation21_spill] sm:$0xff]  ;;  %v7078_v14 = vld [vmem:[#allocation19_spill] sm:$0xff] }
 0x192   : > { %v1038_v38 = vand.u32 2147483647, %v1037_v51  ;;  %v5401_v19 = vsel %vm1462_vm10, nan, %v1471_v15  ;;  %v5405_v2 = vsel %vm1462_vm10, nan, %v2716_v39  ;;  %v5411_v24 = vsel %vm3160_vm2, %v5103_v63, %v5387_v12 }
 0x193   : > { %7075 = vst [vmem:[#allocation64_spill] sm:$0xff] %v5401_v19  ;;  %7076 = vst [vmem:[#allocation56_spill] sm:$0xff] %v5405_v2  ;;  %v1124_v0 = vshll.u32 %v5393_v27, 30  ;;  %v3096_v61 = vmul.f32 %v3862_v13, %v5401_v19  ;;  %v3193_v20 = vmul.f32 %v3181_v16, %v5405_v2  ;;  %v2291_v3 = vadd.s32 3, %v1047_v48  ;;  %v7079_v16 = vld [vmem:[#allocation26_spill] sm:$0xff] }
 0x194   : > { %v1041_v40 = vmul.f32 %v1040_v50, %v1038_v38  ;;  %v656_v59 = vand.u32 8388607, %v6946_v29  ;;  %v667_v18 = vshrl.u32 %v7040_v8, %v7077_v25  ;;  %v670_v41 = vshrl.u32 %v7047_v26, %v7077_v25 }
 0x195   : > { %v5422_v7 = vsub.s32 %v1121_v5, %v1124_v0  ;;  %v3205_v1 = vadd.f32 %v3193_v20, %v3096_v61  ;;  %v672_v32 = vshll.u32 %v7047_v26, %v7078_v14  ;;  %v673_v6 = vshrl.u32 %v6996_v43, %v7077_v25  ;;  %v7080_v5 = vld [vmem:[#allocation69_spill] sm:$0xff] }
 0x196   : > { %v1042_v54 = vxor.u32 2147483648, %v1041_v40  ;;  %v5438_v51 = vsel %vm6960_vm5, %v7080_v5, %v7079_v16  ;;  %v666_v31 = vshll.u32 %v7039_v35, %v7078_v14  ;;  %v669_v15 = vshll.u32 %v7040_v8, %v7078_v14  ;;  %v7086_v5 = vld [vmem:[#allocation54_spill] sm:$0xff] }
 0x197   : > { %v1127_v23 = vsub.s32 0, %v5422_v7  ;;  %3217 = vst [vmem:[%s5384_s15 + $0x40] sm:$0xff] %v3205_v1  ;;  %vm1063_vm14 = vcmp.lt.s32.totalorder %v7055_v37, 0  ;;  %v674_v50 = vor.u32 %v673_v6, %v672_v32  ;;  %v5457_v1 = vand.u32 3, %v1047_v48  ;;  %v7084_v6 = vld [vmem:[#allocation32_spill] sm:$0xff] }
 0x198   : > { %v1043_v39 = vsel %vm960_vm15, %v1042_v54, %v1041_v40  ;;  %v668_v61 = vor.u32 %v667_v18, %v666_v31  ;;  %v671_v20 = vor.u32 %v670_v41, %v669_v15  ;;  %v5459_v40 = vand.u32 3, %v2291_v3  ;;  %v7087_v15 = vld [vmem:[#allocation55_spill] sm:$0xff] }
 0x199   : > { %v1046_v0 = vsel %vm5340_vm4, %v4527_v47, %v1043_v39  ;;  %v3586_v13 = vmin.u32 %v1127_v23, %v5422_v7  ;;  %v657_v54 = vor.u32 8388608, %v656_v59  ;;  %v7081_v14 = vand.u32 2147483647, %v7055_v37  ;;  %v7088_v39 = vld [vmem:[#allocation45_spill] sm:$0xff] }
 0x19a   : > { %3821 = vcosq.f32 %v1046_v0  ;;  %v665_v36 = vshrl.u32 %v7039_v35, %v7077_v25  ;;  %vm7085_vm4 = vcmp.lt.s32.totalorder %v7084_v6, 4  ;;  %v1147_v48 = vsub.s32 4, %v5393_v27 }
 0x19b   : > { %3823 = vsinq.f32 %v1046_v0  ;;  %vm5463_vm15 = vcmp.le.f32.partialorder %v7081_v14, 0.7853982  ;;  %v1129_v32 = vclz %v3586_v13  ;;  %v686_v18 = vsel %vm7085_vm4, %v674_v50, 2102212464 }
 0x19c   : > { %vm681_vm12 = vcmp.lt.s32.totalorder %v7084_v6, 1  ;;  %vm682_vm11 = vcmp.lt.s32.totalorder %v7084_v6, 2  ;;  %vm683_vm13 = vcmp.lt.s32.totalorder %v7084_v6, 3  ;;  %vm1056_vm10 = vcmp.eq.s32.totalorder %v5457_v1, 2 }
 0x19d   : > { %v3587_v3 = vadd.s32 4294967294, %v1129_v32  ;;  %v685_v59 = vsel %vm681_vm12, %v665_v36, %v668_v61  ;;  %v689_v41 = vsel %vm681_vm12, %v668_v61, %v671_v20  ;;  %v691_v23 = vsel %vm683_vm13, %v674_v50, %v7086_v5 }
 0x19e   : > { %v687_v31 = vsel %vm683_vm13, %v671_v20, %v686_v18  ;;  %v693_v25 = vsel %vm681_vm12, %v671_v20, %v674_v50  ;;  %v695_v0 = vsel %vm683_vm13, %v7088_v39, %v7087_v15  ;;  %v697_v13 = vshll.u32 %v657_v54, 8  ;;  %v5489_v54 = vpop.permute.xlu0 %3150 }
 0x19f   : > { %vm1053_vm9 = vcmp.eq.s32.totalorder %v5457_v1, 0  ;;  %vm2294_vm6 = vcmp.eq.s32.totalorder %v5459_v40, 0  ;;  %vm3588_vm0 = vcmp.lt.s32.totalorder %v3587_v3, 0  ;;  %v692_v14 = vsel %vm682_vm11, %v689_v41, %v691_v23  ;;  %7089 = vst [vmem:[#allocation62_spill] sm:$0xff] %v5489_v54 }
 0x1a0   : > { %v696_v61 = vsel %vm682_vm11, %v693_v25, %v695_v0  ;;  %vm1052_vm1 = vcmp.lt.s32.totalorder %v5457_v1, 2  ;;  %vm2293_vm3 = vcmp.lt.s32.totalorder %v5459_v40, 2  ;;  %v1117_v50 = vadd.s32 %v5329_v10, %v5320_v57 }
 0x1a1   : > { %v1132_v20 = vsel %vm3588_vm0, 0, %v3587_v3  ;;  %v5491_v32 = vmul.u32.u64.low %v697_v13, %v696_v61  ;;  %v5492_v36 = vmul.u32.u64.high %v697_v13, %v696_v61, %v5491_v32  ;;  %vm1050_vm4 = vweird.f32 %v4527_v47  ;;  %v7090_v3 = vld [vmem:[#allocation15_spill] sm:$0xff] }
 0x1a2   : > { %v1133_v18 = vsub.s32 32, %v1132_v20  ;;  %v1137_v41 = vsub.s32 4294967266, %v1132_v20  ;;  %v1148_v5 = vsel %vm1063_vm14, %v1147_v48, %v5393_v27  ;;  %v688_v23 = vsel %vm682_vm11, %v685_v59, %v687_v31 }
 0x1a3   : > { %vm2297_vm12 = vcmp.eq.s32.totalorder %v5459_v40, 2  ;;  %v5501_v57 = vmul.u32.u64.low %v697_v13, %v692_v14  ;;  %v5502_v10 = vmul.u32.u64.high %v697_v13, %v692_v14, %v5501_v57  ;;  %v6947_v25 = vand.u32 2147483647, %v7090_v3 }
 0x1a4   : > { %v1134_v15 = vshll.u32 %v5422_v7, %v1132_v20  ;;  %v1135_v39 = vshrl.u32 %v1117_v50, %v1133_v18  ;;  %v1138_v0 = vadd.s32 127, %v1137_v41  ;;  %v5510_v61 = vsel %vm3160_vm2, %v5387_v12, %v5489_v54  ;;  %v3822_v27 = vpop.eup %3821  ;;  %v7091_v20 = vld [vmem:[#allocation20_spill] sm:$0xff] }
 0x1a5   : > { %v1150_v6 = vsel %vm5463_vm15, 0, %v1148_v5  ;;  %v704_v48 = vmul.u32 %v697_v13, %v688_v23  ;;  %v5515_v59 = vadd.s32 %v5501_v57, %v5492_v36  ;;  %vm706_vm11 = vc.u32 %v5492_v36, %v5501_v57  ;;  %v3824_v31 = vpop.eup %3823  ;;  %v7092_v5 = vld [vmem:[#allocation23_spill] sm:$0xff]  ;;  %v3863_v57 = vld [vmem:[%s4255_s10 + $0x20] sm:$0xff] }
 0x1a6   : > { %v1057_v7 = vxor.u32 2147483648, %v3822_v27  ;;  %v1136_v14 = vor.u32 %v1135_v39, %v1134_v15  ;;  %v1139_v50 = vshll.u32 %v1138_v0, 23  ;;  %v769_v32 = vshll.u32 %v7039_v35, %v7091_v20 }
 0x1a7   : > { %v1054_v18 = vxor.u32 2147483648, %v3824_v31  ;;  %v707_v12 = vadd.s32 1, %v5502_v10  ;;  %v759_v41 = vand.u32 8388607, %v6947_v25  ;;  %v770_v13 = vshrl.u32 %v7040_v8, %v7092_v5 }
 0x1a8   : > { %v1058_v23 = vsel %vm1056_vm10, %v1057_v7, %v3824_v31  ;;  %v2299_v15 = vsel %vm2297_vm12, %v1057_v7, %v3824_v31  ;;  %v1140_v39 = vor.u32 4788187, %v1139_v50  ;;  %v772_v0 = vshll.u32 %v7040_v8, %v7091_v20 }
 0x1a9   : > { %v1055_v29 = vsel %vm1053_vm9, %v3822_v27, %v1054_v18  ;;  %v2296_v25 = vsel %vm2294_vm6, %v3822_v27, %v1054_v18  ;;  %v1143_v38 = vcvt.s32.f32 %v1136_v14  ;;  %v708_v63 = vsel %vm706_vm11, %v707_v12, %v5502_v10 }
 0x1aa   : > { %v1059_v2 = vsel %vm1052_vm1, %v1055_v29, %v1058_v23  ;;  %v2300_v31 = vsel %vm2293_vm3, %v2296_v25, %v2299_v15  ;;  %v1141_v7 = vand.u32 2147483647, %v1140_v39  ;;  %v709_v50 = vadd.s32 %v708_v63, %v704_v48  ;;  %v7098_v23 = vld [vmem:[#allocation53_spill] sm:$0xff] }
 0x1ab   : > { %v5544_v19 = vsel %vm1050_vm4, nan, %v1059_v2  ;;  %v5548_v27 = vsel %vm1050_vm4, nan, %v2300_v31  ;;  %v771_v14 = vor.u32 %v770_v13, %v769_v32  ;;  %v773_v36 = vshrl.u32 %v7047_v26, %v7092_v5  ;;  %v7096_v13 = vld [vmem:[#allocation34_spill] sm:$0xff] }
 0x1ac   : > { %7093 = vst [vmem:[#allocation33_spill] sm:$0xff] %v5544_v19  ;;  %7094 = vst [vmem:[#allocation67_spill] sm:$0xff] %v5548_v27  ;;  %v3092_v29 = vmul.f32 %v3863_v57, %v5544_v19  ;;  %v7095_v63 = vsel %vm5219_vm7, %v5438_v51, %v5411_v24  ;;  %v1144_v2 = vmul.f32 %v1143_v38, %v1141_v7  ;;  %v710_v40 = vadd.s32 536870912, %v709_v50  ;;  %v7097_v38 = vld [vmem:[#allocation60_spill] sm:$0xff] }
 0x1ad   : > { %v3189_v1 = vmul.f32 %v7095_v63, %v5548_v27  ;;  %vm1508_vm13 = vcmp.lt.s32.totalorder %v5086_v34, 4  ;;  %v2395_v47 = vadd.s32 3, %v1150_v6  ;;  %v774_v10 = vor.u32 %v773_v36, %v772_v0  ;;  %v7100_v36 = vld [vmem:[#allocation59_spill] sm:$0xff] }
 0x1ae   : > { %v775_v25 = vshll.u32 %v7047_v26, %v7091_v20  ;;  %v776_v48 = vshrl.u32 %v6996_v43, %v7092_v5  ;;  %v1145_v18 = vxor.u32 2147483648, %v1144_v2  ;;  %v5565_v12 = vshrl.u32 %v710_v40, 30 }
 0x1af   : > { %v3201_v32 = vadd.f32 %v3189_v1, %v3092_v29  ;;  %vm786_vm10 = vcmp.lt.s32.totalorder %v7096_v13, 3  ;;  %v760_v24 = vor.u32 8388608, %v759_v41  ;;  %vm784_vm9 = vcmp.lt.s32.totalorder %v7096_v13, 1 }
 0x1b0   : > { %v777_v51 = vor.u32 %v776_v48, %v775_v25  ;;  %v798_v15 = vsel %vm786_vm10, %v7098_v23, %v7097_v38  ;;  %v1146_v20 = vsel %vm1063_vm14, %v1145_v18, %v1144_v2  ;;  %v5576_v39 = vand.u32 3, %v1150_v6  ;;  %v7102_v38 = vld [vmem:[#allocation57_spill] sm:$0xff] }
 0x1b1   : > { %3213 = vst [vmem:[%s5384_s15 + $0x20] sm:$0xff] %v3201_v32  ;;  %v712_v0 = vshll.u32 %v5565_v12, 30  ;;  %v792_v31 = vsel %vm784_vm9, %v771_v14, %v774_v10  ;;  %v1149_v41 = vsel %vm5463_vm15, %v7055_v37, %v1146_v20  ;;  %vm7099_vm6 = vcmp.lt.s32.totalorder %v7096_v13, 4  ;;  %v7104_v23 = vld [vmem:[#allocation61_spill] sm:$0xff] }
 0x1b2   : > { %v789_v7 = vsel %vm7099_vm6, %v777_v51, 2102212464  ;;  %v794_v57 = vsel %vm786_vm10, %v777_v51, %v7100_v36  ;;  %v796_v6 = vsel %vm784_vm9, %v774_v10, %v777_v51  ;;  %3825 = vcosq.f32 %v1149_v41  ;;  %v7101_v51 = vld [vmem:[#allocation58_spill] sm:$0xff] }
 0x1b3   : > { %v5591_v29 = vsub.s32 %v709_v50, %v712_v0  ;;  %v768_v63 = vshrl.u32 %v7039_v35, %v7092_v5  ;;  %vm785_vm14 = vcmp.lt.s32.totalorder %v7096_v13, 2  ;;  %3827 = vsinq.f32 %v1149_v41 }
 0x1b4   : > { %v2396_v16 = vand.u32 3, %v2395_v47  ;;  %v795_v1 = vsel %vm785_vm14, %v792_v31, %v794_v57  ;;  %v800_v2 = vshll.u32 %v760_v24, 8  ;;  %v790_v50 = vsel %vm786_vm10, %v774_v10, %v789_v7  ;;  %v7105_v31 = vld [vmem:[#allocation68_spill] sm:$0xff]  ;;  %v7106_v7 = vld [vmem:[#allocation49_spill] sm:$0xff] }
 0x1b5   : > { %v715_v40 = vsub.s32 0, %v5591_v29  ;;  %v788_v25 = vsel %vm784_vm9, %v768_v63, %v771_v14  ;;  %v799_v48 = vsel %vm785_vm14, %v796_v6, %v798_v15  ;;  %v5614_v24 = vsel %vm1508_vm13, %v5125_v30, 920167782  ;;  %v7108_v6 = vld [vmem:[#allocation16_spill] sm:$0xff] }
 0x1b6   : > { %v5605_v5 = vmul.u32.u64.low %v800_v2, %v799_v48  ;;  %v5606_v32 = vmul.u32.u64.high %v800_v2, %v799_v48, %v5605_v5  ;;  %v5608_v18 = vmul.u32.u64.low %v800_v2, %v795_v1  ;;  %v5609_v47 = vmul.u32.u64.high %v800_v2, %v795_v1, %v5608_v18 }
 0x1b7   : > { %v7103_v14 = vor.u32 %v7101_v51, %v7102_v38  ;;  %v5625_v15 = vshll.u32 %v6996_v43, %v7104_v23  ;;  %v3570_v20 = vmin.u32 %v715_v40, %v5591_v29  ;;  %v5630_v0 = vor.u32 %v5258_v21, %v5130_v58 }
 0x1b8   : > { %v5634_v41 = vshrl.u32 %v6992_v62, %v7105_v31  ;;  %v3178_v57 = vsel %vm4686_vm8, %v7106_v7, %v5510_v61  ;;  %v6951_v63 = vand.u32 2147483647, %v7108_v6  ;;  %vm1155_vm15 = vcmp.lt.s32.totalorder %v5576_v39, 2 }
 0x1b9   : > { %v5621_v10 = vsel %vm1508_vm13, %v7103_v14, 1326507024  ;;  %vm1156_vm0 = vcmp.eq.s32.totalorder %v5576_v39, 0  ;;  %v717_v1 = vclz %v3570_v20  ;;  %v791_v58 = vsel %vm785_vm14, %v788_v25, %v790_v50  ;;  %v7109_v25 = vld [vmem:[#allocation22_spill] sm:$0xff]  ;;  %v7110_v14 = vld [vmem:[#allocation25_spill] sm:$0xff] }
 0x1ba   : > { %vm1153_vm1 = vweird.f32 %v7055_v37  ;;  %vm1159_vm3 = vcmp.eq.s32.totalorder %v5576_v39, 2  ;;  %vm2397_vm4 = vcmp.lt.s32.totalorder %v2396_v16, 2  ;;  %vm2398_vm12 = vcmp.eq.s32.totalorder %v2396_v16, 0 }
 0x1bb   : > { %v5648_v21 = vadd.s32 %v5608_v18, %v5606_v32  ;;  %vm2401_vm11 = vcmp.eq.s32.totalorder %v2396_v16, 2  ;;  %v3571_v61 = vadd.s32 4294967294, %v717_v1  ;;  %vm809_vm10 = vc.u32 %v5606_v32, %v5608_v18 }
 0x1bc   : > { %v810_v40 = vadd.s32 1, %v5609_v47  ;;  %v735_v48 = vsub.s32 4, %v5565_v12  ;;  %v807_v5 = vmul.u32 %v800_v2, %v791_v58  ;;  %v5655_v13 = vand.u32 8388607, %v6951_v63  ;;  %v3826_v51 = vpop.eup %3825 }
 0x1bd   : > { %v872_v50 = vshll.u32 %v7039_v35, %v7109_v25  ;;  %vm3572_vm9 = vcmp.lt.s32.totalorder %v3571_v61, 0  ;;  %v873_v20 = vshrl.u32 %v7040_v8, %v7110_v14  ;;  %v875_v32 = vshll.u32 %v7040_v8, %v7109_v25  ;;  %v3828_v18 = vpop.eup %3827 }
 0x1be   : > { %v811_v38 = vsel %vm809_vm10, %v810_v40, %v5609_v47  ;;  %v1160_v7 = vxor.u32 2147483648, %v3826_v51  ;;  %v720_v2 = vsel %vm3572_vm9, 0, %v3571_v61  ;;  %v876_v58 = vshrl.u32 %v7047_v26, %v7110_v14 }
 0x1bf   : > { %v812_v1 = vadd.s32 %v811_v38, %v807_v5  ;;  %v1157_v63 = vxor.u32 2147483648, %v3828_v18  ;;  %v721_v27 = vsub.s32 32, %v720_v2  ;;  %v725_v19 = vsub.s32 4294967266, %v720_v2 }
 0x1c0   : > { %v879_v42 = vshrl.u32 %v6996_v43, %v7110_v14  ;;  %v1161_v47 = vsel %vm1159_vm3, %v1160_v7, %v3828_v18  ;;  %v2403_v40 = vsel %vm2401_vm11, %v1160_v7, %v3828_v18  ;;  %v722_v22 = vshll.u32 %v5591_v29, %v720_v2 }
 0x1c1   : > { %v813_v53 = vadd.s32 536870912, %v812_v1  ;;  %v1158_v61 = vsel %vm1156_vm0, %v3826_v51, %v1157_v63  ;;  %v2400_v5 = vsel %vm2398_vm12, %v3826_v51, %v1157_v63  ;;  %v723_v38 = vshrl.u32 %v5515_v59, %v721_v27 }
 0x1c2   : > { %v726_v54 = vadd.s32 127, %v725_v19  ;;  %v1162_v23 = vsel %vm1155_vm15, %v1158_v61, %v1161_v47  ;;  %v2404_v31 = vsel %vm2397_vm4, %v2400_v5, %v2403_v40  ;;  %v878_v18 = vshll.u32 %v7047_v26, %v7109_v25  ;;  %v3864_v19 = vld [vmem:[%s4255_s10 + $0x28] sm:$0xff] }
 0x1c3   : > { %v814_v62 = vshrl.u32 %v813_v53, 30  ;;  %v5683_v29 = vsel %vm1153_vm1, nan, %v1162_v23  ;;  %v5687_v7 = vsel %vm1153_vm1, nan, %v2404_v31  ;;  %v724_v63 = vor.u32 %v723_v38, %v722_v22  ;;  %v7118_v31 = vld [vmem:[#allocation66_spill] sm:$0xff] }
 0x1c4   : > { %v727_v59 = vshll.u32 %v726_v54, 23  ;;  %v3093_v27 = vmul.f32 %v3864_v19, %v5683_v29  ;;  %v3190_v39 = vmul.f32 %v3178_v57, %v5687_v7  ;;  %vm651_vm6 = vcmp.lt.s32.totalorder %v7074_v49, 0 }
 0x1c5   : > { %v815_v53 = vshll.u32 %v814_v62, 30  ;;  %v874_v25 = vor.u32 %v873_v20, %v872_v50  ;;  %v877_v51 = vor.u32 %v876_v58, %v875_v32  ;;  %v880_v23 = vor.u32 %v879_v42, %v878_v18 }
 0x1c6   : > { %v728_v16 = vor.u32 4788187, %v727_v59  ;;  %v3202_v2 = vadd.f32 %v3190_v39, %v3093_v27  ;;  %v7111_v37 = vand.u32 2147483647, %v7074_v49  ;;  %vm754_vm15 = vcmp.lt.s32.totalorder %v7090_v3, 0 }
 0x1c7   : > { %v5700_v22 = vsub.s32 %v812_v1, %v815_v53  ;;  %vm1611_vm0 = vcmp.lt.s32.totalorder %v5114_v17, 4  ;;  %v731_v57 = vcvt.s32.f32 %v724_v63  ;;  %v736_v50 = vsel %vm651_vm6, %v735_v48, %v5565_v12 }
 0x1c8   : > { %vm5695_vm14 = vcmp.le.f32.partialorder %v7111_v37, 0.7853982  ;;  %v729_v54 = vand.u32 2147483647, %v728_v16  ;;  %v863_v42 = vor.u32 8388608, %v5655_v13  ;;  %3214 = vst [vmem:[%s5384_s15 + $0x28] sm:$0xff] %v3202_v2  ;;  %v5754_v37 = vpop.permute.xlu1 %3148 }
 0x1c9   : > { %v818_v20 = vsub.s32 0, %v5700_v22  ;;  %v838_v32 = vsub.s32 4, %v814_v62  ;;  %vm887_vm1 = vcmp.lt.s32.totalorder %v4816_v56, 1  ;;  %vm889_vm3 = vcmp.lt.s32.totalorder %v4816_v56, 3 }
 0x1ca   : > { %v732_v1 = vmul.f32 %v731_v57, %v729_v54  ;;  %v895_v58 = vsel %vm887_vm1, %v874_v25, %v877_v51  ;;  %v897_v47 = vsel %vm889_vm3, %v880_v23, %v5026_v52  ;;  %v899_v12 = vsel %vm887_vm1, %v877_v51, %v880_v23 }
 0x1cb   : > { %v738_v48 = vsel %vm5695_vm14, 0, %v736_v50  ;;  %v7114_v13 = vand.u32 2147483647, %v7090_v3  ;;  %v3574_v61 = vmin.u32 %v818_v20, %v5700_v22  ;;  %vm7117_vm12 = vcmp.lt.s32.totalorder %v4816_v56, 4  ;;  %v7119_v50 = vld [vmem:[#allocation65_spill] sm:$0xff] }
 0x1cc   : > { %v892_v5 = vsel %vm7117_vm12, %v880_v23, 2102212464  ;;  %v733_v38 = vxor.u32 2147483648, %v732_v1  ;;  %v871_v52 = vshrl.u32 %v7039_v35, %v7110_v14  ;;  %vm888_vm11 = vcmp.lt.s32.totalorder %v4816_v56, 2 }
 0x1cd   : > { %vm5722_vm4 = vcmp.le.f32.partialorder %v7114_v13, 0.7853982  ;;  %v901_v18 = vsel %vm889_vm3, %v4821_v11, %v5039_v60  ;;  %v820_v63 = vclz %v3574_v61  ;;  %v898_v59 = vsel %vm888_vm11, %v895_v58, %v897_v47 }
 0x1ce   : > { %v902_v19 = vsel %vm888_vm11, %v899_v12, %v901_v18  ;;  %v903_v27 = vshll.u32 %v863_v42, 8  ;;  %v734_v39 = vsel %vm651_vm6, %v733_v38, %v732_v1  ;;  %v839_v14 = vsel %vm754_vm15, %v838_v32, %v814_v62 }
 0x1cf   : > { %v891_v53 = vsel %vm887_vm1, %v871_v52, %v874_v25  ;;  %v893_v11 = vsel %vm889_vm3, %v877_v51, %v892_v5  ;;  %v737_v60 = vsel %vm5695_vm14, %v7074_v49, %v734_v39  ;;  %v3575_v16 = vadd.s32 4294967294, %v820_v63  ;;  %v7122_v39 = vld [vmem:[#allocation36_spill] sm:$0xff] }
 0x1d0   : > { %v5751_v23 = vmul.u32.u64.low %v903_v27, %v902_v19  ;;  %v5752_v2 = vmul.u32.u64.high %v903_v27, %v902_v19, %v5751_v23  ;;  %3829 = vcosq.f32 %v737_v60  ;;  %v1979_v54 = vadd.s32 3, %v738_v48 }
 0x1d1   : > { %v5756_v57 = vmul.u32.u64.low %v903_v27, %v898_v59  ;;  %v5757_v62 = vmul.u32.u64.high %v903_v27, %v898_v59, %v5756_v57  ;;  %v5762_v25 = vsel %vm1611_vm0, %v5630_v0, 920167782  ;;  %3831 = vsinq.f32 %v737_v60 }
 0x1d2   : > { %vm3576_vm10 = vcmp.lt.s32.totalorder %v3575_v16, 0  ;;  %v841_v51 = vsel %vm5722_vm4, 0, %v839_v14  ;;  %v7120_v42 = vor.u32 %v7118_v31, %v7119_v50  ;;  %v742_v32 = vand.u32 3, %v738_v48 }
 0x1d3   : > { %v823_v1 = vsel %vm3576_vm10, 0, %v3575_v16  ;;  %v894_v58 = vsel %vm888_vm11, %v891_v53, %v893_v11  ;;  %v5779_v47 = vsel %vm3160_vm2, %v5143_v28, %v5754_v37  ;;  %v5782_v61 = vadd.s32 %v5756_v57, %v5752_v2  ;;  %v7121_v28 = vld [vmem:[#allocation46_spill] sm:$0xff] }
 0x1d4   : > { %v5771_v20 = vsel %vm1611_vm0, %v7120_v42, 1326507024  ;;  %v824_v12 = vsub.s32 32, %v823_v1  ;;  %v828_v13 = vsub.s32 4294967266, %v823_v1  ;;  %v1980_v5 = vand.u32 3, %v1979_v54 }
 0x1d5   : > { %vm912_vm9 = vc.u32 %v5752_v2, %v5756_v57  ;;  %v913_v48 = vadd.s32 1, %v5757_v62  ;;  %v2083_v38 = vadd.s32 3, %v841_v51  ;;  %v825_v56 = vshll.u32 %v5700_v22, %v823_v1 }
 0x1d6   : > { %v826_v52 = vshrl.u32 %v5648_v21, %v824_v12  ;;  %v829_v18 = vadd.s32 127, %v828_v13  ;;  %v910_v63 = vmul.u32 %v903_v27, %v894_v58  ;;  %vm743_vm6 = vcmp.lt.s32.totalorder %v742_v32, 2 }
 0x1d7   : > { %v3174_v59 = vsel %vm4686_vm8, %v7121_v28, %v5779_v47  ;;  %v914_v19 = vsel %vm912_vm9, %v913_v48, %v5757_v62  ;;  %v1473_v14 = vand.u32 2147483647, %v7122_v39  ;;  %vm741_vm14 = vweird.f32 %v7074_v49  ;;  %v5849_v49 = vpop.permute.xlu0 %3154 }
 0x1d8   : > { %vm744_vm1 = vcmp.eq.s32.totalorder %v742_v32, 0  ;;  %v827_v53 = vor.u32 %v826_v52, %v825_v56  ;;  %v830_v11 = vshll.u32 %v829_v18, 23  ;;  %v915_v22 = vadd.s32 %v914_v19, %v910_v63 }
 0x1d9   : > { %vm747_vm3 = vcmp.eq.s32.totalorder %v742_v32, 2  ;;  %vm1981_vm12 = vcmp.lt.s32.totalorder %v1980_v5, 2  ;;  %vm1982_vm11 = vcmp.eq.s32.totalorder %v1980_v5, 0  ;;  %vm1985_vm10 = vcmp.eq.s32.totalorder %v1980_v5, 2 }
 0x1da   : > { %v831_v21 = vor.u32 4788187, %v830_v11  ;;  %v5795_v27 = vand.u32 3, %v841_v51  ;;  %v916_v60 = vadd.s32 536870912, %v915_v22  ;;  %v5797_v16 = vand.u32 3, %v2083_v38  ;;  %v3830_v23 = vpop.eup %3829 }
 0x1db   : > { %v1480_v2 = vand.u32 8388607, %v1473_v14  ;;  %v1489_v54 = vshrl.u32 %v7039_v35, %v4775_v4  ;;  %v1490_v57 = vshll.u32 %v7039_v35, %v4741_v33  ;;  %v1497_v62 = vshrl.u32 %v6996_v43, %v4775_v4  ;;  %v3832_v31 = vpop.eup %3831 }
 0x1dc   : > { %v748_v50 = vxor.u32 2147483648, %v3830_v23  ;;  %v832_v51 = vand.u32 2147483647, %v831_v21  ;;  %v834_v42 = vcvt.s32.f32 %v827_v53  ;;  %v5807_v1 = vshrl.u32 %v916_v60, 30  ;;  %v7124_v53 = vld [vmem:[#allocation44_spill] sm:$0xff] }
 0x1dd   : > { %v745_v58 = vxor.u32 2147483648, %v3832_v31  ;;  %v1491_v47 = vshrl.u32 %v7040_v8, %v4775_v4  ;;  %v1494_v12 = vshrl.u32 %v7047_v26, %v4775_v4  ;;  %v1496_v13 = vshll.u32 %v7047_v26, %v4741_v33  ;;  %v7123_v4 = vld [vmem:[#allocation30_spill] sm:$0xff] }
 0x1de   : > { %v749_v48 = vsel %vm747_vm3, %v748_v50, %v3832_v31  ;;  %v1987_v38 = vsel %vm1985_vm10, %v748_v50, %v3832_v31  ;;  %v835_v56 = vmul.f32 %v834_v42, %v832_v51  ;;  %v918_v52 = vshll.u32 %v5807_v1, 30  ;;  %v3865_v42 = vld [vmem:[%s4255_s10 + $0x8] sm:$0xff] }
 0x1df   : > { %v746_v18 = vsel %vm744_vm1, %v3830_v23, %v745_v58  ;;  %v1984_v63 = vsel %vm1982_vm11, %v3830_v23, %v745_v58  ;;  %v1493_v28 = vshll.u32 %v7040_v8, %v4741_v33  ;;  %v1498_v19 = vor.u32 %v1497_v62, %v1496_v13 }
 0x1e0   : > { %vm5824_vm9 = vcmp.eq.f32.partialorder %v7124_v53, %v7123_v4  ;;  %v750_v21 = vsel %vm743_vm6, %v746_v18, %v749_v48  ;;  %v1988_v60 = vsel %vm1981_vm12, %v1984_v63, %v1987_v38  ;;  %v836_v31 = vxor.u32 2147483648, %v835_v56 }
 0x1e1   : > { %v5830_v50 = vsub.s32 %v915_v22, %v918_v52  ;;  %v5834_v23 = vsel %vm741_vm14, nan, %v750_v21  ;;  %v5838_v33 = vsel %vm741_vm14, nan, %v1988_v60  ;;  %v1492_v62 = vor.u32 %v1491_v47, %v1490_v57 }
 0x1e2   : > { %v1495_v51 = vor.u32 %v1494_v12, %v1493_v28  ;;  %v3089_v58 = vmul.f32 %v3865_v42, %v5834_v23  ;;  %v3186_v32 = vmul.f32 %v3174_v59, %v5838_v33  ;;  %v837_v5 = vsel %vm754_vm15, %v836_v31, %v835_v56 }
 0x1e3   : > { %v921_v22 = vsub.s32 0, %v5830_v50  ;;  %v840_v13 = vsel %vm5722_vm4, %v7090_v3, %v837_v5  ;;  %v1481_v48 = vor.u32 8388608, %v1480_v2  ;;  %vm1505_vm6 = vcmp.lt.s32.totalorder %v5086_v34, 1 }
 0x1e4   : > { %vm1507_vm14 = vcmp.lt.s32.totalorder %v5086_v34, 3  ;;  %v3198_v57 = vadd.f32 %v3186_v32, %v3089_v58  ;;  %3833 = vcosq.f32 %v840_v13  ;;  %v1510_v47 = vsel %vm1508_vm13, %v1498_v19, 2102212464 }
 0x1e5   : > { %v3578_v59 = vmin.u32 %v921_v22, %v5830_v50  ;;  %3835 = vsinq.f32 %v840_v13  ;;  %v1513_v12 = vsel %vm1505_vm6, %v1492_v62, %v1495_v51  ;;  %v1515_v40 = vsel %vm1507_vm14, %v1498_v19, %v5614_v24 }
 0x1e6   : > { %v1517_v2 = vsel %vm1505_vm6, %v1495_v51, %v1498_v19  ;;  %3210 = vst [vmem:[%s5384_s15 + $0x8] sm:$0xff] %v3198_v57  ;;  %vm857_vm15 = vcmp.lt.s32.totalorder %v7108_v6, 0  ;;  %v5869_v56 = vsel %vm3160_vm2, %v5754_v37, %v5849_v49  ;;  %vm1506_vm13 = vcmp.lt.s32.totalorder %v5086_v34, 2 }
 0x1e7   : > { %v923_v38 = vclz %v3578_v59  ;;  %v941_v52 = vsub.s32 4, %v5807_v1  ;;  %v1509_v24 = vsel %vm1505_vm6, %v1489_v54, %v1492_v62  ;;  %v1511_v18 = vsel %vm1507_vm14, %v1495_v51, %v1510_v47  ;;  %v7127_v54 = vld [vmem:[#allocation51_spill] sm:$0xff]  ;;  %v7128_v51 = vld [vmem:[#allocation38_spill] sm:$0xff] }
 0x1e8   : > { %v1519_v63 = vsel %vm1507_vm14, %v5125_v30, %v5621_v10  ;;  %v1516_v37 = vsel %vm1506_vm13, %v1513_v12, %v1515_v40  ;;  %v1521_v4 = vshll.u32 %v1481_v48, 8  ;;  %vm847_vm4 = vcmp.eq.s32.totalorder %v5795_v27, 0 }
 0x1e9   : > { %v3579_v28 = vadd.s32 4294967294, %v923_v38  ;;  %v1520_v19 = vsel %vm1506_vm13, %v1517_v2, %v1519_v63  ;;  %vm850_vm1 = vcmp.eq.s32.totalorder %v5795_v27, 2  ;;  %vm2086_vm3 = vcmp.eq.s32.totalorder %v5797_v16, 0 }
 0x1ea   : > { %v3175_v53 = vsel %vm5824_vm9, %v7127_v54, %v5869_v56  ;;  %vm846_vm12 = vcmp.lt.s32.totalorder %v5795_v27, 2  ;;  %vm2085_vm10 = vcmp.lt.s32.totalorder %v5797_v16, 2  ;;  %v1512_v30 = vsel %vm1506_vm13, %v1509_v24, %v1511_v18 }
 0x1eb   : > { %vm3580_vm11 = vcmp.lt.s32.totalorder %v3579_v28, 0  ;;  %v5896_v10 = vmul.u32.u64.low %v1521_v4, %v1520_v19  ;;  %v5897_v21 = vmul.u32.u64.high %v1521_v4, %v1520_v19, %v5896_v10  ;;  %vm844_vm6 = vweird.f32 %v7090_v3 }
 0x1ec   : > { %v926_v60 = vsel %vm3580_vm11, 0, %v3579_v28  ;;  %v5900_v31 = vmul.u32.u64.low %v1521_v4, %v1516_v37  ;;  %v5901_v62 = vmul.u32.u64.high %v1521_v4, %v1516_v37, %v5900_v31  ;;  %v1576_v42 = vand.u32 2147483647, %v7128_v51 }
 0x1ed   : > { %v927_v58 = vsub.s32 32, %v926_v60  ;;  %v931_v32 = vsub.s32 4294967266, %v926_v60  ;;  %v942_v5 = vsel %vm857_vm15, %v941_v52, %v5807_v1  ;;  %vm2089_vm14 = vcmp.eq.s32.totalorder %v5797_v16, 2 }
 0x1ee   : > { %v7129_v34 = vand.u32 2147483647, %v7108_v6  ;;  %v928_v13 = vshll.u32 %v5830_v50, %v926_v60  ;;  %v1528_v48 = vmul.u32 %v1521_v4, %v1512_v30  ;;  %v1593_v57 = vshll.u32 %v7039_v35, %v4801_v44  ;;  %v3834_v47 = vpop.eup %3833 }
 0x1ef   : > { %v1594_v59 = vshrl.u32 %v7040_v8, %v7063_v45  ;;  %v929_v1 = vshrl.u32 %v5782_v61, %v927_v58  ;;  %v932_v12 = vadd.s32 127, %v931_v32  ;;  %v5921_v40 = vadd.s32 %v5900_v31, %v5897_v21  ;;  %v3836_v2 = vpop.eup %3835 }
 0x1f0   : > { %vm5910_vm13 = vcmp.le.f32.partialorder %v7129_v34, 0.7853982  ;;  %vm1530_vm11 = vc.u32 %v5897_v21, %v5900_v31  ;;  %v851_v38 = vxor.u32 2147483648, %v3834_v47  ;;  %v1531_v50 = vadd.s32 1, %v5901_v62 }
 0x1f1   : > { %v1583_v56 = vand.u32 8388607, %v1576_v42  ;;  %v1595_v52 = vor.u32 %v1594_v59, %v1593_v57  ;;  %v848_v24 = vxor.u32 2147483648, %v3836_v2  ;;  %v930_v18 = vor.u32 %v929_v1, %v928_v13  ;;  %v3866_v59 = vld [vmem:[%s4255_s10 + $0x10] sm:$0xff] }
 0x1f2   : > { %v933_v63 = vshll.u32 %v932_v12, 23  ;;  %v1596_v61 = vshll.u32 %v7040_v8, %v4801_v44  ;;  %v852_v28 = vsel %vm850_vm1, %v851_v38, %v3836_v2  ;;  %v2091_v37 = vsel %vm2089_vm14, %v851_v38, %v3836_v2 }
 0x1f3   : > { %v1532_v19 = vsel %vm1530_vm11, %v1531_v50, %v5901_v62  ;;  %v1597_v4 = vshrl.u32 %v7047_v26, %v7063_v45  ;;  %v849_v54 = vsel %vm847_vm4, %v3834_v47, %v848_v24  ;;  %v937_v10 = vcvt.s32.f32 %v930_v18 }
 0x1f4   : > { %v934_v30 = vor.u32 4788187, %v933_v63  ;;  %v2088_v21 = vsel %vm2086_vm3, %v3834_v47, %v848_v24  ;;  %v853_v60 = vsel %vm846_vm12, %v849_v54, %v852_v28  ;;  %v1533_v58 = vadd.s32 %v1532_v19, %v1528_v48 }
 0x1f5   : > { %v2092_v31 = vsel %vm2085_vm10, %v2088_v21, %v2091_v37  ;;  %v1598_v32 = vor.u32 %v1597_v4, %v1596_v61  ;;  %v5946_v62 = vsel %vm844_vm6, nan, %v853_v60  ;;  %v1599_v57 = vshll.u32 %v7047_v26, %v4801_v44  ;;  %v7132_v60 = vld [vmem:[#allocation35_spill] sm:$0xff] }
 0x1f6   : > { %v935_v34 = vand.u32 2147483647, %v934_v30  ;;  %v5950_v13 = vsel %vm844_vm6, nan, %v2092_v31  ;;  %v3090_v27 = vmul.f32 %v3866_v59, %v5946_v62  ;;  %v1534_v47 = vadd.s32 536870912, %v1533_v58 }
 0x1f7   : > { %v3187_v16 = vmul.f32 %v3175_v53, %v5950_v13  ;;  %v1600_v48 = vshrl.u32 %v6996_v43, %v7063_v45  ;;  %v5961_v1 = vor.u32 %v5634_v41, %v5625_v15  ;;  %v944_v12 = vsel %vm5910_vm13, 0, %v942_v5 }
 0x1f8   : > { %v938_v3 = vmul.f32 %v937_v10, %v935_v34  ;;  %vm1608_vm4 = vcmp.lt.s32.totalorder %v5114_v17, 1  ;;  %v5966_v2 = vshrl.u32 %v1534_v47, 30  ;;  %vm1610_vm1 = vcmp.lt.s32.totalorder %v5114_v17, 3 }
 0x1f9   : > { %v3199_v44 = vadd.f32 %v3187_v16, %v3090_v27  ;;  %v1601_v38 = vor.u32 %v1600_v48, %v1599_v57  ;;  %v1584_v50 = vor.u32 8388608, %v1583_v56  ;;  %v1616_v24 = vsel %vm1608_vm4, %v1595_v52, %v1598_v32  ;;  %v7133_v57 = vld [vmem:[#allocation37_spill] sm:$0xff]  ;;  %v7135_v27 = vld [vmem:[#allocation72_spill] sm:$0xff]  ;;  %v7136_v16 = vld [vmem:[#allocation71_spill] sm:$0xff] }
 0x1fa   : > { %v939_v53 = vxor.u32 2147483648, %v938_v3  ;;  %v1622_v15 = vsel %vm1610_vm1, %v5630_v0, %v5771_v20  ;;  %v2187_v41 = vadd.s32 3, %v944_v12  ;;  %v5979_v5 = vsel %vm3160_vm2, %v5849_v49, %v5139_v55 }
 0x1fb   : > { %3211 = vst [vmem:[%s5384_s15 + $0x10] sm:$0xff] %v3199_v44  ;;  %v1536_v18 = vshll.u32 %v5966_v2, 30  ;;  %v1618_v56 = vsel %vm1610_vm1, %v1601_v38, %v5762_v25  ;;  %vm1609_vm3 = vcmp.lt.s32.totalorder %v5114_v17, 2  ;;  %v1613_v0 = vsel %vm1611_vm0, %v1601_v38, 2102212464 }
 0x1fc   : > { %v940_v63 = vsel %vm857_vm15, %v939_v53, %v938_v3  ;;  %v1620_v20 = vsel %vm1608_vm4, %v1598_v32, %v1601_v38  ;;  %v1592_v25 = vshrl.u32 %v7039_v35, %v7063_v45  ;;  %v1619_v61 = vsel %vm1609_vm3, %v1616_v24, %v1618_v56  ;;  %v7138_v3 = vld [vmem:[#allocation31_spill] sm:$0xff]  ;;  %v7142_v38 = vld [vmem:[#allocation52_spill] sm:$0xff] }
 0x1fd   : > { %v943_v55 = vsel %vm5910_vm13, %v7108_v6, %v940_v63  ;;  %v5996_v49 = vsub.s32 %v1533_v58, %v1536_v18  ;;  %v6002_v28 = vand.u32 3, %v944_v12  ;;  %v1623_v37 = vsel %vm1609_vm3, %v1620_v20, %v1622_v15  ;;  %v7139_v12 = vld [vmem:[#allocation43_spill] sm:$0xff]  ;;  %v7144_v56 = vld [vmem:[#allocation68_spill] sm:$0xff]  ;;  %v7145_v20 = vld [vmem:[#allocation61_spill] sm:$0xff] }
 0x1fe   : > { %3837 = vcosq.f32 %v943_v55  ;;  %v1624_v19 = vshll.u32 %v1584_v50, 8  ;;  %v1612_v22 = vsel %vm1608_vm4, %v1592_v25, %v1595_v52  ;;  %v1614_v54 = vsel %vm1610_vm1, %v1598_v32, %v1613_v0  ;;  %v7143_v15 = vld [vmem:[#allocation39_spill] sm:$0xff] }
 0x1ff   : > { %3839 = vsinq.f32 %v943_v55  ;;  %v1539_v4 = vsub.s32 0, %v5996_v49  ;;  %v6019_v31 = vshll.u32 %v6996_v43, %v7132_v60  ;;  %vm1714_vm0 = vcmp.lt.s32.totalorder %v5120_v46, 4 }
 0x200   : > { %v6011_v45 = vmul.u32.u64.low %v1624_v19, %v1623_v37  ;;  %v6012_v30 = vmul.u32.u64.high %v1624_v19, %v1623_v37, %v6011_v45  ;;  %v6014_v10 = vmul.u32.u64.low %v1624_v19, %v1619_v61  ;;  %v6015_v21 = vmul.u32.u64.high %v1624_v19, %v1619_v61, %v6014_v10 }
 0x201   : > { %v2188_v58 = vand.u32 3, %v2187_v41  ;;  %v3602_v34 = vmin.u32 %v1539_v4, %v5996_v49  ;;  %v7134_v52 = vmov 920167782   ;;  %v6030_v32 = vsel %vm1714_vm0, %v5961_v1, 920167782 }
 0x202   : > { %v6025_v59 = vshrl.u32 %v7134_v52, %v7133_v57  ;;  %v7137_v47 = vor.u32 %v7135_v27, %v7136_v16  ;;  %vm6041_vm15 = vcmp.eq.f32.partialorder %v7139_v12, %v7138_v3  ;;  %v1615_v24 = vsel %vm1609_vm3, %v1612_v22, %v1614_v54 }
 0x203   : > { %v3176_v53 = vsel %vm6041_vm15, %v7142_v38, %v5979_v5  ;;  %v1541_v50 = vclz %v3602_v34  ;;  %v1679_v41 = vand.u32 2147483647, %v7143_v15  ;;  %vm949_vm12 = vcmp.lt.s32.totalorder %v6002_v28, 2 }
 0x204   : > { %v6037_v48 = vsel %vm1714_vm0, %v7137_v47, 1326507024  ;;  %vm950_vm10 = vcmp.eq.s32.totalorder %v6002_v28, 0  ;;  %vm953_vm6 = vcmp.eq.s32.totalorder %v6002_v28, 2  ;;  %v6056_v18 = vadd.s32 %v6014_v10, %v6012_v30 }
 0x205   : > { %v1697_v63 = vshrl.u32 %v7040_v8, %v7144_v56  ;;  %vm947_vm14 = vweird.f32 %v7108_v6  ;;  %vm2189_vm13 = vcmp.lt.s32.totalorder %v2188_v58, 2  ;;  %v3603_v5 = vadd.s32 4294967294, %v1541_v50 }
 0x206   : > { %vm1633_vm11 = vc.u32 %v6012_v30, %v6014_v10  ;;  %v1634_v17 = vadd.s32 1, %v6015_v21  ;;  %vm2190_vm4 = vcmp.eq.s32.totalorder %v2188_v58, 0  ;;  %vm2193_vm1 = vcmp.eq.s32.totalorder %v2188_v58, 2 }
 0x207   : > { %v1631_v0 = vmul.u32 %v1624_v19, %v1615_v24  ;;  %v1696_v55 = vshll.u32 %v7039_v35, %v7145_v20  ;;  %vm1475_vm3 = vcmp.lt.s32.totalorder %v7122_v39, 0  ;;  %vm3604_vm5 = vcmp.lt.s32.totalorder %v3603_v5, 0 }
 0x208   : > { %v1559_v25 = vsub.s32 4, %v5966_v2  ;;  %v1635_v61 = vsel %vm1633_vm11, %v1634_v17, %v6015_v21  ;;  %v1686_v37 = vand.u32 8388607, %v1679_v41  ;;  %v3838_v4 = vpop.eup %3837  ;;  %v1544_v22 = vsel %vm3604_vm5, 0, %v3603_v5 }
 0x209   : > { %v1636_v54 = vadd.s32 %v1635_v61, %v1631_v0  ;;  %v1698_v45 = vor.u32 %v1697_v63, %v1696_v55  ;;  %v1699_v19 = vshll.u32 %v7040_v8, %v7145_v20  ;;  %v3840_v30 = vpop.eup %3839  ;;  %v954_v10 = vxor.u32 2147483648, %v3838_v4 }
 0x20a   : > { %v1545_v34 = vsub.s32 32, %v1544_v22  ;;  %v1549_v52 = vsub.s32 4294967266, %v1544_v22  ;;  %v1700_v27 = vshrl.u32 %v7047_v26, %v7144_v56  ;;  %v951_v16 = vxor.u32 2147483648, %v3840_v30 }
 0x20b   : > { %vm6076_vm11 = vcmp.le.f32.partialorder %v1473_v14, 0.7853982  ;;  %v1546_v47 = vshll.u32 %v5996_v49, %v1544_v22  ;;  %v1637_v3 = vadd.s32 536870912, %v1636_v54  ;;  %v1703_v12 = vshrl.u32 %v6996_v43, %v7144_v56 }
 0x20c   : > { %v955_v38 = vsel %vm953_vm6, %v954_v10, %v3840_v30  ;;  %v2195_v50 = vsel %vm2193_vm1, %v954_v10, %v3840_v30  ;;  %v1547_v24 = vshrl.u32 %v5921_v40, %v1545_v34  ;;  %v1550_v63 = vadd.s32 127, %v1549_v52  ;;  %v3867_v34 = vld [vmem:[%s4255_s10 + $0x18] sm:$0xff] }
 0x20d   : > { %v952_v14 = vsel %vm950_vm10, %v3838_v4, %v951_v16  ;;  %v2192_v5 = vsel %vm2190_vm4, %v3838_v4, %v951_v16  ;;  %v1638_v17 = vshrl.u32 %v1637_v3, 30  ;;  %v1702_v49 = vshll.u32 %v7047_v26, %v7145_v20 }
 0x20e   : > { %v956_v0 = vsel %vm949_vm12, %v952_v14, %v955_v38  ;;  %v2196_v55 = vsel %vm2189_vm13, %v2192_v5, %v2195_v50  ;;  %v1548_v61 = vor.u32 %v1547_v24, %v1546_v47  ;;  %v1551_v22 = vshll.u32 %v1550_v63, 23 }
 0x20f   : > { %v6097_v40 = vsel %vm947_vm14, nan, %v956_v0  ;;  %v6101_v30 = vsel %vm947_vm14, nan, %v2196_v55  ;;  %v1639_v4 = vshll.u32 %v1638_v17, 30  ;;  %v1701_v10 = vor.u32 %v1700_v27, %v1699_v19 }
 0x210   : > { %v3091_v20 = vmul.f32 %v3867_v34, %v6097_v40  ;;  %v3188_v28 = vmul.f32 %v3176_v53, %v6101_v30  ;;  %v1552_v58 = vor.u32 4788187, %v1551_v22  ;;  %v1704_v52 = vor.u32 %v1703_v12, %v1702_v49 }
 0x211   : > { %v1560_v16 = vsel %vm1475_vm3, %v1559_v25, %v5966_v2  ;;  %vm1578_vm5 = vcmp.lt.s32.totalorder %v7128_v51, 0  ;;  %v6110_v47 = vsub.s32 %v1636_v54, %v1639_v4  ;;  %v1687_v6 = vor.u32 8388608, %v1686_v37 }
 0x212   : > { %v3200_v3 = vadd.f32 %v3188_v28, %v3091_v20  ;;  %v1553_v38 = vand.u32 2147483647, %v1552_v58  ;;  %v1555_v19 = vcvt.s32.f32 %v1548_v61  ;;  %vm1711_vm12 = vcmp.lt.s32.totalorder %v5120_v46, 1 }
 0x213   : > { %v1642_v27 = vsub.s32 0, %v6110_v47  ;;  %v1662_v50 = vsub.s32 4, %v1638_v17  ;;  %vm1713_vm10 = vcmp.lt.s32.totalorder %v5120_v46, 3  ;;  %v1719_v53 = vsel %vm1711_vm12, %v1698_v45, %v1701_v10 }
 0x214   : > { %3212 = vst [vmem:[%s5384_s15 + $0x18] sm:$0xff] %v3200_v3  ;;  %v1556_v2 = vmul.f32 %v1555_v19, %v1553_v38  ;;  %v1562_v25 = vsel %vm6076_vm11, 0, %v1560_v16  ;;  %v1721_v37 = vsel %vm1713_vm10, %v1704_v52, %v6030_v32  ;;  %v1723_v54 = vsel %vm1711_vm12, %v1701_v10, %v1704_v52 }
 0x215   : > { %v3606_v12 = vmin.u32 %v1642_v27, %v6110_v47  ;;  %v1695_v24 = vshrl.u32 %v7039_v35, %v7144_v56  ;;  %vm1712_vm6 = vcmp.lt.s32.totalorder %v5120_v46, 2  ;;  %v1716_v63 = vsel %vm1714_vm0, %v1704_v52, 2102212464 }
 0x216   : > { %v1557_v14 = vxor.u32 2147483648, %v1556_v2  ;;  %v1722_v5 = vsel %vm1712_vm6, %v1719_v53, %v1721_v37  ;;  %v1725_v32 = vsel %vm1713_vm10, %v5961_v1, %v6037_v48  ;;  %v1727_v49 = vshll.u32 %v1687_v6, 8  ;;  %v3153_v48 = vpop.permute.xlu1 %3152  ;;  %v7150_v6 = vld [vmem:[#allocation81_spill] sm:$0xff]  ;;  %v6181_v37 = vpop.permute.xlu0 %3158 }
 0x217   : > { %v1644_v0 = vclz %v3606_v12  ;;  %v1663_v55 = vsel %vm1578_vm5, %v1662_v50, %v1638_v17  ;;  %v1715_v56 = vsel %vm1711_vm12, %v1695_v24, %v1698_v45  ;;  %v1726_v61 = vsel %vm1712_vm6, %v1723_v54, %v1725_v32  ;;  %v7151_v50 = vld [vmem:[#allocation78_spill] sm:$0xff] }
 0x218   : > { %v1558_v22 = vsel %vm1475_vm3, %v1557_v14, %v1556_v2  ;;  %v1717_v4 = vsel %vm1713_vm10, %v1701_v10, %v1716_v63  ;;  %v6147_v34 = vmul.u32.u64.low %v1727_v49, %v1726_v61  ;;  %v6148_v20 = vmul.u32.u64.high %v1727_v49, %v1726_v61, %v6147_v34  ;;  %v7152_v14 = vld [vmem:[#allocation47_spill] sm:$0xff] }
 0x219   : > { %v1561_v1 = vsel %vm6076_vm11, %v7122_v39, %v1558_v22  ;;  %v3607_v17 = vadd.s32 4294967294, %v1644_v0  ;;  %v6153_v28 = vmul.u32.u64.low %v1727_v49, %v1722_v5  ;;  %v6154_v45 = vmul.u32.u64.high %v1727_v49, %v1722_v5, %v6153_v28 }
 0x21a   : > { %v6158_v58 = vor.u32 %v6025_v59, %v6019_v31  ;;  %3841 = vcosq.f32 %v1561_v1  ;;  %v2811_v52 = vadd.s32 3, %v1562_v25  ;;  %vm6162_vm0 = vcmp.le.f32.partialorder %v1576_v42, 0.7853982 }
 0x21b   : > { %3843 = vsinq.f32 %v1561_v1  ;;  %vm3608_vm14 = vcmp.lt.s32.totalorder %v3607_v17, 0  ;;  %v1665_v21 = vsel %vm6162_vm0, 0, %v1663_v55  ;;  %v1718_v16 = vsel %vm1712_vm6, %v1715_v56, %v1717_v4  ;;  %v6197_v55 = vpop.permute.xlu1 %3156 }
 0x21c   : > { %v6173_v31 = vsel %vm3160_vm2, %v7150_v6, %v3153_v48  ;;  %v1647_v59 = vsel %vm3608_vm14, 0, %v3607_v17  ;;  %v6176_v3 = vadd.s32 %v6153_v28, %v6148_v20  ;;  %vm1736_vm13 = vc.u32 %v6148_v20, %v6153_v28  ;;  %7154 = vst [vmem:[#allocation14_spill] sm:$0xff] %v6197_v55  ;;  %v7155_v28 = vld [vmem:[#allocation28_spill] sm:$0xff] }
 0x21d   : > { %v1566_v42 = vand.u32 3, %v1562_v25  ;;  %v1648_v38 = vsub.s32 32, %v1647_v59  ;;  %v1652_v19 = vsub.s32 4294967266, %v1647_v59  ;;  %v1737_v27 = vadd.s32 1, %v6154_v45 }
 0x21e   : > { %vm1302_vm4 = vcmp.lt.s32.totalorder %v7151_v50, 4  ;;  %v2812_v46 = vand.u32 3, %v2811_v52  ;;  %v1734_v53 = vmul.u32 %v1727_v49, %v1718_v16  ;;  %v2915_v2 = vadd.s32 3, %v1665_v21  ;;  %v7153_v49 = vld [vmem:[#allocation17_spill] sm:$0xff]  ;;  %v6216_v52 = vpop.permute.xlu0 %3235 }
 0x21f   : > { %v1649_v54 = vshll.u32 %v6110_v47, %v1647_v59  ;;  %v1650_v12 = vshrl.u32 %v6056_v18, %v1648_v38  ;;  %v1653_v24 = vadd.s32 127, %v1652_v19  ;;  %v1738_v63 = vsel %vm1736_vm13, %v1737_v27, %v6154_v45  ;;  %v7156_v59 = vld [vmem:[#allocation27_spill] sm:$0xff] }
 0x220   : > { %v6189_v25 = vsel %vm1302_vm4, %v6158_v58, 920167782  ;;  %v3182_v5 = vsel %vm4686_vm8, %v7152_v14, %v6173_v31  ;;  %v1739_v32 = vadd.s32 %v1738_v63, %v1734_v53  ;;  %v6962_v0 = vand.u32 2147483647, %v7153_v49  ;;  %v6229_v63 = vpop.permute.xlu1 %3233 }
 0x221   : > { %vm1565_vm1 = vweird.f32 %v7122_v39  ;;  %vm1567_vm3 = vcmp.lt.s32.totalorder %v1566_v42, 2  ;;  %vm1568_vm11 = vcmp.eq.s32.totalorder %v1566_v42, 0  ;;  %v1651_v18 = vor.u32 %v1650_v12, %v1649_v54 }
 0x222   : > { %v1654_v47 = vshll.u32 %v1653_v24, 23  ;;  %vm1571_vm12 = vcmp.eq.s32.totalorder %v1566_v42, 2  ;;  %vm2813_vm10 = vcmp.lt.s32.totalorder %v2812_v46, 2  ;;  %vm2814_vm6 = vcmp.eq.s32.totalorder %v2812_v46, 0  ;;  %v3868_v42 = vld [vmem:[%s4255_s10 + $0x48] sm:$0xff] }
 0x223   : > { %v1740_v56 = vadd.s32 536870912, %v1739_v32  ;;  %vm2817_vm14 = vcmp.eq.s32.totalorder %v2812_v46, 2  ;;  %v6199_v22 = vand.u32 3, %v1665_v21  ;;  %v6201_v4 = vand.u32 3, %v2915_v2 }
 0x224   : > { %v1655_v61 = vor.u32 4788187, %v1654_v47  ;;  %v3842_v34 = vpop.eup %3841  ;;  %v6208_v1 = vsel %vm3160_vm2, %v3153_v48, %v6181_v37  ;;  %v6212_v17 = vand.u32 8388607, %v6962_v0  ;;  %v1188_v45 = vshrl.u32 %v6996_v43, %v7155_v28 }
 0x225   : > { %v6203_v20 = vshrl.u32 %v1740_v56, 30  ;;  %v3844_v21 = vpop.eup %3843  ;;  %v1572_v16 = vxor.u32 2147483648, %v3842_v34  ;;  %v1658_v31 = vcvt.s32.f32 %v1651_v18  ;;  %v1181_v38 = vshll.u32 %v7039_v35, %v7156_v59 }
 0x226   : > { %v1656_v6 = vand.u32 2147483647, %v1655_v61  ;;  %v1569_v19 = vxor.u32 2147483648, %v3844_v21  ;;  %v1182_v27 = vshrl.u32 %v7040_v8, %v7155_v28  ;;  %v1187_v53 = vshll.u32 %v7047_v26, %v7156_v59 }
 0x227   : > { %v1742_v48 = vshll.u32 %v6203_v20, 30  ;;  %v1573_v2 = vsel %vm1571_vm12, %v1572_v16, %v3844_v21  ;;  %v2819_v54 = vsel %vm2817_vm14, %v1572_v16, %v3844_v21  ;;  %v1185_v24 = vshrl.u32 %v7047_v26, %v7155_v28 }
 0x228   : > { %v1659_v12 = vmul.f32 %v1658_v31, %v1656_v6  ;;  %v1570_v14 = vsel %vm1568_vm11, %v3842_v34, %v1569_v19  ;;  %v2816_v18 = vsel %vm2814_vm6, %v3842_v34, %v1569_v19  ;;  %vm1681_vm13 = vcmp.lt.s32.totalorder %v7143_v15, 0 }
 0x229   : > { %v6234_v47 = vsub.s32 %v1739_v32, %v1742_v48  ;;  %v1189_v56 = vor.u32 %v1188_v45, %v1187_v53  ;;  %v1574_v61 = vsel %vm1567_vm3, %v1570_v14, %v1573_v2  ;;  %v2820_v21 = vsel %vm2813_vm10, %v2816_v18, %v2819_v54  ;;  %v6249_v45 = vpop.permute.xlu0 %3239  ;;  %v7161_v2 = vld [vmem:[#allocation63_spill] sm:$0xff]  ;;  %v6272_v18 = vpop.permute.xlu1 %3237 }
 0x22a   : > { %v1660_v16 = vxor.u32 2147483648, %v1659_v12  ;;  %v1184_v6 = vshll.u32 %v7040_v8, %v7156_v59  ;;  %v6242_v31 = vsel %vm1565_vm1, nan, %v1574_v61  ;;  %v6246_v34 = vsel %vm1565_vm1, nan, %v2820_v21 }
 0x22b   : > { %7157 = vst [vmem:[#allocation21_spill] sm:$0xff] %v6242_v31  ;;  %7158 = vst [vmem:[#allocation19_spill] sm:$0xff] %v6246_v34  ;;  %v1745_v32 = vsub.s32 0, %v6234_v47  ;;  %v1183_v19 = vor.u32 %v1182_v27, %v1181_v38  ;;  %v3097_v46 = vmul.f32 %v3868_v42, %v6242_v31  ;;  %v3194_v48 = vmul.f32 %v3182_v5, %v6246_v34  ;;  %v7164_v42 = vld [vmem:[#allocation77_spill] sm:$0xff] }
 0x22c   : > { %v1661_v59 = vsel %vm1578_vm5, %v1660_v16, %v1659_v12  ;;  %vm6258_vm3 = vcmp.le.f32.partialorder %v1679_v41, 0.7853982  ;;  %v1186_v53 = vor.u32 %v1185_v24, %v1184_v6  ;;  %v1180_v5 = vshrl.u32 %v7039_v35, %v7155_v28  ;;  %v7163_v16 = vld [vmem:[#allocation76_spill] sm:$0xff] }
 0x22d   : > { %v1664_v38 = vsel %vm6162_vm0, %v7128_v51, %v1661_v59  ;;  %v3610_v27 = vmin.u32 %v1745_v32, %v6234_v47  ;;  %vm7162_vm1 = vcmp.lt.s32.totalorder %v7161_v2, 4  ;;  %v3206_v12 = vadd.f32 %v3194_v48, %v3097_v46  ;;  %v6281_v48 = vpop.permute.xlu0 %3243 }
 0x22e   : > { %v1201_v54 = vsel %vm7162_vm1, %v1189_v56, 2102212464  ;;  %3845 = vcosq.f32 %v1664_v38  ;;  %v1765_v41 = vsub.s32 4, %v6203_v20  ;;  %v1172_v14 = vor.u32 8388608, %v6212_v17  ;;  %v7165_v17 = vld [vmem:[#allocation75_spill] sm:$0xff] }
 0x22f   : > { %3847 = vsinq.f32 %v1664_v38  ;;  %v1747_v24 = vclz %v3610_v27  ;;  %vm1196_vm5 = vcmp.lt.s32.totalorder %v7161_v2, 1  ;;  %vm1198_vm0 = vcmp.lt.s32.totalorder %v7161_v2, 3  ;;  %3218 = vst [vmem:[%s5384_s15 + $0x48] sm:$0xff] %v3206_v12  ;;  %v7166_v38 = vld [vmem:[#allocation70_spill] sm:$0xff] }
 0x230   : > { %vm1197_vm11 = vcmp.lt.s32.totalorder %v7161_v2, 2  ;;  %v1200_v10 = vsel %vm1196_vm5, %v1180_v5, %v1183_v19  ;;  %v1202_v28 = vsel %vm1198_vm0, %v1186_v53, %v1201_v54  ;;  %v1204_v61 = vsel %vm1196_vm5, %v1183_v19, %v1186_v53  ;;  %v7167_v54 = vld [vmem:[#allocation18_spill] sm:$0xff] }
 0x231   : > { %v3611_v21 = vadd.s32 4294967294, %v1747_v24  ;;  %v1206_v6 = vsel %vm1198_vm0, %v1189_v56, %v7163_v16  ;;  %v1208_v32 = vsel %vm1196_vm5, %v1186_v53, %v1189_v56  ;;  %v1210_v46 = vsel %vm1198_vm0, %v7165_v17, %v7164_v42  ;;  %v6305_v24 = vpop.permute.xlu1 %3241 }
 0x232   : > { %vm1674_vm12 = vcmp.eq.s32.totalorder %v6199_v22, 2  ;;  %v1766_v59 = vsel %vm1681_vm13, %v1765_v41, %v6203_v20  ;;  %v1211_v27 = vsel %vm1197_vm11, %v1208_v32, %v1210_v46  ;;  %v1212_v56 = vshll.u32 %v1172_v14, 8 }
 0x233   : > { %vm1671_vm10 = vcmp.eq.s32.totalorder %v6199_v22, 0  ;;  %vm3612_vm6 = vcmp.lt.s32.totalorder %v3611_v21, 0  ;;  %v1203_v53 = vsel %vm1197_vm11, %v1200_v10, %v1202_v28  ;;  %v1207_v5 = vsel %vm1197_vm11, %v1204_v61, %v1206_v6 }
 0x234   : > { %v6961_v20 = vand.u32 2147483647, %v7167_v54  ;;  %vm1670_vm14 = vcmp.lt.s32.totalorder %v6199_v22, 2  ;;  %v1750_v12 = vsel %vm3612_vm6, 0, %v3611_v21  ;;  %vm2917_vm1 = vcmp.lt.s32.totalorder %v6201_v4, 2  ;;  %v3869_v22 = vld [vmem:[%s4255_s10 + $0x50] sm:$0xff] }
 0x235   : > { %vm2918_vm5 = vcmp.eq.s32.totalorder %v6201_v4, 0  ;;  %v6302_v41 = vmul.u32.u64.low %v1212_v56, %v1211_v27  ;;  %v6303_v14 = vmul.u32.u64.high %v1212_v56, %v1211_v27, %v6302_v41  ;;  %vm1668_vm0 = vweird.f32 %v7128_v51 }
 0x236   : > { %v1751_v10 = vsub.s32 32, %v1750_v12  ;;  %v1755_v28 = vsub.s32 4294967266, %v1750_v12  ;;  %v6310_v2 = vsel %vm6258_vm3, 0, %v1766_v59  ;;  %vm2921_vm11 = vcmp.eq.s32.totalorder %v6201_v4, 2  ;;  %v6324_v59 = vpop.permute.xlu0 %3247 }
 0x237   : > { %v1752_v61 = vshll.u32 %v6234_v47, %v1750_v12  ;;  %v6314_v21 = vmul.u32.u64.low %v1212_v56, %v1207_v5  ;;  %v6315_v16 = vmul.u32.u64.high %v1212_v56, %v1207_v5, %v6314_v21  ;;  %v1219_v6 = vmul.u32 %v1212_v56, %v1203_v53  ;;  %7168 = vst [vmem:[#allocation26_spill] sm:$0xff] %v6324_v59  ;;  %v6339_v59 = vpop.permute.xlu1 %3245 }
 0x238   : > { %v1753_v32 = vshrl.u32 %v6176_v3, %v1751_v10  ;;  %v1756_v42 = vadd.s32 127, %v1755_v28  ;;  %v6320_v17 = vand.u32 8388607, %v6961_v20  ;;  %v1285_v46 = vshrl.u32 %v7040_v8, %v7133_v57  ;;  %v3846_v27 = vpop.eup %3845 }
 0x239   : > { %v6327_v41 = vadd.s32 %v6314_v21, %v6303_v14  ;;  %vm1221_vm6 = vc.u32 %v6303_v14, %v6314_v21  ;;  %v1284_v47 = vshll.u32 %v7039_v35, %v7132_v60  ;;  %v1287_v3 = vshll.u32 %v7040_v8, %v7132_v60  ;;  %v3848_v56 = vpop.eup %3847 }
 0x23a   : > { %v1675_v53 = vxor.u32 2147483648, %v3846_v27  ;;  %v1754_v5 = vor.u32 %v1753_v32, %v1752_v61  ;;  %v1757_v12 = vshll.u32 %v1756_v42, 23  ;;  %v1288_v10 = vshrl.u32 %v7047_v26, %v7133_v57 }
 0x23b   : > { %v1672_v28 = vxor.u32 2147483648, %v3848_v56  ;;  %v1222_v20 = vadd.s32 1, %v6315_v16  ;;  %v1286_v0 = vor.u32 %v1285_v46, %v1284_v47  ;;  %v1290_v19 = vshll.u32 %v7047_v26, %v7132_v60 }
 0x23c   : > { %v1676_v34 = vsel %vm1674_vm12, %v1675_v53, %v3848_v56  ;;  %v1758_v8 = vor.u32 4788187, %v1757_v12  ;;  %v1761_v31 = vcvt.s32.f32 %v1754_v5  ;;  %v2923_v61 = vsel %vm2921_vm11, %v1675_v53, %v3848_v56  ;;  %v6358_v5 = vpop.permute.xlu0 %3251  ;;  %v7170_v12 = vld [vmem:[#allocation41_spill] sm:$0xff] }
 0x23d   : > { %v1673_v32 = vsel %vm1671_vm10, %v3846_v27, %v1672_v28  ;;  %v2920_v42 = vsel %vm2918_vm5, %v3846_v27, %v1672_v28  ;;  %v1223_v26 = vsel %vm1221_vm6, %v1222_v20, %v6315_v16  ;;  %v1291_v60 = vshrl.u32 %v6996_v43, %v7133_v57  ;;  %v7171_v28 = vld [vmem:[#allocation40_spill] sm:$0xff] }
 0x23e   : > { %v1677_v46 = vsel %vm1670_vm14, %v1673_v32, %v1676_v34  ;;  %v1759_v47 = vand.u32 2147483647, %v1758_v8  ;;  %v2924_v56 = vsel %vm2917_vm1, %v2920_v42, %v2923_v61  ;;  %v1224_v53 = vadd.s32 %v1223_v26, %v1219_v6 }
 0x23f   : > { %v6362_v27 = vsel %vm1668_vm0, nan, %v1677_v46  ;;  %v6366_v20 = vsel %vm1668_vm0, nan, %v2924_v56  ;;  %v1289_v14 = vor.u32 %v1288_v10, %v1287_v3  ;;  %v1292_v43 = vor.u32 %v1291_v60, %v1290_v19  ;;  %v6384_v10 = vpop.permute.xlu1 %3249 }
 0x240   : > { %v1762_v21 = vmul.f32 %v1761_v31, %v1759_v47  ;;  %v3098_v34 = vmul.f32 %v3869_v22, %v6362_v27  ;;  %v7169_v4 = vsel %vm5824_vm9, %v7166_v38, %v6208_v1  ;;  %v1225_v6 = vadd.s32 536870912, %v1224_v53 }
 0x241   : > { %v3195_v16 = vmul.f32 %v7169_v4, %v6366_v20  ;;  %v7172_v51 = vor.u32 %v7170_v12, %v7171_v28  ;;  %v3019_v31 = vadd.s32 3, %v6310_v2  ;;  %v1275_v19 = vor.u32 8388608, %v6320_v17 }
 0x242   : > { %vm1299_vm12 = vcmp.lt.s32.totalorder %v7151_v50, 1  ;;  %v1763_v8 = vxor.u32 2147483648, %v1762_v21  ;;  %v1226_v1 = vshrl.u32 %v1225_v6, 30  ;;  %vm1301_vm10 = vcmp.lt.s32.totalorder %v7151_v50, 3 }
 0x243   : > { %v1312_v3 = vsel %vm1302_vm4, %v7172_v51, 1326507024  ;;  %v3207_v61 = vadd.f32 %v3195_v16, %v3098_v34  ;;  %v1283_v38 = vshrl.u32 %v7039_v35, %v7133_v57  ;;  %v1307_v32 = vsel %vm1299_vm12, %v1286_v0, %v1289_v14  ;;  %v6402_v57 = vpop.permute.xlu0 %3255  ;;  %v6423_v16 = vpop.permute.xlu1 %3253 }
 0x244   : > { %v1309_v42 = vsel %vm1301_vm10, %v1292_v43, %v6189_v25  ;;  %v1311_v17 = vsel %vm1299_vm12, %v1289_v14, %v1292_v43  ;;  %v1764_v26 = vsel %vm1681_vm13, %v1763_v8, %v1762_v21  ;;  %v1227_v60 = vshll.u32 %v1226_v1, 30 }
 0x245   : > { %3219 = vst [vmem:[%s5384_s15 + $0x50] sm:$0xff] %v3207_v61  ;;  %vm1300_vm14 = vcmp.lt.s32.totalorder %v7151_v50, 2  ;;  %v1304_v35 = vsel %vm1302_vm4, %v1292_v43, 2102212464  ;;  %v1767_v46 = vsel %vm6258_vm3, %v7143_v15, %v1764_v26  ;;  %v1313_v47 = vsel %vm1301_vm10, %v6158_v58, %v1312_v3 }
 0x246   : > { %v1310_v25 = vsel %vm1300_vm14, %v1307_v32, %v1309_v42  ;;  %v1315_v56 = vshll.u32 %v1275_v19, 8  ;;  %3849 = vcosq.f32 %v1767_v46  ;;  %v6412_v21 = vsub.s32 %v1224_v53, %v1227_v60 }
 0x247   : > { %v1303_v43 = vsel %vm1299_vm12, %v1283_v38, %v1286_v0  ;;  %v1314_v22 = vsel %vm1300_vm14, %v1311_v17, %v1313_v47  ;;  %3851 = vsinq.f32 %v1767_v46  ;;  %v1305_v39 = vsel %vm1301_vm10, %v1289_v14, %v1304_v35  ;;  %v6432_v51 = vpop.permute.xlu0 %3271  ;;  %v6444_v32 = vpop.permute.xlu1 %3269 }
 0x248   : > { %v6420_v34 = vmul.u32.u64.low %v1315_v56, %v1314_v22  ;;  %v6421_v4 = vmul.u32.u64.high %v1315_v56, %v1314_v22, %v6420_v34  ;;  %v1230_v58 = vsub.s32 0, %v6412_v21  ;;  %v1250_v6 = vsub.s32 4, %v1226_v1 }
 0x249   : > { %v6426_v53 = vmul.u32.u64.low %v1315_v56, %v1310_v25  ;;  %v6427_v12 = vmul.u32.u64.high %v1315_v56, %v1310_v25, %v6426_v53  ;;  %v1306_v28 = vsel %vm1300_vm14, %v1303_v43, %v1305_v39  ;;  %v1772_v14 = vand.u32 3, %v6310_v2  ;;  %v7173_v2 = vld [vmem:[#allocation80_spill] sm:$0xff] }
 0x24a   : > { %v3590_v0 = vmin.u32 %v1230_v58, %v6412_v21  ;;  %vm1166_vm4 = vcmp.lt.s32.totalorder %v7153_v49, 0  ;;  %v3020_v19 = vand.u32 3, %v3019_v31  ;;  %vm1771_vm3 = vweird.f32 %v7143_v15  ;;  %v7178_v15 = vld [vmem:[#allocation62_spill] sm:$0xff] }
 0x24b   : > { %v6437_v3 = vadd.s32 %v6426_v53, %v6421_v4  ;;  %vm1324_vm13 = vc.u32 %v6421_v4, %v6426_v53  ;;  %v1251_v61 = vsel %vm1166_vm4, %v1250_v6, %v1226_v1  ;;  %v1325_v38 = vadd.s32 1, %v6427_v12 }
 0x24c   : > { %v1232_v8 = vclz %v3590_v0  ;;  %v1322_v50 = vmul.u32 %v1315_v56, %v1306_v28  ;;  %v3172_v42 = vsel %vm3160_vm2, %v6181_v37, %v7173_v2  ;;  %v7174_v17 = vand.u32 2147483647, %v7153_v49  ;;  %v6459_v37 = vpop.permute.xlu0 %3275  ;;  %v6464_v0 = vpop.permute.xlu1 %3273 }
 0x24d   : > { %v1326_v1 = vsel %vm1324_vm13, %v1325_v38, %v6427_v12  ;;  %vm1773_vm5 = vcmp.lt.s32.totalorder %v1772_v14, 2  ;;  %vm1774_vm0 = vcmp.eq.s32.totalorder %v1772_v14, 0  ;;  %vm1777_vm11 = vcmp.eq.s32.totalorder %v1772_v14, 2 }
 0x24e   : > { %vm6452_vm1 = vcmp.le.f32.partialorder %v7174_v17, 0.7853982  ;;  %v3591_v26 = vadd.s32 4294967294, %v1232_v8  ;;  %v1327_v35 = vadd.s32 %v1326_v1, %v1322_v50  ;;  %vm3021_vm6 = vcmp.lt.s32.totalorder %v3020_v19, 2  ;;  %v7177_v17 = vld [vmem:[#allocation73_spill] sm:$0xff] }
 0x24f   : > { %v1253_v60 = vsel %vm6452_vm1, 0, %v1251_v61  ;;  %vm3022_vm12 = vcmp.eq.s32.totalorder %v3020_v19, 0  ;;  %vm3025_vm14 = vcmp.eq.s32.totalorder %v3020_v19, 2  ;;  %v3870_v19 = vld [vmem:[%s4255_s10 + $0x58] sm:$0xff]  ;;  %vm7180_vm13 = vcmp.lt.s32.totalorder %v4281_v9, 1 }
 0x250   : > { %v3850_v46 = vpop.eup %3849  ;;  %vm3592_vm10 = vcmp.lt.s32.totalorder %v3591_v26, 0  ;;  %v1328_v43 = vadd.s32 536870912, %v1327_v35  ;;  %v2499_v4 = vadd.s32 3, %v1253_v60  ;;  %v6483_v14 = vpop.permute.xlu0 %3279 }
 0x251   : > { %v3852_v25 = vpop.eup %3851  ;;  %v1778_v47 = vxor.u32 2147483648, %v3850_v46  ;;  %v1235_v56 = vsel %vm3592_vm10, 0, %v3591_v26 }
 0x252   : > { %v1775_v22 = vxor.u32 2147483648, %v3852_v25  ;;  %v1236_v39 = vsub.s32 32, %v1235_v56  ;;  %v1240_v34 = vsub.s32 4294967266, %v1235_v56  ;;  %v1237_v53 = vshll.u32 %v6412_v21, %v1235_v56 }
 0x253   : > { %v1779_v58 = vsel %vm1777_vm11, %v1778_v47, %v3852_v25  ;;  %v3027_v6 = vsel %vm3025_vm14, %v1778_v47, %v3852_v25  ;;  %v6462_v12 = vshrl.u32 %v1328_v43, 30  ;;  %v3184_v21 = vsel %vm6041_vm15, %v7177_v17, %v3172_v42 }
 0x254   : > { %v1776_v28 = vsel %vm1774_vm0, %v3850_v46, %v1775_v22  ;;  %v3024_v8 = vsel %vm3022_vm12, %v3850_v46, %v1775_v22  ;;  %v1238_v61 = vshrl.u32 %v6327_v41, %v1236_v39  ;;  %v1241_v38 = vadd.s32 127, %v1240_v34 }
 0x255   : > { %v1780_v50 = vsel %vm1773_vm5, %v1776_v28, %v1779_v58  ;;  %v3028_v2 = vsel %vm3021_vm6, %v3024_v8, %v3027_v6  ;;  %v1330_v26 = vshll.u32 %v6462_v12, 30  ;;  %v6488_v42 = vand.u32 3, %v1253_v60 }
 0x256   : > { %v6477_v1 = vsel %vm1771_vm3, nan, %v1780_v50  ;;  %v6481_v46 = vsel %vm1771_vm3, nan, %v3028_v2  ;;  %v1239_v41 = vor.u32 %v1238_v61, %v1237_v53  ;;  %v1242_v25 = vshll.u32 %v1241_v38, 23  ;;  %vm7181_vm3 = vmmov %vm7180_vm13  ;;  %v3278_v53 = vpop.permute.xlu1 %3277 }
 0x257   : > { %v3099_v47 = vmul.f32 %v3870_v19, %v6477_v1  ;;  %v3196_v56 = vmul.f32 %v3184_v21, %v6481_v46  ;;  %v6490_v43 = vsub.s32 %v1327_v35, %v1330_v26  ;;  %v6492_v39 = vand.u32 3, %v2499_v4  ;;  %vm7182_vm5 = vmmov %vm7181_vm3 }
 0x258   : > { %v1243_v22 = vor.u32 4788187, %v1242_v25  ;;  %v6498_v34 = vsel %vm3160_vm2, %v7178_v15, %v6197_v55  ;;  %v6504_v58 = vsel %vm7180_vm13, %v6229_v63, %v6249_v45  ;;  %v6511_v4 = vsel %vm7181_vm3, %v6272_v18, %v6281_v48  ;;  %vm7183_vm0 = vmmov %vm7181_vm3  ;;  %v7186_v25 = vld [vmem:[#allocation24_spill] sm:$0xff] }
 0x259   : > { %7179 = vst [vmem:[#allocation69_spill] sm:$0xff] %v6498_v34  ;;  %v3208_v60 = vadd.f32 %v3196_v56, %v3099_v47  ;;  %v1333_v35 = vsub.s32 0, %v6490_v43  ;;  %v3264_v6 = vsel %vm7182_vm5, %v6216_v52, %v6305_v24  ;;  %v1246_v8 = vcvt.s32.f32 %v1239_v41  ;;  %vm7184_vm11 = vmmov %vm7183_vm0  ;;  %v3871_v41 = vld [vmem:[%s4263_s17] sm:$0xff]  ;;  %v7189_v55 = vld [vmem:[#allocation64_spill] sm:$0xff] }
 0x25a   : > { %v1244_v28 = vand.u32 2147483647, %v1243_v22  ;;  %v3299_v61 = vsel %vm3160_vm2, %v6444_v32, %v6459_v37  ;;  %v3301_v38 = vsel %vm3160_vm2, %v6464_v0, %v6483_v14  ;;  %v6531_v2 = vsel %vm7183_vm0, %v6249_v45, %v6339_v59  ;;  %vm7185_vm6 = vmmov %vm7183_vm0  ;;  %v6547_v22 = vpop.permute.xlu0 %3283 }
 0x25b   : > { %3220 = vst [vmem:[%s5384_s15 + $0x58] sm:$0xff] %v3208_v60  ;;  %v3594_v50 = vmin.u32 %v1333_v35, %v6490_v43  ;;  %v3266_v17 = vsel %vm7184_vm11, %v6358_v5, %v6229_v63  ;;  %v3268_v21 = vsel %vm7185_vm6, %v6402_v57, %v6272_v18  ;;  %v3221_v19 = vmul.f32 %v3871_v41, %v7186_v25  ;;  %v7188_v63 = vld [vmem:[#allocation29_spill] sm:$0xff]  ;;  %v3872_v35 = vld [vmem:[%s4263_s17 + $0x40] sm:$0xff]  ;;  %v7190_v18 = vld [vmem:[#allocation56_spill] sm:$0xff] }
 0x25c   : > { %v1247_v26 = vmul.f32 %v1246_v8, %v1244_v28  ;;  %v3305_v56 = vsel %vm5219_vm7, %v3266_v17, %v3299_v61  ;;  %v3313_v45 = vsel %vm5219_vm7, %v3268_v21, %v3301_v38  ;;  %v3229_v34 = vmul.f32 %v3872_v35, %v7189_v55  ;;  %vm7191_vm12 = vmmov %vm7183_vm0  ;;  %v3873_v25 = vld [vmem:[%s4263_s17 + $0x20] sm:$0xff] }
 0x25d   : > { %v1335_v15 = vclz %v3594_v50  ;;  %v3317_v60 = vmul.f32 %v3305_v56, %v7188_v63  ;;  %v3325_v28 = vmul.f32 %v3313_v45, %v7190_v18  ;;  %v3257_v61 = vsel %vm7191_vm12, %v6339_v59, %v6358_v5  ;;  %vm7192_vm10 = vmmov %vm7183_vm0  ;;  %v3282_v59 = vpop.permute.xlu1 %3281 }
 0x25e   : > { %v1248_v8 = vxor.u32 2147483648, %v1247_v26  ;;  %v6561_v38 = vsel %vm7192_vm10, %v6281_v48, %v6384_v10  ;;  %vm7193_vm14 = vmmov %vm7183_vm0  ;;  %v3300_v41 = vsel %vm3160_vm2, %v6432_v51, %v3278_v53  ;;  %v7194_v48 = vld [vmem:[#allocation33_spill] sm:$0xff]  ;;  %vm1269_vm3 = vcmp.lt.s32.totalorder %v7167_v54, 0 }
 0x25f   : > { %v3267_v55 = vsel %vm7193_vm14, %v6423_v16, %v6216_v52  ;;  %v3595_v50 = vadd.s32 4294967294, %v1335_v15  ;;  %v3329_v17 = vadd.f32 %v3317_v60, %v3221_v19  ;;  %v3337_v21 = vadd.f32 %v3325_v28, %v3229_v34  ;;  %v3288_v60 = vpop.permute.xlu0 %3287  ;;  %v3875_v28 = vld [vmem:[%s4263_s17 + $0x8] sm:$0xff] }
 0x260   : > { %v1249_v5 = vsel %vm1166_vm4, %v1248_v8, %v1247_v26  ;;  %v3225_v56 = vmul.f32 %v3873_v25, %v7194_v48  ;;  %v3309_v45 = vsel %vm5219_vm7, %v3267_v55, %v3300_v41  ;;  %v3297_v52 = vsel %vm3160_vm2, %v3278_v53, %v6547_v22  ;;  %v7195_v26 = vld [vmem:[#allocation67_spill] sm:$0xff]  ;;  %v3876_v41 = vld [vmem:[%s4263_s17 + $0x10] sm:$0xff] }
 0x261   : > { %v1252_v34 = vsel %vm6452_vm1, %v7153_v49, %v1249_v5  ;;  %vm3596_vm13 = vcmp.lt.s32.totalorder %v3595_v50, 0  ;;  %3341 = vst [vmem:[%s6583_s11] sm:$0xff] %v3329_v17  ;;  %3349 = vst [vmem:[%s6583_s11 + $0x40] sm:$0xff] %v3337_v21  ;;  %v3321_v19 = vmul.f32 %v3309_v45, %v7195_v26  ;;  %v3310_v47 = vsel %vm4686_vm8, %v3264_v6, %v3297_v52  ;;  %v3874_v53 = vld [vmem:[%s4263_s17 + $0x28] sm:$0xff] }
 0x262   : > { %3853 = vcosq.f32 %v1252_v34  ;;  %v1338_v15 = vsel %vm3596_vm13, 0, %v3595_v50  ;;  %v3226_v31 = vmul.f32 %v3874_v53, %v5683_v29  ;;  %v3322_v63 = vmul.f32 %v3310_v47, %v5687_v7  ;;  %v3878_v47 = vld [vmem:[%s4263_s17 + $0x48] sm:$0xff] }
 0x263   : > { %3855 = vsinq.f32 %v1252_v34  ;;  %v1339_v35 = vsub.s32 32, %v1338_v15  ;;  %v1343_v18 = vsub.s32 4294967266, %v1338_v15  ;;  %v3222_v8 = vmul.f32 %v3875_v28, %v5834_v23  ;;  %v3286_v23 = vpop.permute.xlu1 %3285  ;;  %v3292_v52 = vpop.permute.xlu0 %3291  ;;  %v3879_v28 = vld [vmem:[%s4263_s17 + $0x50] sm:$0xff] }
 0x264   : > { %v1340_v6 = vshll.u32 %v6490_v43, %v1338_v15  ;;  %v3333_v55 = vadd.f32 %v3321_v19, %v3225_v56  ;;  %v3334_v50 = vadd.f32 %v3322_v63, %v3226_v31  ;;  %v3296_v29 = vsel %vm3160_vm2, %v6459_v37, %v3282_v59  ;;  %v3877_v37 = vld [vmem:[%s4263_s17 + $0x18] sm:$0xff]  ;;  %v7200_v31 = vld [vmem:[#allocation19_spill] sm:$0xff] }
 0x265   : > { %v1341_v7 = vshrl.u32 %v6437_v3, %v1339_v35  ;;  %v1344_v17 = vadd.s32 127, %v1343_v18  ;;  %v3306_v21 = vsel %vm4686_vm8, %v6504_v58, %v3296_v29  ;;  %v3223_v5 = vmul.f32 %v3876_v41, %v5946_v62  ;;  %v7199_v15 = vld [vmem:[#allocation21_spill] sm:$0xff]  ;;  %v7201_v41 = vld [vmem:[#allocation26_spill] sm:$0xff] }
 0x266   : > { %vm1262_vm7 = vcmp.eq.s32.totalorder %v6488_v42, 2  ;;  %vm2505_vm4 = vcmp.eq.s32.totalorder %v6492_v39, 2  ;;  %3345 = vst [vmem:[%s6583_s11 + $0x20] sm:$0xff] %v3333_v55  ;;  %3346 = vst [vmem:[%s6583_s11 + $0x28] sm:$0xff] %v3334_v50  ;;  %v3318_v43 = vmul.f32 %v3306_v21, %v5838_v33  ;;  %v3224_v3 = vmul.f32 %v3877_v37, %v6097_v40 }
 0x267   : > { %v3293_v25 = vsel %vm3160_vm2, %v3282_v59, %v3288_v60  ;;  %v3302_v58 = vsel %vm3160_vm2, %v3288_v60, %v6444_v32  ;;  %vm1259_vm1 = vcmp.eq.s32.totalorder %v6488_v42, 0  ;;  %v1342_v62 = vor.u32 %v1341_v7, %v1340_v6  ;;  %v3290_v36 = vpop.permute.xlu1 %3289 }
 0x268   : > { %v1345_v48 = vshll.u32 %v1344_v17, 23  ;;  %vm2502_vm5 = vcmp.eq.s32.totalorder %v6492_v39, 0  ;;  %v3307_v33 = vsel %vm5824_vm9, %v6531_v2, %v3293_v25  ;;  %v3308_v40 = vsel %vm6041_vm15, %v3257_v61, %v3302_v58 }
 0x269   : > { %vm1258_vm0 = vcmp.lt.s32.totalorder %v6488_v42, 2  ;;  %vm2501_vm11 = vcmp.lt.s32.totalorder %v6492_v39, 2  ;;  %v3330_v32 = vadd.f32 %v3318_v43, %v3222_v8  ;;  %v3319_v59 = vmul.f32 %v3307_v33, %v5950_v13 }
 0x26a   : > { %v3320_v56 = vmul.f32 %v3308_v40, %v6101_v30  ;;  %v3298_v45 = vsel %vm3160_vm2, %v6483_v14, %v3286_v23  ;;  %vm1256_vm6 = vweird.f32 %v7153_v49  ;;  %v7196_v2 = vand.u32 2147483647, %v7167_v54  ;;  %v7203_v40 = vld [vmem:[#allocation69_spill] sm:$0xff] }
 0x26b   : > { %v1346_v34 = vor.u32 4788187, %v1345_v48  ;;  %v1353_v26 = vsub.s32 4, %v6462_v12  ;;  %v3259_v13 = vsel %vm7192_vm10, %v6384_v10, %v6402_v57  ;;  %v3314_v30 = vsel %vm4686_vm8, %v6511_v4, %v3298_v45  ;;  %3342 = vst [vmem:[%s6583_s11 + $0x8] sm:$0xff] %v3330_v32  ;;  %vm7202_vm8 = vmmov %vm7192_vm10  ;;  %v7204_v32 = vld [vmem:[#allocation50_spill] sm:$0xff] }
 0x26c   : > { %vm6635_vm12 = vcmp.le.f32.partialorder %v7196_v2, 0.7853982  ;;  %v3331_v14 = vadd.f32 %v3319_v59, %v3223_v5  ;;  %v3332_v19 = vadd.f32 %v3320_v56, %v3224_v3  ;;  %v3230_v53 = vmul.f32 %v3878_v47, %v7199_v15  ;;  %v3854_v57 = vpop.eup %3853  ;;  %v3880_v5 = vld [vmem:[%s4263_s17 + $0x58] sm:$0xff]  ;;  %v3881_v59 = vld [vmem:[%s4255_s10 + $0x30] sm:$0xff] }
 0x26d   : > { %v3326_v63 = vmul.f32 %v3314_v30, %v7200_v31  ;;  %v1347_v60 = vand.u32 2147483647, %v1346_v34  ;;  %v1349_v35 = vcvt.s32.f32 %v1342_v62  ;;  %v3295_v18 = vsel %vm3160_vm2, %v3286_v23, %v3292_v52  ;;  %v3856_v50 = vpop.eup %3855  ;;  %v3882_v2 = vld [vmem:[%s4263_s17 + $0x30] sm:$0xff]  ;;  %v7206_v31 = vld [vmem:[#allocation14_spill] sm:$0xff] }
 0x26e   : > { %v3304_v10 = vsel %vm3160_vm2, %v3292_v52, %v6464_v0  ;;  %3343 = vst [vmem:[%s6583_s11 + $0x10] sm:$0xff] %v3331_v14  ;;  %3344 = vst [vmem:[%s6583_s11 + $0x18] sm:$0xff] %v3332_v19  ;;  %v3231_v8 = vmul.f32 %v3879_v28, %v6362_v27  ;;  %v3315_v6 = vsel %vm5824_vm9, %v6561_v38, %v3295_v18  ;;  %v1263_v29 = vxor.u32 2147483648, %v3854_v57 }
 0x26f   : > { %v3338_v4 = vadd.f32 %v3326_v63, %v3230_v53  ;;  %v3316_v55 = vsel %vm6041_vm15, %v3259_v13, %v3304_v10  ;;  %v1350_v0 = vmul.f32 %v1349_v35, %v1347_v60  ;;  %v3327_v7 = vmul.f32 %v3315_v6, %v6366_v20  ;;  %v7205_v53 = vld [vmem:[#allocation79_spill] sm:$0xff] }
 0x270   : > { %v3328_v17 = vmul.f32 %v3316_v55, %v6481_v46  ;;  %v1260_v21 = vxor.u32 2147483648, %v3856_v50  ;;  %v3261_v27 = vsel %vm7202_vm8, %v6305_v24, %v7201_v41  ;;  %v3232_v38 = vmul.f32 %v3880_v5, %v6477_v1  ;;  %v3883_v55 = vld [vmem:[%s4255_s10 + $0x38] sm:$0xff] }
 0x271   : > { %3350 = vst [vmem:[%s6583_s11 + $0x48] sm:$0xff] %v3338_v4  ;;  %v3294_v23 = vsel %vm3160_vm2, %v6547_v22, %v3290_v36  ;;  %v1264_v20 = vsel %vm1262_vm7, %v1263_v29, %v3856_v50  ;;  %v1351_v43 = vxor.u32 2147483648, %v1350_v0  ;;  %v2507_v46 = vsel %vm2505_vm4, %v1263_v29, %v3856_v50 }
 0x272   : > { %v3339_v37 = vadd.f32 %v3327_v7, %v3231_v8  ;;  %v1261_v24 = vsel %vm1259_vm1, %v3854_v57, %v1260_v21  ;;  %v1354_v1 = vsel %vm1269_vm3, %v1353_v26, %v6462_v12  ;;  %v2504_v22 = vsel %vm2502_vm5, %v3854_v57, %v1260_v21  ;;  %v7208_v8 = vld [vmem:[#allocation74_spill] sm:$0xff] }
 0x273   : > { %v3340_v3 = vadd.f32 %v3328_v17, %v3232_v38  ;;  %v1265_v25 = vsel %vm1258_vm0, %v1261_v24, %v1264_v20  ;;  %v1352_v58 = vsel %vm1269_vm3, %v1351_v43, %v1350_v0  ;;  %v2508_v62 = vsel %vm2501_vm11, %v2504_v22, %v2507_v46  ;;  %v3884_v0 = vld [vmem:[%s4263_s17 + $0x38] sm:$0xff] }
 0x274   : > { %3351 = vst [vmem:[%s6583_s11 + $0x50] sm:$0xff] %v3339_v37  ;;  %v3311_v48 = vsel %vm5824_vm9, %v3261_v27, %v3294_v23  ;;  %v1266_v12 = vsel %vm1256_vm6, nan, %v1265_v25  ;;  %v1355_v33 = vsel %vm6635_vm12, %v7167_v54, %v1352_v58  ;;  %v2509_v42 = vsel %vm1256_vm6, nan, %v2508_v62 }
 0x275   : > { %v3179_v39 = vsel %vm5824_vm9, %v7204_v32, %v7203_v40  ;;  %3352 = vst [vmem:[%s6583_s11 + $0x58] sm:$0xff] %v3340_v3  ;;  %3857 = vcosq.f32 %v1355_v33  ;;  %v3094_v56 = vmul.f32 %v3881_v59, %v1266_v12  ;;  %v1356_v52 = vsel %vm6635_vm12, 0, %v1354_v1  ;;  %vm7207_vm9 = vmmov %vm7202_vm8 }
 0x276   : > { %v3191_v45 = vmul.f32 %v3179_v39, %v2509_v42  ;;  %3859 = vsinq.f32 %v1355_v33  ;;  %v3227_v34 = vmul.f32 %v3882_v2, %v1266_v12  ;;  %v3323_v49 = vmul.f32 %v3311_v48, %v2509_v42 }
 0x277   : > { %v2603_v30 = vadd.s32 3, %v1356_v52  ;;  %v1360_v11 = vand.u32 3, %v1356_v52  ;;  %v3171_v61 = vsel %vm3160_vm2, %v7206_v31, %v7205_v53  ;;  %v3258_v63 = vsel %vm7207_vm9, %v7201_v41, %v6423_v16 }
 0x278   : > { %v3203_v26 = vadd.f32 %v3191_v45, %v3094_v56  ;;  %v3335_v13 = vadd.f32 %v3323_v49, %v3227_v34  ;;  %v3303_v60 = vsel %vm3160_vm2, %v3290_v36, %v6432_v51  ;;  %vm1359_vm2 = vweird.f32 %v7167_v54 }
 0x279   : > { %v2604_v14 = vand.u32 3, %v2603_v30  ;;  %vm1361_vm14 = vcmp.lt.s32.totalorder %v1360_v11, 2  ;;  %vm1365_vm13 = vcmp.eq.s32.totalorder %v1360_v11, 2  ;;  %vm1362_vm4 = vcmp.eq.s32.totalorder %v1360_v11, 0 }
 0x27a   : > { %3215 = vst [vmem:[%s5384_s15 + $0x30] sm:$0xff] %v3203_v26  ;;  %3347 = vst [vmem:[%s6583_s11 + $0x30] sm:$0xff] %v3335_v13  ;;  %v3312_v16 = vsel %vm6041_vm15, %v3258_v63, %v3303_v60  ;;  %v3180_v6 = vsel %vm6041_vm15, %v7208_v8, %v3171_v61 }
 0x27b   : > { %vm2609_vm7 = vcmp.eq.s32.totalorder %v2604_v14, 2  ;;  %vm2606_vm1 = vcmp.eq.s32.totalorder %v2604_v14, 0  ;;  %vm2605_vm3 = vcmp.lt.s32.totalorder %v2604_v14, 2 }
 0x27f   : > { %v3858_v19 = vpop.eup %3857 }
 0x280   : > { %v3860_v47 = vpop.eup %3859  ;;  %v1366_v15 = vxor.u32 2147483648, %v3858_v19 }
 0x281   : > { %v1363_v35 = vxor.u32 2147483648, %v3860_v47 }
 0x282   : > { %v1367_v18 = vsel %vm1365_vm13, %v1366_v15, %v3860_v47  ;;  %v2611_v10 = vsel %vm2609_vm7, %v1366_v15, %v3860_v47 }
 0x283   : > { %v1364_v57 = vsel %vm1362_vm4, %v3858_v19, %v1363_v35  ;;  %v2608_v4 = vsel %vm2606_vm1, %v3858_v19, %v1363_v35 }
 0x284   : > { %v1368_v9 = vsel %vm1361_vm14, %v1364_v57, %v1367_v18  ;;  %v2612_v51 = vsel %vm2605_vm3, %v2608_v4, %v2611_v10  ;;  %3365 = sbr.rel (!%p7209_p6) target bundleno = 679 (0x2a7), region = 48 }
 0x285   : > { %v1369_v36 = vsel %vm1359_vm2, nan, %v1368_v9  ;;  %v2613_v28 = vsel %vm1359_vm2, nan, %v2612_v51 }
 0x286   : > { %v3095_v50 = vmul.f32 %v3883_v55, %v1369_v36  ;;  %v3192_v29 = vmul.f32 %v3180_v6, %v2613_v28  ;;  %v3228_v7 = vmul.f32 %v3884_v0, %v1369_v36  ;;  %v3324_v17 = vmul.f32 %v3312_v16, %v2613_v28 }
 0x288   : > { %v3204_v21 = vadd.f32 %v3192_v29, %v3095_v50  ;;  %v3336_v41 = vadd.f32 %v3324_v17, %v3228_v7 }
 0x28a   : > { %3216 = vst [vmem:[%s5384_s15 + $0x38] sm:$0xff] %v3204_v21  ;;  %3348 = vst [vmem:[%s6583_s11 + $0x38] sm:$0xff] %v3336_v41 }
 0x28b   : > { %s7222_s29 = smov (!%p3368_p1, %s3367_s29), 3 }
 0x28c   : > { %s6741_s10 = sshll.u32 %s7222_s29, 9 }
 0x28d   : > { %s3373_s17 = ssub.s32 1536, %s6741_s10 }
 0x28e   : > { %3374 = vsyncadd %s3354_s8, %s3373_s17  ;;  %p3663_p3 = scmp.ne.s32.totalorder %s6741_s10, 0  ;;  %s3691_s16 = smul.u32 1536, %s4119_s22 }
 0x28f   : > { %s3380_s25 = sshll.u32 %s5384_s15, 4  ;;  %s4062_s12 = smov [#allocation7]   ;;  %s6754_s25 = int_to_ptr.vmem [resolvable:$true] %s3380_s25 }
 0x290   : > { %s6752_s14 = scalar_lea.hbm %s6848_s4, %s3691_s16  ;;  %s3941_s23 = scalar_lea.vmem %s6754_s25, %s6741_s10 }
 0x291   : > { %p3942_p4 = scmp.ne.s32.totalorder %s6754_s25, %s3941_s23  ;;  %s3945_s29 = sshll.u32 %s4062_s12, 4  ;;  %s3946_s29 = int_to_ptr.vmem [resolvable:$false] %s3945_s29 }
 0x292   : > { %s3947_s17 = scalar_lea.vmem %s3946_s29, 3072  ;;  %p3948_p10 = scmp.lt.s32.totalorder %s6754_s25, %s3946_s29 }
 0x293   : > { %p3943_p7 = pnand %p3942_p4, %p3663_p3  ;;  %p3949_p11 = scmp.lt.s32.totalorder %s3947_s17, %s3941_s23 }
 0x295   : > { %p3944_p9 = pneg %p3943_p7  ;;  %p3950_p2 = por %p3949_p11, %p3948_p10 }
 0x297   : > { %p3951_p8 = pnand %p3950_p2, %p3944_p9 }
 0x299   : > { %3954 = shalt.err (!%p3951_p8)
}
 0x29a   : > { %s3955_s15 = scalar_lea.hbm %s6752_s14, %s6741_s10  ;;  %s3959_s9 = scalar_lea.hbm %s6848_s4, 2560 }
 0x29b   : > { %p3956_p13 = scmp.ne.s32.totalorder %s6752_s14, %s3955_s15  ;;  %p3960_p5 = scmp.lt.u32.totalorder %s6752_s14, %s6848_s4 }
 0x29c   : > { %p3961_p6 = scmp.lt.u32.totalorder %s3959_s9, %s3955_s15  ;;  %p3963_p4 = scmp.lt.u32.totalorder %s3955_s15, %s6752_s14 }
 0x29d   : > { %p3957_p12 = pnand %p3956_p13, %p3663_p3 }
 0x29e   : > { %p3962_p1 = por %p3961_p6, %p3960_p5 }
 0x29f   : > { %p3958_p0 = pneg %p3957_p12 }
 0x2a0   : > { %p3964_p7 = por %p3963_p4, %p3962_p1 }
 0x2a2   : > { %p3965_p9 = pnand %p3964_p7, %p3958_p0 }
 0x2a4   : > { %3968 = shalt.err (!%p3965_p9)
}
 0x2a5   : > { %s4063_s29 = smov 512   ;;  %s4064_s17 = smov 32  }
 0x2a6   : > { %3386 = dma.vmem_to_hbm [thread:$0]  (%p3663_p3), %s6754_s25, %s6741_s10, %s6752_s14, %s3354_s8, %s4063_s29, %s4063_s29, %s4064_s17  }
 0x2a7 PF: > { %p7210_p10 = scmp.ne.s32.totalorder %s6969_s30, 0 }
 0x2a8   : > { %s3391_s15 = ssub.s32 (%p7210_p10), 5, %s4270_s13 }
 0x2a9   : > { %3389 = sbr.rel (!%p7210_p10) target bundleno = 716 (0x2cc), region = 52  ;;  %p3392_p11 = scmp.lt.s32.totalorder (%p7210_p10), %s3391_s15, 3 }
 0x2b0   : > { %s7224_s15 = smov (!%p3392_p11, %s3391_s15), 3 }
 0x2b1   : > { %s6785_s16 = sshll.u32 %s7224_s15, 9 }
 0x2b2   : > { %s3397_s26 = ssub.s32 1536, %s6785_s16 }
 0x2b3   : > { %3398 = vsyncadd %s3359_s28, %s3397_s26  ;;  %p3670_p3 = scmp.ne.s32.totalorder %s6785_s16, 0  ;;  %s3692_s8 = smul.u32 1536, %s4119_s22 }
 0x2b4   : > { %s3404_s30 = sshll.u32 %s6583_s11, 4  ;;  %s4065_s9 = smov [#allocation8]   ;;  %s6798_s30 = int_to_ptr.vmem [resolvable:$true] %s3404_s30 }
 0x2b5   : > { %s6796_s13 = scalar_lea.hbm %s6849_s5, %s3692_s8  ;;  %s3969_s14 = scalar_lea.vmem %s6798_s30, %s6785_s16 }
 0x2b6   : > { %p3970_p2 = scmp.ne.s32.totalorder %s6798_s30, %s3969_s14  ;;  %s3973_s12 = sshll.u32 %s4065_s9, 4  ;;  %s3974_s12 = int_to_ptr.vmem [resolvable:$false] %s3973_s12 }
 0x2b7   : > { %s3975_s22 = scalar_lea.vmem %s3974_s12, 3072  ;;  %p3976_p12 = scmp.lt.s32.totalorder %s6798_s30, %s3974_s12 }
 0x2b8   : > { %p3971_p8 = pnand %p3970_p2, %p3670_p3  ;;  %p3977_p0 = scmp.lt.s32.totalorder %s3975_s22, %s3969_s14 }
 0x2ba   : > { %p3972_p13 = pneg %p3971_p8  ;;  %p3978_p5 = por %p3977_p0, %p3976_p12 }
 0x2bc   : > { %p3979_p6 = pnand %p3978_p5, %p3972_p13 }
 0x2be   : > { %3982 = shalt.err (!%p3979_p6)
}
 0x2bf   : > { %s3983_s11 = scalar_lea.hbm %s6796_s13, %s6785_s16  ;;  %s3987_s17 = scalar_lea.hbm %s6849_s5, 2560 }
 0x2c0   : > { %p3984_p1 = scmp.ne.s32.totalorder %s6796_s13, %s3983_s11  ;;  %p3988_p9 = scmp.lt.u32.totalorder %s6796_s13, %s6849_s5 }
 0x2c1   : > { %p3989_p10 = scmp.lt.u32.totalorder %s3987_s17, %s3983_s11  ;;  %p3991_p2 = scmp.lt.u32.totalorder %s3983_s11, %s6796_s13 }
 0x2c2   : > { %p3985_p4 = pnand %p3984_p1, %p3670_p3 }
 0x2c3   : > { %p3990_p11 = por %p3989_p10, %p3988_p9 }
 0x2c4   : > { %p3986_p7 = pneg %p3985_p4 }
 0x2c5   : > { %p3992_p8 = por %p3991_p2, %p3990_p11 }
 0x2c7   : > { %p3993_p13 = pnand %p3992_p8, %p3986_p7 }
 0x2c9   : > { %3996 = shalt.err (!%p3993_p13)
}
 0x2ca   : > { %s4066_s8 = smov 512   ;;  %s4067_s10 = smov 32  }
 0x2cb   : > { %3410 = dma.vmem_to_hbm [thread:$0]  (%p3670_p3), %s6798_s30, %s6785_s16, %s6796_s13, %s3359_s28, %s4066_s8, %s4066_s8, %s4067_s10  }
 0x2cc PF: > { %s3419_s25 = sand.u32 1, %s4031_s18   ;;  %p7211_p12 = scmp.ne.s32.totalorder %s6970_s6, 0 }
 0x2cd   : > { %p7212_p0 = scmp.ge.s32.totalorder %s4043_s21, 2  ;;  %s3420_s14 = scalar_lea.sflag [#allocation4], %s3419_s25 }
 0x2cf   : > { %p3749_p5 = pnand %p7212_p0, %p7211_p12 }
 0x2d1   : > { %4022 = dma.done.wait (!%p3749_p5), %s3420_s14, 1536  }
 0x2d2   : > { %4024 = vsyncadd (!%p3749_p5), %s3420_s14, 4294965760  ;;  %s3429_s9 = scalar_lea.sflag [#allocation9], %s3419_s25 }
 0x2d3   : > { %4026 = dma.done.wait (!%p3749_p5), %s3429_s9, 1536  }
 0x2d4   : > { %4028 = vsyncadd (!%p3749_p5), %s3429_s9, 4294965760  ;;  %p25_p3 = scmp.ge.s32.totalorder %s4123_s24, 4   ;;  %s7213_s18 = smov %s4035_s19 }
 0x2d5   : > { %s7214_s19 = smov %s4039_s20  ;;  %s7215_s20 = smov %s4135_s27 }
 0x2d6   : > { %s7216_s21 = smov %s4123_s24  ;;  %27 = sbr.rel (!%p25_p3) target bundleno = 9 (0x9), region = 116 }
 0x2dd   :  { %3434 = vsyncpa [#allocation3], 1 }
 0x2de   :  { %3436 = vsyncpa [#allocation3 + $0x1], 1 }
 0x2df   :  { %3437 = vsyncpa [#allocation6], 1 }
 0x2e0   :  { %3439 = vsyncpa [#allocation6 + $0x1], 1 }
 0x2e1   :  { %3440 = vsyncpa [#allocation4], 1 }
 0x2e2   :  { %3442 = vsyncpa [#allocation4 + $0x1], 1 }
 0x2e3   :  { %3443 = vsyncpa [#allocation9], 1 }
 0x2e4   :  { %3445 = vsyncpa [#allocation9 + $0x1], 1 }

</bundles_post_ra>
